<compile_context>
chip_gen: v6e
topology: v6e:2x2x1
jax: 0.10.0
libtpu: 0.0.40
codegen_flags: <defaults>
</compile_context>

<pallas_src>
import functools

import jax
import jax.numpy as jnp
from jax import lax
from jax.experimental import pallas as pl
from jax.experimental.pallas import tpu as pltpu


def _round_up(x, m):
    return ((x + m - 1) // m) * m


# ---------------------------------------------------------------------------
# Pallas kernel 1: fused  out = relu?(A @ B + bias), tiled over M
# ---------------------------------------------------------------------------
def _matmul_bias_kernel(a_ref, b_ref, bias_ref, o_ref, *, relu):
    acc = jnp.dot(a_ref[...], b_ref[...], preferred_element_type=jnp.float32)
    acc = acc + bias_ref[...]            # (1, N) broadcasts over rows
    if relu:
        acc = jnp.maximum(acc, 0.0)
    o_ref[...] = acc.astype(o_ref.dtype)


def matmul_bias(a, b, bias, *, relu, block_m=256, out_dtype=jnp.bfloat16):
    """a: (M, K) bf16, b: (K, N) bf16, bias: (1, N) f32 -> (M, N) out_dtype."""
    M, K = a.shape
    K2, N = b.shape
    assert K == K2 and bias.shape == (1, N)
    # block_m is a multiple of 16 (bf16 sublane packing); a full-dim block is
    # always legal, so small M just uses a single M-sized block.
    bm = block_m if M > block_m else M
    grid = (pl.cdiv(M, bm),)
    return pl.pallas_call(
        functools.partial(_matmul_bias_kernel, relu=relu),
        out_shape=jax.ShapeDtypeStruct((M, N), out_dtype),
        grid=grid,
        in_specs=[
            pl.BlockSpec((bm, K), lambda i: (i, 0)),   # A row-block (pipelined)
            pl.BlockSpec((K, N), lambda i: (0, 0)),    # full weight (fetched once)
            pl.BlockSpec((1, N), lambda i: (0, 0)),    # bias
        ],
        out_specs=pl.BlockSpec((bm, N), lambda i: (i, 0)),
        compiler_params=pltpu.CompilerParams(
            dimension_semantics=("parallel",),
            vmem_limit_bytes=32 * 1024 * 1024,
        ),
    )(a, b, bias)


# ---------------------------------------------------------------------------
# Pallas kernel 2: fused FC1 + ReLU + FC2
#   out = relu(x @ W4 + b4) @ W5 + b5, computed as a sum over 128-wide chunks
#   of the hidden dimension so the big W4 weight streams through VMEM and the
#   hidden activation never hits HBM.
# ---------------------------------------------------------------------------
def _fc_fused_kernel(x_ref, w4_ref, b4_ref, w5_ref, b5_ref, o_ref, acc_ref):
    j = pl.program_id(1)

    @pl.when(j == 0)
    def _():
        acc_ref[...] = jnp.zeros_like(acc_ref)

    # hidden chunk j: relu(x @ W4[:, j*128:(j+1)*128] + b4[chunk])
    h = jnp.dot(x_ref[...], w4_ref[...], preferred_element_type=jnp.float32)
    h = jnp.maximum(h + b4_ref[...], 0.0)
    # contract immediately against the matching 128 rows of W5
    acc_ref[...] += jnp.dot(h.astype(jnp.bfloat16), w5_ref[...],
                            preferred_element_type=jnp.float32)

    @pl.when(j == pl.num_programs(1) - 1)
    def _():
        o_ref[...] = acc_ref[...] + b5_ref[...]


def fc_fused(x, w4, b4, w5, b5, *, block_b=256, block_n=128):
    """x:(B,K) bf16, w4:(K,N1) bf16, b4:(1,N1) f32, w5:(N1,N2) bf16, b5:(1,N2) f32."""
    B, K = x.shape
    K2, N1 = w4.shape
    N1b, N2 = w5.shape
    assert K == K2 and N1 == N1b and N1 % block_n == 0
    bm = block_b if B > block_b else B
    grid = (pl.cdiv(B, bm), N1 // block_n)
    return pl.pallas_call(
        _fc_fused_kernel,
        out_shape=jax.ShapeDtypeStruct((B, N2), jnp.float32),
        grid=grid,
        in_specs=[
            pl.BlockSpec((bm, K), lambda i, j: (i, 0)),        # x batch block
            pl.BlockSpec((K, block_n), lambda i, j: (0, j)),   # W4 column chunk
            pl.BlockSpec((1, block_n), lambda i, j: (0, j)),   # b4 chunk
            pl.BlockSpec((block_n, N2), lambda i, j: (j, 0)),  # W5 row chunk
            pl.BlockSpec((1, N2), lambda i, j: (0, 0)),        # b5 (lane-padded)
        ],
        out_specs=pl.BlockSpec((bm, N2), lambda i, j: (i, 0)),
        scratch_shapes=[pltpu.VMEM((bm, N2), jnp.float32)],
        compiler_params=pltpu.CompilerParams(
            dimension_semantics=("parallel", "arbitrary"),
            vmem_limit_bytes=32 * 1024 * 1024,
        ),
    )(x, w4, b4, w5, b5)


# ---------------------------------------------------------------------------
# Conv2d (valid padding) + ReLU, via im2col (glue) + Pallas fused matmul
# ---------------------------------------------------------------------------
def conv2d_relu(x_nhwc, w_mat, bias, *, ksize, stride):
    B, H, W, C = x_nhwc.shape
    OH = (H - ksize) // stride + 1
    OW = (W - ksize) // stride + 1
    # im2col with (kh, kw, cin)-ordered features, matching w_mat's row order.
    patches = []
    for i in range(ksize):
        for j in range(ksize):
            patches.append(
                x_nhwc[:, i:i + stride * OH:stride, j:j + stride * OW:stride, :])
    cols = jnp.stack(patches, axis=3).reshape(B * OH * OW, ksize * ksize * C)
    y = matmul_bias(cols, w_mat, bias, relu=True, out_dtype=jnp.bfloat16)
    return y.reshape(B, OH, OW, w_mat.shape[1])


# ---------------------------------------------------------------------------
# DeepQNetwork forward (NCHW input at the API boundary, NHWC internally)
# ---------------------------------------------------------------------------
def dqn_forward(params, x_nchw, *, num_actions):
    # x: (B, 4, 84, 84) — 84x84 is required by the hard-coded 64*7*7 flatten.
    x = jnp.transpose(x_nchw, (0, 2, 3, 1)).astype(jnp.bfloat16)          # NHWC
    x = conv2d_relu(x, params["w1m"], params["b1"], ksize=8, stride=4)    # (B,20,20,32)
    x = conv2d_relu(x, params["w2m"], params["b2"], ksize=4, stride=2)    # (B, 9, 9,64)
    x = conv2d_relu(x, params["w3m"], params["b3"], ksize=3, stride=1)    # (B, 7, 7,64)
    B = x.shape[0]
    x = x.reshape(B, 7 * 7 * 64)     # NHWC flatten; W4 rows pre-permuted to match
    logits = fc_fused(x, params["w4m"], params["b4"], params["w5m"], params["b5"])
    return logits[:, :num_actions]   # strip the lane-padding of the output layer


# ---------------------------------------------------------------------------
# Parameter init (PyTorch layout) + one-time re-layout for the kernels
# ---------------------------------------------------------------------------
def init_raw_params(key, num_actions):
    ks = jax.random.split(key, 10)

    def uniform(k, shape, fan_in):
        bound = 1.0 / jnp.sqrt(float(fan_in))
        return jax.random.uniform(k, shape, jnp.float32, -bound, bound)

    # Conv weights ~ N(0, 0.02) per weights_init; linear layers default-style.
    return {
        "w1": jax.random.normal(ks[0], (32, 4, 8, 8), jnp.float32) * 0.02,
        "b1": uniform(ks[1], (32,), 4 * 8 * 8),
        "w2": jax.random.normal(ks[2], (64, 32, 4, 4), jnp.float32) * 0.02,
        "b2": uniform(ks[3], (64,), 32 * 4 * 4),
        "w3": jax.random.normal(ks[4], (64, 64, 3, 3), jnp.float32) * 0.02,
        "b3": uniform(ks[5], (64,), 64 * 3 * 3),
        "w4": uniform(ks[6], (512, 64 * 7 * 7), 64 * 7 * 7),
        "b4": uniform(ks[7], (512,), 64 * 7 * 7),
        "w5": uniform(ks[8], (num_actions, 512), 512),
        "b5": uniform(ks[9], (num_actions,), 512),
    }


def prepare_params(raw, num_actions):
    """Hoist all weight re-layout out of the forward pass (runs once)."""

    def conv_w(w):  # (Cout, Cin, KH, KW) -> (KH*KW*Cin, Cout), bf16
        cout = w.shape[0]
        return jnp.transpose(w, (2, 3, 1, 0)).reshape(-1, cout).astype(jnp.bfloat16)

    n_pad = _round_up(max(num_actions, 1), 128)
    # W4: PyTorch flattens NCHW (c,h,w); we flatten NHWC (h,w,c) -> permute rows.
    w4 = raw["w4"].reshape(512, 64, 7, 7)                       # (out, c, h, w)
    w4 = jnp.transpose(w4, (2, 3, 1, 0)).reshape(7 * 7 * 64, 512)
    # W5/b5: transpose to (K, N) and zero-pad N to 128 lanes (lane-dense store).
    w5 = jnp.zeros((512, n_pad), jnp.float32).at[:, :num_actions].set(raw["w5"].T)
    b5 = jnp.zeros((1, n_pad), jnp.float32).at[0, :num_actions].set(raw["b5"])
    return {
        "w1m": conv_w(raw["w1"]), "b1": raw["b1"].reshape(1, -1),
        "w2m": conv_w(raw["w2"]), "b2": raw["b2"].reshape(1, -1),
        "w3m": conv_w(raw["w3"]), "b3": raw["b3"].reshape(1, -1),
        "w4m": w4.astype(jnp.bfloat16), "b4": raw["b4"].reshape(1, -1),
        "w5m": w5.astype(jnp.bfloat16), "b5": b5,
    }


# Pure-JAX/XLA reference (f32) for a correctness cross-check.
def dqn_reference(raw, x):
    dn = ("NCHW", "OIHW", "NCHW")
    y = x
    for w, b, s in ((raw["w1"], raw["b1"], 4),
                    (raw["w2"], raw["b2"], 2),
                    (raw["w3"], raw["b3"], 1)):
        y = lax.conv_general_dilated(y, w, (s, s), "VALID", dimension_numbers=dn)
        y = jax.nn.relu(y + b[None, :, None, None])
    y = y.reshape(y.shape[0], -1)
    y = jax.nn.relu(y @ raw["w4"].T + raw["b4"])
    return y @ raw["w5"].T + raw["b5"]


if __name__ == "__main__":
    num_actions = 6
    batch = 2

    key = jax.random.PRNGKey(0)
    k_params, k_x = jax.random.split(key)
    raw = init_raw_params(k_params, num_actions)
    params = prepare_params(raw, num_actions)   # weight re-layout hoisted here

    # Input must be (B, 4, 84, 84): the module hard-codes the 64*7*7 flatten.
    x = jax.random.normal(k_x, (batch, 4, 84, 84), jnp.float32)

    fwd = jax.jit(functools.partial(dqn_forward, num_actions=num_actions))
    out = jax.block_until_ready(fwd(params, x))

    assert out.shape == (batch, num_actions), out.shape
    assert out.dtype == jnp.float32
    assert bool(jnp.all(jnp.isfinite(out)))

    # Cross-check the bf16 Pallas pipeline against the f32 XLA reference.
    ref = dqn_reference(raw, x)
    assert bool(jnp.allclose(out, ref, atol=2e-3, rtol=1e-1)), (
        "max abs diff = %f" % float(jnp.max(jnp.abs(out - ref))))

    print("KERNEL_OK")
</pallas_src>

<mosaic_0001>
module attributes {stable_mosaic.version = 11 : i64} {
  func.func @_matmul_bias_kernel(%arg0: i32, %arg1: memref<256x256xbf16, #tpu.memory_space<vmem>>, %arg2: memref<256x32xbf16, #tpu.memory_space<vmem>>, %arg3: memref<1x32xf32, #tpu.memory_space<vmem>>, %arg4: memref<256x32xbf16, #tpu.memory_space<vmem>>) attributes {dimension_semantics = [#tpu.dimension_semantics<parallel>], iteration_bounds = array<i64: 4>, scalar_prefetch = 0 : i64, scratch_operands = 0 : i64, tpu.core_type = #tpu.core_type<tc>, window_params = [{transform_indices = @transform_0, window_bounds = array<i64: 256, 256>}, {pipeline_mode = #tpu.pipeline_mode<synchronous>, transform_indices = @transform_1, window_bounds = array<i64: 256, 32>}, {pipeline_mode = #tpu.pipeline_mode<synchronous>, transform_indices = @transform_2, window_bounds = array<i64: 1, 32>}, {transform_indices = @transform_3, window_bounds = array<i64: 256, 32>}]} {
    %c0 = arith.constant 0 : index
    %c0_0 = arith.constant 0 : index
    %0 = vector.load %arg1[%c0, %c0_0] : memref<256x256xbf16, #tpu.memory_space<vmem>>, vector<256x256xbf16>
    %c0_1 = arith.constant 0 : index
    %c0_2 = arith.constant 0 : index
    %1 = vector.load %arg2[%c0_1, %c0_2] : memref<256x32xbf16, #tpu.memory_space<vmem>>, vector<256x32xbf16>
    %cst = arith.constant dense<0.000000e+00> : vector<256x32xf32>
    %2 = tpu.matmul %0, %1, %cst {dimension_numbers = #tpu.dot_dimension_numbers<[1], [0], [0], [1], [0, 0, 1, 1], [], []>} : vector<256x256xbf16>, vector<256x32xbf16>, vector<256x32xf32> -> vector<256x32xf32>
    %c0_3 = arith.constant 0 : index
    %c0_4 = arith.constant 0 : index
    %3 = vector.load %arg3[%c0_3, %c0_4] : memref<1x32xf32, #tpu.memory_space<vmem>>, vector<1x32xf32>
    %4 = vector.broadcast %3 : vector<1x32xf32> to vector<256x32xf32>
    %5 = arith.addf %2, %4 : vector<256x32xf32>
    %cst_5 = arith.constant 0.000000e+00 : f32
    %6 = vector.broadcast %cst_5 : f32 to vector<256x32xf32>
    %7 = arith.maximumf %5, %6 : vector<256x32xf32>
    %8 = arith.truncf %7 : vector<256x32xf32> to vector<256x32xbf16>
    %c0_6 = arith.constant 0 : index
    %c0_7 = arith.constant 0 : index
    %9 = vector.load %arg4[%c0_6, %c0_7] : memref<256x32xbf16, #tpu.memory_space<vmem>>, vector<256x32xbf16>
    tpu.vector_store %arg4[%c0_6, %c0_7], %8 {strides = array<i32>} : memref<256x32xbf16, #tpu.memory_space<vmem>>, vector<256x32xbf16>,
    return
  }
  func.func @transform_0(%arg0: i32) -> (i32, i32) {
    %c0_i32 = arith.constant 0 : i32
    %c0_i32_0 = arith.constant 0 : i32
    return %arg0, %c0_i32 : i32, i32
  }
  func.func @transform_1(%arg0: i32) -> (i32, i32) {
    %c0_i32 = arith.constant 0 : i32
    %c0_i32_0 = arith.constant 0 : i32
    %c0_i32_1 = arith.constant 0 : i32
    return %c0_i32, %c0_i32_0 : i32, i32
  }
  func.func @transform_2(%arg0: i32) -> (i32, i32) {
    %c0_i32 = arith.constant 0 : i32
    %c0_i32_0 = arith.constant 0 : i32
    %c0_i32_1 = arith.constant 0 : i32
    return %c0_i32, %c0_i32_0 : i32, i32
  }
  func.func @transform_3(%arg0: i32) -> (i32, i32) {
    %c0_i32 = arith.constant 0 : i32
    %c0_i32_0 = arith.constant 0 : i32
    return %arg0, %c0_i32 : i32, i32
  }
}

module attributes {stable_mosaic.version = 11 : i64} {
  func.func @_matmul_bias_kernel(%arg0: i32, %arg1: memref<162x512xbf16, #tpu.memory_space<vmem>>, %arg2: memref<512x64xbf16, #tpu.memory_space<vmem>>, %arg3: memref<1x64xf32, #tpu.memory_space<vmem>>, %arg4: memref<162x64xbf16, #tpu.memory_space<vmem>>) attributes {dimension_semantics = [#tpu.dimension_semantics<parallel>], iteration_bounds = array<i64: 1>, scalar_prefetch = 0 : i64, scratch_operands = 0 : i64, tpu.core_type = #tpu.core_type<tc>, window_params = [{transform_indices = @transform_0, window_bounds = array<i64: 162, 512>}, {pipeline_mode = #tpu.pipeline_mode<synchronous>, transform_indices = @transform_1, window_bounds = array<i64: 512, 64>}, {pipeline_mode = #tpu.pipeline_mode<synchronous>, transform_indices = @transform_2, window_bounds = array<i64: 1, 64>}, {transform_indices = @transform_3, window_bounds = array<i64: 162, 64>}]} {
    %c0 = arith.constant 0 : index
    %c0_0 = arith.constant 0 : index
    %0 = vector.load %arg1[%c0, %c0_0] : memref<162x512xbf16, #tpu.memory_space<vmem>>, vector<162x512xbf16>
    %c0_1 = arith.constant 0 : index
    %c0_2 = arith.constant 0 : index
    %1 = vector.load %arg2[%c0_1, %c0_2] : memref<512x64xbf16, #tpu.memory_space<vmem>>, vector<512x64xbf16>
    %cst = arith.constant dense<0.000000e+00> : vector<162x64xf32>
    %2 = tpu.matmul %0, %1, %cst {dimension_numbers = #tpu.dot_dimension_numbers<[1], [0], [0], [1], [0, 0, 1, 1], [], []>} : vector<162x512xbf16>, vector<512x64xbf16>, vector<162x64xf32> -> vector<162x64xf32>
    %c0_3 = arith.constant 0 : index
    %c0_4 = arith.constant 0 : index
    %3 = vector.load %arg3[%c0_3, %c0_4] : memref<1x64xf32, #tpu.memory_space<vmem>>, vector<1x64xf32>
    %4 = vector.broadcast %3 : vector<1x64xf32> to vector<162x64xf32>
    %5 = arith.addf %2, %4 : vector<162x64xf32>
    %cst_5 = arith.constant 0.000000e+00 : f32
    %6 = vector.broadcast %cst_5 : f32 to vector<162x64xf32>
    %7 = arith.maximumf %5, %6 : vector<162x64xf32>
    %8 = arith.truncf %7 : vector<162x64xf32> to vector<162x64xbf16>
    %c0_6 = arith.constant 0 : index
    %c0_7 = arith.constant 0 : index
    %9 = vector.load %arg4[%c0_6, %c0_7] : memref<162x64xbf16, #tpu.memory_space<vmem>>, vector<162x64xbf16>
    tpu.vector_store %arg4[%c0_6, %c0_7], %8 {strides = array<i32>} : memref<162x64xbf16, #tpu.memory_space<vmem>>, vector<162x64xbf16>,
    return
  }
  func.func @transform_0(%arg0: i32) -> (i32, i32) {
    %c0_i32 = arith.constant 0 : i32
    %c0_i32_0 = arith.constant 0 : i32
    return %arg0, %c0_i32 : i32, i32
  }
  func.func @transform_1(%arg0: i32) -> (i32, i32) {
    %c0_i32 = arith.constant 0 : i32
    %c0_i32_0 = arith.constant 0 : i32
    %c0_i32_1 = arith.constant 0 : i32
    return %c0_i32, %c0_i32_0 : i32, i32
  }
  func.func @transform_2(%arg0: i32) -> (i32, i32) {
    %c0_i32 = arith.constant 0 : i32
    %c0_i32_0 = arith.constant 0 : i32
    %c0_i32_1 = arith.constant 0 : i32
    return %c0_i32, %c0_i32_0 : i32, i32
  }
  func.func @transform_3(%arg0: i32) -> (i32, i32) {
    %c0_i32 = arith.constant 0 : i32
    %c0_i32_0 = arith.constant 0 : i32
    return %arg0, %c0_i32 : i32, i32
  }
}

module attributes {stable_mosaic.version = 11 : i64} {
  func.func @_matmul_bias_kernel(%arg0: i32, %arg1: memref<98x576xbf16, #tpu.memory_space<vmem>>, %arg2: memref<576x64xbf16, #tpu.memory_space<vmem>>, %arg3: memref<1x64xf32, #tpu.memory_space<vmem>>, %arg4: memref<98x64xbf16, #tpu.memory_space<vmem>>) attributes {dimension_semantics = [#tpu.dimension_semantics<parallel>], iteration_bounds = array<i64: 1>, scalar_prefetch = 0 : i64, scratch_operands = 0 : i64, tpu.core_type = #tpu.core_type<tc>, window_params = [{transform_indices = @transform_0, window_bounds = array<i64: 98, 576>}, {pipeline_mode = #tpu.pipeline_mode<synchronous>, transform_indices = @transform_1, window_bounds = array<i64: 576, 64>}, {pipeline_mode = #tpu.pipeline_mode<synchronous>, transform_indices = @transform_2, window_bounds = array<i64: 1, 64>}, {transform_indices = @transform_3, window_bounds = array<i64: 98, 64>}]} {
    %c0 = arith.constant 0 : index
    %c0_0 = arith.constant 0 : index
    %0 = vector.load %arg1[%c0, %c0_0] : memref<98x576xbf16, #tpu.memory_space<vmem>>, vector<98x576xbf16>
    %c0_1 = arith.constant 0 : index
    %c0_2 = arith.constant 0 : index
    %1 = vector.load %arg2[%c0_1, %c0_2] : memref<576x64xbf16, #tpu.memory_space<vmem>>, vector<576x64xbf16>
    %cst = arith.constant dense<0.000000e+00> : vector<98x64xf32>
    %2 = tpu.matmul %0, %1, %cst {dimension_numbers = #tpu.dot_dimension_numbers<[1], [0], [0], [1], [0, 0, 1, 1], [], []>} : vector<98x576xbf16>, vector<576x64xbf16>, vector<98x64xf32> -> vector<98x64xf32>
    %c0_3 = arith.constant 0 : index
    %c0_4 = arith.constant 0 : index
    %3 = vector.load %arg3[%c0_3, %c0_4] : memref<1x64xf32, #tpu.memory_space<vmem>>, vector<1x64xf32>
    %4 = vector.broadcast %3 : vector<1x64xf32> to vector<98x64xf32>
    %5 = arith.addf %2, %4 : vector<98x64xf32>
    %cst_5 = arith.constant 0.000000e+00 : f32
    %6 = vector.broadcast %cst_5 : f32 to vector<98x64xf32>
    %7 = arith.maximumf %5, %6 : vector<98x64xf32>
    %8 = arith.truncf %7 : vector<98x64xf32> to vector<98x64xbf16>
    %c0_6 = arith.constant 0 : index
    %c0_7 = arith.constant 0 : index
    %9 = vector.load %arg4[%c0_6, %c0_7] : memref<98x64xbf16, #tpu.memory_space<vmem>>, vector<98x64xbf16>
    tpu.vector_store %arg4[%c0_6, %c0_7], %8 {strides = array<i32>} : memref<98x64xbf16, #tpu.memory_space<vmem>>, vector<98x64xbf16>,
    return
  }
  func.func @transform_0(%arg0: i32) -> (i32, i32) {
    %c0_i32 = arith.constant 0 : i32
    %c0_i32_0 = arith.constant 0 : i32
    return %arg0, %c0_i32 : i32, i32
  }
  func.func @transform_1(%arg0: i32) -> (i32, i32) {
    %c0_i32 = arith.constant 0 : i32
    %c0_i32_0 = arith.constant 0 : i32
    %c0_i32_1 = arith.constant 0 : i32
    return %c0_i32, %c0_i32_0 : i32, i32
  }
  func.func @transform_2(%arg0: i32) -> (i32, i32) {
    %c0_i32 = arith.constant 0 : i32
    %c0_i32_0 = arith.constant 0 : i32
    %c0_i32_1 = arith.constant 0 : i32
    return %c0_i32, %c0_i32_0 : i32, i32
  }
  func.func @transform_3(%arg0: i32) -> (i32, i32) {
    %c0_i32 = arith.constant 0 : i32
    %c0_i32_0 = arith.constant 0 : i32
    return %arg0, %c0_i32 : i32, i32
  }
}

module attributes {stable_mosaic.version = 11 : i64} {
  func.func @_fc_fused_kernel(%arg0: i32, %arg1: i32, %arg2: memref<2x3136xbf16, #tpu.memory_space<vmem>>, %arg3: memref<3136x128xbf16, #tpu.memory_space<vmem>>, %arg4: memref<1x128xf32, #tpu.memory_space<vmem>>, %arg5: memref<128x128xbf16, #tpu.memory_space<vmem>>, %arg6: memref<1x128xf32, #tpu.memory_space<vmem>>, %arg7: memref<2x128xf32, #tpu.memory_space<vmem>>, %arg8: memref<2x128xf32, #tpu.memory_space<vmem>>) attributes {dimension_semantics = [#tpu.dimension_semantics<parallel>, #tpu.dimension_semantics<arbitrary>], iteration_bounds = array<i64: 1, 4>, scalar_prefetch = 0 : i64, scratch_operands = 1 : i64, tpu.core_type = #tpu.core_type<tc>, window_params = [{transform_indices = @transform_0, window_bounds = array<i64: 2, 3136>}, {transform_indices = @transform_1, window_bounds = array<i64: 3136, 128>}, {transform_indices = @transform_2, window_bounds = array<i64: 1, 128>}, {transform_indices = @transform_3, window_bounds = array<i64: 128, 128>}, {pipeline_mode = #tpu.pipeline_mode<synchronous>, transform_indices = @transform_4, window_bounds = array<i64: 1, 128>}, {transform_indices = @transform_5, window_bounds = array<i64: 2, 128>}]} {
    %c0_i32 = arith.constant 0 : i32
    %0 = arith.cmpi eq, %arg1, %c0_i32 : i32
    %1 = arith.extui %0 : i1 to i32
    %c0_i32_0 = arith.constant 0 : i32
    %2 = arith.cmpi ne, %1, %c0_i32_0 : i32
    scf.if %2 {
      %cst_15 = arith.constant 0.000000e+00 : f32
      %20 = vector.broadcast %cst_15 : f32 to vector<2x128xf32>
      %c0_16 = arith.constant 0 : index
      %c0_17 = arith.constant 0 : index
      %21 = vector.load %arg8[%c0_16, %c0_17] : memref<2x128xf32, #tpu.memory_space<vmem>>, vector<2x128xf32>
      tpu.vector_store %arg8[%c0_16, %c0_17], %20 {strides = array<i32>} : memref<2x128xf32, #tpu.memory_space<vmem>>, vector<2x128xf32>,
    } else {
    }
    %c0 = arith.constant 0 : index
    %c0_1 = arith.constant 0 : index
    %3 = vector.load %arg2[%c0, %c0_1] : memref<2x3136xbf16, #tpu.memory_space<vmem>>, vector<2x3136xbf16>
    %c0_2 = arith.constant 0 : index
    %c0_3 = arith.constant 0 : index
    %4 = vector.load %arg3[%c0_2, %c0_3] : memref<3136x128xbf16, #tpu.memory_space<vmem>>, vector<3136x128xbf16>
    %cst = arith.constant dense<0.000000e+00> : vector<2x128xf32>
    %5 = tpu.matmul %3, %4, %cst {dimension_numbers = #tpu.dot_dimension_numbers<[1], [0], [0], [1], [0, 0, 1, 1], [], []>} : vector<2x3136xbf16>, vector<3136x128xbf16>, vector<2x128xf32> -> vector<2x128xf32>
    %c0_4 = arith.constant 0 : index
    %c0_5 = arith.constant 0 : index
    %6 = vector.load %arg4[%c0_4, %c0_5] : memref<1x128xf32, #tpu.memory_space<vmem>>, vector<1x128xf32>
    %7 = vector.broadcast %6 : vector<1x128xf32> to vector<2x128xf32>
    %8 = arith.addf %5, %7 : vector<2x128xf32>
    %cst_6 = arith.constant 0.000000e+00 : f32
    %9 = vector.broadcast %cst_6 : f32 to vector<2x128xf32>
    %10 = arith.maximumf %8, %9 : vector<2x128xf32>
    %c0_7 = arith.constant 0 : index
    %c0_8 = arith.constant 0 : index
    %11 = vector.load %arg8[%c0_7, %c0_8] : memref<2x128xf32, #tpu.memory_space<vmem>>, vector<2x128xf32>
    %12 = arith.truncf %10 : vector<2x128xf32> to vector<2x128xbf16>
    %c0_9 = arith.constant 0 : index
    %c0_10 = arith.constant 0 : index
    %13 = vector.load %arg5[%c0_9, %c0_10] : memref<128x128xbf16, #tpu.memory_space<vmem>>, vector<128x128xbf16>
    %cst_11 = arith.constant dense<0.000000e+00> : vector<2x128xf32>
    %14 = tpu.matmul %12, %13, %cst_11 {dimension_numbers = #tpu.dot_dimension_numbers<[1], [0], [0], [1], [0, 0, 1, 1], [], []>} : vector<2x128xbf16>, vector<128x128xbf16>, vector<2x128xf32> -> vector<2x128xf32>
    %15 = arith.addf %11, %14 : vector<2x128xf32>
    %c0_12 = arith.constant 0 : index
    %c0_13 = arith.constant 0 : index
    %16 = vector.load %arg8[%c0_12, %c0_13] : memref<2x128xf32, #tpu.memory_space<vmem>>, vector<2x128xf32>
    tpu.vector_store %arg8[%c0_12, %c0_13], %15 {strides = array<i32>} : memref<2x128xf32, #tpu.memory_space<vmem>>, vector<2x128xf32>,
    %c3_i32 = arith.constant 3 : i32
    %17 = arith.cmpi eq, %arg1, %c3_i32 : i32
    %18 = arith.extui %17 : i1 to i32
    %c0_i32_14 = arith.constant 0 : i32
    %19 = arith.cmpi ne, %18, %c0_i32_14 : i32
    scf.if %19 {
      %c0_15 = arith.constant 0 : index
      %c0_16 = arith.constant 0 : index
      %20 = vector.load %arg8[%c0_15, %c0_16] : memref<2x128xf32, #tpu.memory_space<vmem>>, vector<2x128xf32>
      %c0_17 = arith.constant 0 : index
      %c0_18 = arith.constant 0 : index
      %21 = vector.load %arg6[%c0_17, %c0_18] : memref<1x128xf32, #tpu.memory_space<vmem>>, vector<1x128xf32>
      %22 = vector.broadcast %21 : vector<1x128xf32> to vector<2x128xf32>
      %23 = arith.addf %20, %22 : vector<2x128xf32>
      %c0_19 = arith.constant 0 : index
      %c0_20 = arith.constant 0 : index
      %24 = vector.load %arg7[%c0_19, %c0_20] : memref<2x128xf32, #tpu.memory_space<vmem>>, vector<2x128xf32>
      tpu.vector_store %arg7[%c0_19, %c0_20], %23 {strides = array<i32>} : memref<2x128xf32, #tpu.memory_space<vmem>>, vector<2x128xf32>,
    } else {
    }
    return
  }
  func.func @transform_0(%arg0: i32, %arg1: i32) -> (i32, i32) {
    %c0_i32 = arith.constant 0 : i32
    %c0_i32_0 = arith.constant 0 : i32
    return %arg0, %c0_i32 : i32, i32
  }
  func.func @transform_1(%arg0: i32, %arg1: i32) -> (i32, i32) {
    %c0_i32 = arith.constant 0 : i32
    %c0_i32_0 = arith.constant 0 : i32
    return %c0_i32, %arg1 : i32, i32
  }
  func.func @transform_2(%arg0: i32, %arg1: i32) -> (i32, i32) {
    %c0_i32 = arith.constant 0 : i32
    %c0_i32_0 = arith.constant 0 : i32
    return %c0_i32, %arg1 : i32, i32
  }
  func.func @transform_3(%arg0: i32, %arg1: i32) -> (i32, i32) {
    %c0_i32 = arith.constant 0 : i32
    %c0_i32_0 = arith.constant 0 : i32
    return %arg1, %c0_i32 : i32, i32
  }
  func.func @transform_4(%arg0: i32, %arg1: i32) -> (i32, i32) {
    %c0_i32 = arith.constant 0 : i32
    %c0_i32_0 = arith.constant 0 : i32
    %c0_i32_1 = arith.constant 0 : i32
    return %c0_i32, %c0_i32_0 : i32, i32
  }
  func.func @transform_5(%arg0: i32, %arg1: i32) -> (i32, i32) {
    %c0_i32 = arith.constant 0 : i32
    %c0_i32_0 = arith.constant 0 : i32
    return %arg0, %c0_i32 : i32, i32
  }
}

</mosaic_0001>

<bundles_post_ra>
// kernel: dqn_forward.4
= control target key start
LH: loop header
LB: loop body
LE: loop exit
PB: predicated region body
PF: predicated region fallthrough
CT: control target
= control target key end

     0   :  { %s1752_s12 = smov 0   ;;  %s1754_s13 = smov 0   ;;  %s2110_s0 = inlined_call_operand.vmem [shape: bf16[800,256], index: 0, kind: input, shape index: {}]   ;;  %s2111_s1 = inlined_call_operand.vmem [shape: bf16[256,32], index: 1, kind: input, shape index: {}]   ;;  %s2112_s2 = inlined_call_operand.vmem [shape: f32[1,32], index: 2, kind: input, shape index: {}]   ;;  %s2113_s3 = inlined_call_operand.vmem [shape: bf16[800,32], index: 3, kind: output, shape index: {}]  }
   0x1   :  { %s1756_s14 = smov 0  }
   0x2 LB: > { %s1765_s15 = sadd.s32 4294967295, %s1698_s14   ;;  %s1767_s16 = sadd.s32 1, %s1698_s14   ;;  %s1698_s14 = sphi %s1756_s14, %s2120_s14   ;;  %s1694_s13 = sphi %s1754_s13, %s2119_s13   ;;  %s1690_s12 = sphi %s1752_s12, %s2118_s12  }
   0x3   : > { %s85_s17 = ssub.s32 %s1698_s14, %s1767_s16  ;;  %s88_s18 = sadd.s32 1, %s1694_s13 }
   0x4   : > { %p86_p0 = scmp.eq.s32.totalorder %s85_s17, 0  ;;  %p98_p1 = scmp.ne.s32.totalorder %s1694_s13, %s1690_s12 }
   0x5   : > { %p99_p2 = scmp.eq.s32.totalorder %s1765_s15, 3  ;;  %p1225_p3 = scmp.ge.s32.totalorder %s1698_s14, 1 }
   0x6   : > { %s1775_s19 = scalar_select %p86_p0, %s1694_s13, %s88_s18  }
   0x7   : > { %p1777_p4 = por %p99_p2, %p98_p1  ;;  %p149_p5 = scmp.lt.s32.totalorder %s1698_s14, 5 }
   0x9   : > { %p150_p6 = pnand %p1225_p3, %p149_p5 }
   0xa   : > { %s1785_s23 = sshll.u32 (!%p150_p6), %s1765_s15, 5 }
   0xb   : > { %153 = sbr.rel (%p150_p6) target bundleno = 374 (0x176), region = 32  ;;  %p184_p7 = scmp.lt.s32.totalorder (!%p150_p6), %s1785_s23, 99 }
  0x10   : > { %v1580_v0 = vld [vmem:[%s2111_s1 + $0x78] sm:$0xff]   ;;  %v1582_v2 = vld [vmem:[%s2111_s1 + $0x70] sm:$0xff]   ;;  %v1584_v4 = vld [vmem:[%s2111_s1 + $0x68] sm:$0xff]   ;;  %s185_s7 = scalar_select %p184_p7, %s1785_s23, 99  ;;  %vm849_vm0 = vcmask 257024  }
  0x11   : > { %v1581_v1 = vld [vmem:[%s2111_s1 + $0x38] sm:$0xff]   ;;  %1364 = vmatprep.subr.bf16.mxu0 %v1580_v0  ;;  %1476 = vmatprep.subr.bf16.mxu1 %v1580_v0  ;;  %v1583_v3 = vld [vmem:[%s2111_s1 + $0x30] sm:$0xff]   ;;  %v1585_v5 = vld [vmem:[%s2111_s1 + $0x28] sm:$0xff]   ;;  %s890_s22 = ssub.s32 (%p1777_p4), 100, %s1785_s23 }
  0x12   : > { %1365 = vmatpush3.bf16.msra.mxu0 %v1581_v1  ;;  %1484 = vmatpush3.bf16.msra.mxu1 %v1581_v1  ;;  %v1586_v6 = vld [vmem:[%s2111_s1 + $0x60] sm:$0xff]   ;;  %s1328_s14 = sshll.u32 %s185_s7, 3  ;;  %v1588_v8 = vld [vmem:[%s2111_s1 + $0x58] sm:$0xff]   ;;  %v1590_v10 = vld [vmem:[%s2111_s1 + $0x50] sm:$0xff]   ;;  %p891_p8 = scmp.lt.s32.totalorder (%p1777_p4), %s890_s22, 32 }
  0x13   : > { %1366 = vmatprep.subr.bf16.mxu0 %v1582_v2  ;;  %1477 = vmatprep.subr.bf16.mxu1 %v1582_v2  ;;  %v1587_v7 = vld [vmem:[%s2111_s1 + $0x20] sm:$0xff]   ;;  %s1816_s24 = scalar_lea.vmem %s2110_s0, %s1328_s14  ;;  %v1589_v9 = vld [vmem:[%s2111_s1 + $0x18] sm:$0xff]   ;;  %v1591_v13 = vld [vmem:[%s2111_s1 + $0x10] sm:$0xff]   ;;  %s175_s14 = sand.u32 1, %s1690_s12  }
  0x14   : > { %v1598_v11 = vld [vmem:[%s1816_s24 + $0x4] ss:$8 sps:$4 sm:$0xff]   ;;  %v1596_v18 = vld [vmem:[%s1816_s24] ss:$8 sps:$4 sm:$0xff]   ;;  %v1602_v20 = vld [vmem:[%s1816_s24 + $0x14] ss:$8 sps:$4 sm:$0xff]  }
  0x15   : > { %v1601_v12 = vld [vmem:[%s1816_s24 + $0x84] ss:$8 sps:$4 sm:$0xff]   ;;  %560 = vmatprep.mubr.bf16.mxu0 %v1598_v11  ;;  %v1599_v19 = vld [vmem:[%s1816_s24 + $0x80] ss:$8 sps:$4 sm:$0xff]   ;;  %v1604_v21 = vld [vmem:[%s1816_s24 + $0x94] ss:$8 sps:$4 sm:$0xff]  }
  0x16   : > { %1367 = vmatpush3.bf16.msra.mxu0 %v1583_v3  ;;  %1485 = vmatpush3.bf16.msra.mxu1 %v1583_v3  ;;  %v1592_v14 = vld [vmem:[%s2111_s1 + $0x48] sm:$0xff]   ;;  %v1594_v16 = vld [vmem:[%s2111_s1 + $0x40] sm:$0xff]   ;;  %v1606_v22 = vld [vmem:[%s1816_s24 + $0x10] ss:$8 sps:$4 sm:$0xff]   ;;  %s1226_s21 = sshll.u32 %s175_s14, 7 }
  0x17   : > { %1368 = vmatprep.subr.bf16.mxu0 %v1584_v4  ;;  %1478 = vmatprep.subr.bf16.mxu1 %v1584_v4  ;;  %v1593_v15 = vld [vmem:[%s2111_s1 + $0x8] sm:$0xff]   ;;  %v1595_v17 = vld [vmem:[%s2111_s1] sm:$0xff]   ;;  %v1607_v23 = vld [vmem:[%s1816_s24 + $0x90] ss:$8 sps:$4 sm:$0xff]   ;;  %s1881_s12 = scalar_lea.vmem [#allocation2], %s1226_s21  }
  0x18   : > { %624 = vmatprep.mubr.bf16.mxu1 %v1601_v12  ;;  %v1608_v24 = vld [vmem:[%s1816_s24 + $0x24] ss:$8 sps:$4 sm:$0xff]   ;;  %v1612_v26 = vld [vmem:[%s1816_s24 + $0x20] ss:$8 sps:$4 sm:$0xff]   ;;  %v1614_v28 = vld [vmem:[%s1816_s24 + $0x34] ss:$8 sps:$4 sm:$0xff]  }
  0x19   : > { %v1610_v25 = vld [vmem:[%s1816_s24 + $0xa4] ss:$8 sps:$4 sm:$0xff]   ;;  %v1613_v27 = vld [vmem:[%s1816_s24 + $0xa0] ss:$8 sps:$4 sm:$0xff]   ;;  %v1616_v29 = vld [vmem:[%s1816_s24 + $0xb4] ss:$8 sps:$4 sm:$0xff]  }
  0x1a   : > { %1369 = vmatpush3.bf16.msra.mxu0 %v1585_v5  ;;  %1486 = vmatpush3.bf16.msra.mxu1 %v1585_v5  ;;  %v1618_v30 = vld [vmem:[%s1816_s24 + $0x30] ss:$8 sps:$4 sm:$0xff]   ;;  %v1620_v32 = vld [vmem:[%s1816_s24 + $0x44] ss:$8 sps:$4 sm:$0xff]   ;;  %v1624_v34 = vld [vmem:[%s1816_s24 + $0x40] ss:$8 sps:$4 sm:$0xff]  }
  0x1b   : > { %1370 = vmatprep.subr.bf16.mxu0 %v1586_v6  ;;  %1479 = vmatprep.subr.bf16.mxu1 %v1586_v6  ;;  %v1619_v31 = vld [vmem:[%s1816_s24 + $0xb0] ss:$8 sps:$4 sm:$0xff]   ;;  %v1622_v33 = vld [vmem:[%s1816_s24 + $0xc4] ss:$8 sps:$4 sm:$0xff]   ;;  %v1625_v35 = vld [vmem:[%s1816_s24 + $0xc0] ss:$8 sps:$4 sm:$0xff]  }
  0x1c   : > { %v1626_v36 = vld [vmem:[%s1816_s24 + $0x54] ss:$8 sps:$4 sm:$0xff]   ;;  %v1630_v38 = vld [vmem:[%s1816_s24 + $0x50] ss:$8 sps:$4 sm:$0xff]   ;;  %v1632_v40 = vld [vmem:[%s1816_s24 + $0x64] ss:$8 sps:$4 sm:$0xff]  }
  0x1d   : > { %v1628_v37 = vld [vmem:[%s1816_s24 + $0xd4] ss:$8 sps:$4 sm:$0xff]   ;;  %v1631_v39 = vld [vmem:[%s1816_s24 + $0xd0] ss:$8 sps:$4 sm:$0xff]   ;;  %v1634_v41 = vld [vmem:[%s1816_s24 + $0xe4] ss:$8 sps:$4 sm:$0xff]  }
  0x1e   : > { %1371 = vmatpush3.bf16.msra.mxu0 %v1587_v7  ;;  %1487 = vmatpush3.bf16.msra.mxu1 %v1587_v7  ;;  %v1636_v42 = vld [vmem:[%s1816_s24 + $0x60] ss:$8 sps:$4 sm:$0xff]   ;;  %v1638_v44 = vld [vmem:[%s1816_s24 + $0x74] ss:$8 sps:$4 sm:$0xff]   ;;  %v1642_v46 = vld [vmem:[%s1816_s24 + $0x70] ss:$8 sps:$4 sm:$0xff]  }
  0x1f   : > { %1372 = vmatprep.subr.bf16.mxu0 %v1588_v8  ;;  %1480 = vmatprep.subr.bf16.mxu1 %v1588_v8  ;;  %v1637_v43 = vld [vmem:[%s1816_s24 + $0xe0] ss:$8 sps:$4 sm:$0xff]   ;;  %v1640_v45 = vld [vmem:[%s1816_s24 + $0xf4] ss:$8 sps:$4 sm:$0xff]   ;;  %v1643_v47 = vld [vmem:[%s1816_s24 + $0xf0] ss:$8 sps:$4 sm:$0xff]  }
  0x20   : > { %v1875_v50 = vld [vmem:[%s2112_s2] ss:$0 sm:$0xff]  ;;  %s1361_s24 = sshll.u32 (%p1777_p4), %s1765_s15, 7 }
  0x21   : > { %s1982_s27 = scalar_lea.vmem (%p1777_p4), %s2113_s3, %s1361_s24  }
  0x22   : > { %1373 = vmatpush3.bf16.msra.mxu0 %v1589_v9  ;;  %1488 = vmatpush3.bf16.msra.mxu1 %v1589_v9 }
  0x23   : > { %1374 = vmatprep.subr.bf16.mxu0 %v1590_v10  ;;  %1481 = vmatprep.subr.bf16.mxu1 %v1590_v10 }
  0x26   : > { %1375 = vmatpush3.bf16.msra.mxu0 %v1591_v13  ;;  %1489 = vmatpush3.bf16.msra.mxu1 %v1591_v13 }
  0x27   : > { %1376 = vmatprep.subr.bf16.mxu0 %v1592_v14  ;;  %1482 = vmatprep.subr.bf16.mxu1 %v1592_v14 }
  0x2a   : > { %1377 = vmatpush3.bf16.msra.mxu0 %v1593_v15  ;;  %1490 = vmatpush3.bf16.msra.mxu1 %v1593_v15 }
  0x2b   : > { %1378 = vmatprep.subr.bf16.mxu0 %v1594_v16  ;;  %1483 = vmatprep.subr.bf16.mxu1 %v1594_v16 }
  0x2e   : > { %1379 = vmatpush3.bf16.msra.mxu0 %v1595_v17  ;;  %1491 = vmatpush3.bf16.msra.mxu1 %v1595_v17 }
  0x31   : > { %561 = vmatmul.mubr.bf16.vlgmr.msra.gmra.mxu0 %v1596_v18  ;;  %625 = vmatmul.mubr.bf16.vlgmr.msra.gmra.mxu1 %v1599_v19 }
  0x32   : > { %568 = vmatprep.mubr.bf16.mxu0 %v1602_v20  ;;  %632 = vmatprep.mubr.bf16.mxu1 %v1604_v21 }
  0x39   : > { %569 = vmatmul.mubr.bf16.gmra.mxu0 %v1606_v22  ;;  %633 = vmatmul.mubr.bf16.gmra.mxu1 %v1607_v23 }
  0x3a   : > { %576 = vmatprep.mubr.bf16.mxu0 %v1608_v24  ;;  %640 = vmatprep.mubr.bf16.mxu1 %v1610_v25 }
  0x41   : > { %577 = vmatmul.mubr.bf16.gmra.mxu0 %v1612_v26  ;;  %641 = vmatmul.mubr.bf16.gmra.mxu1 %v1613_v27 }
  0x42   : > { %584 = vmatprep.mubr.bf16.mxu0 %v1614_v28  ;;  %648 = vmatprep.mubr.bf16.mxu1 %v1616_v29 }
  0x49   : > { %585 = vmatmul.mubr.bf16.gmra.mxu0 %v1618_v30  ;;  %649 = vmatmul.mubr.bf16.gmra.mxu1 %v1619_v31 }
  0x4a   : > { %592 = vmatprep.mubr.bf16.mxu0 %v1620_v32  ;;  %656 = vmatprep.mubr.bf16.mxu1 %v1622_v33 }
  0x51   : > { %593 = vmatmul.mubr.bf16.gmra.mxu0 %v1624_v34  ;;  %657 = vmatmul.mubr.bf16.gmra.mxu1 %v1625_v35 }
  0x52   : > { %600 = vmatprep.mubr.bf16.mxu0 %v1626_v36  ;;  %664 = vmatprep.mubr.bf16.mxu1 %v1628_v37 }
  0x59   : > { %601 = vmatmul.mubr.bf16.gmra.mxu0 %v1630_v38  ;;  %665 = vmatmul.mubr.bf16.gmra.mxu1 %v1631_v39 }
  0x5a   : > { %608 = vmatprep.mubr.bf16.mxu0 %v1632_v40  ;;  %672 = vmatprep.mubr.bf16.mxu1 %v1634_v41 }
  0x61   : > { %609 = vmatmul.mubr.bf16.gmra.mxu0 %v1636_v42  ;;  %673 = vmatmul.mubr.bf16.gmra.mxu1 %v1637_v43 }
  0x62   : > { %616 = vmatprep.mubr.bf16.mxu0 %v1638_v44  ;;  %680 = vmatprep.mubr.bf16.mxu1 %v1640_v45 }
  0x69   : > { %617 = vmatmul.mubr.bf16.gmra.mxu0 %v1642_v46  ;;  %681 = vmatmul.mubr.bf16.gmra.mxu1 %v1643_v47 }
  0xf1   : > { %v1380_v48 = vpop.f32.mrf.mxu0  ;;  %v1428_v49 = vpop.f32.mrf.mxu1 }
  0xf3   : > { %v1381_v51 = vpop.f32.mrf.mxu0  ;;  %v1429_v52 = vpop.f32.mrf.mxu1 }
  0xf4   : > { %v1382_v53 = vadd.f32 %v1381_v51, %v1380_v48  ;;  %v1430_v54 = vadd.f32 %v1429_v52, %v1428_v49 }
  0xf5   : > { %v1383_v55 = vpop.f32.mrf.mxu0  ;;  %v1431_v56 = vpop.f32.mrf.mxu1 }
  0xf6   : > { %v563_v57 = vadd.f32 %v1382_v53, %v1875_v50  ;;  %v627_v58 = vadd.f32 %v1430_v54, %v1875_v50 }
  0xf7   : > { %v1384_v59 = vpop.f32.mrf.mxu0  ;;  %v1432_v60 = vpop.f32.mrf.mxu1 }
  0xf8   : > { %v689_v61 = vmax.f32 %v563_v57, 0.0  ;;  %v705_v62 = vmax.f32 %v627_v58, 0.0  ;;  %v1385_v63 = vadd.f32 %v1384_v59, %v1383_v55  ;;  %v1433_v0 = vadd.f32 %v1432_v60, %v1431_v56 }
  0xf9   : > { %v1386_v1 = vpop.f32.mrf.mxu0  ;;  %v1434_v2 = vpop.f32.mrf.mxu1 }
  0xfa   : > { %v1329_v3 = vpack.c.bf16 %v689_v61, %v689_v61  ;;  %v1345_v4 = vpack.c.bf16 %v705_v62, %v705_v62  ;;  %v566_v5 = vadd.f32 %v1385_v63, %v1875_v50  ;;  %v630_v6 = vadd.f32 %v1433_v0, %v1875_v50 }
  0xfb   : > { %v1387_v7 = vpop.f32.mrf.mxu0  ;;  %v1435_v8 = vpop.f32.mrf.mxu1 }
  0xfc   : > { %850 = vst.msk [vmem:[%s1881_s12] sm:$0xf] %vm849_vm0, %v1329_v3  ;;  %866 = vst.msk [vmem:[%s1881_s12 + $0x40] sm:$0xf] %vm849_vm0, %v1345_v4  ;;  %v690_v9 = vmax.f32 %v566_v5, 0.0  ;;  %v706_v10 = vmax.f32 %v630_v6, 0.0  ;;  %v1388_v11 = vadd.f32 %v1387_v7, %v1386_v1  ;;  %v1436_v12 = vadd.f32 %v1435_v8, %v1434_v2 }
  0xfd   : > { %v1389_v13 = vpop.f32.mrf.mxu0  ;;  %v1437_v14 = vpop.f32.mrf.mxu1 }
  0xfe   : > { %v1330_v15 = vpack.c.bf16 %v690_v9, %v690_v9  ;;  %v1346_v16 = vpack.c.bf16 %v706_v10, %v706_v10  ;;  %v571_v17 = vadd.f32 %v1388_v11, %v1875_v50  ;;  %v635_v18 = vadd.f32 %v1436_v12, %v1875_v50 }
  0xff   : > { %v1390_v19 = vpop.f32.mrf.mxu0  ;;  %v1438_v20 = vpop.f32.mrf.mxu1 }
 0x100   : > { %851 = vst.msk [vmem:[%s1881_s12 + $0x4] sm:$0xf] %vm849_vm0, %v1330_v15  ;;  %867 = vst.msk [vmem:[%s1881_s12 + $0x44] sm:$0xf] %vm849_vm0, %v1346_v16  ;;  %v691_v21 = vmax.f32 %v571_v17, 0.0  ;;  %v707_v22 = vmax.f32 %v635_v18, 0.0  ;;  %v1391_v23 = vadd.f32 %v1390_v19, %v1389_v13  ;;  %v1439_v24 = vadd.f32 %v1438_v20, %v1437_v14 }
 0x101   : > { %v1392_v25 = vpop.f32.mrf.mxu0  ;;  %v1440_v26 = vpop.f32.mrf.mxu1 }
 0x102   : > { %v1331_v27 = vpack.c.bf16 %v691_v21, %v691_v21  ;;  %v1347_v28 = vpack.c.bf16 %v707_v22, %v707_v22  ;;  %v574_v29 = vadd.f32 %v1391_v23, %v1875_v50  ;;  %v638_v30 = vadd.f32 %v1439_v24, %v1875_v50 }
 0x103   : > { %v1393_v31 = vpop.f32.mrf.mxu0  ;;  %v1441_v32 = vpop.f32.mrf.mxu1 }
 0x104   : > { %852 = vst.msk [vmem:[%s1881_s12 + $0x8] sm:$0xf] %vm849_vm0, %v1331_v27  ;;  %868 = vst.msk [vmem:[%s1881_s12 + $0x48] sm:$0xf] %vm849_vm0, %v1347_v28  ;;  %v692_v33 = vmax.f32 %v574_v29, 0.0  ;;  %v708_v34 = vmax.f32 %v638_v30, 0.0  ;;  %v1394_v35 = vadd.f32 %v1393_v31, %v1392_v25  ;;  %v1442_v36 = vadd.f32 %v1441_v32, %v1440_v26 }
 0x105   : > { %v1395_v37 = vpop.f32.mrf.mxu0  ;;  %v1443_v38 = vpop.f32.mrf.mxu1 }
 0x106   : > { %v1332_v39 = vpack.c.bf16 %v692_v33, %v692_v33  ;;  %v1348_v40 = vpack.c.bf16 %v708_v34, %v708_v34  ;;  %v579_v41 = vadd.f32 %v1394_v35, %v1875_v50  ;;  %v643_v42 = vadd.f32 %v1442_v36, %v1875_v50 }
 0x107   : > { %v1396_v43 = vpop.f32.mrf.mxu0  ;;  %v1444_v44 = vpop.f32.mrf.mxu1 }
 0x108   : > { %853 = vst.msk [vmem:[%s1881_s12 + $0xc] sm:$0xf] %vm849_vm0, %v1332_v39  ;;  %869 = vst.msk [vmem:[%s1881_s12 + $0x4c] sm:$0xf] %vm849_vm0, %v1348_v40  ;;  %v693_v45 = vmax.f32 %v579_v41, 0.0  ;;  %v709_v46 = vmax.f32 %v643_v42, 0.0  ;;  %v1397_v47 = vadd.f32 %v1396_v43, %v1395_v37  ;;  %v1445_v48 = vadd.f32 %v1444_v44, %v1443_v38 }
 0x109   : > { %v1398_v49 = vpop.f32.mrf.mxu0  ;;  %v1446_v51 = vpop.f32.mrf.mxu1 }
 0x10a   : > { %v1333_v52 = vpack.c.bf16 %v693_v45, %v693_v45  ;;  %v1349_v53 = vpack.c.bf16 %v709_v46, %v709_v46  ;;  %v582_v54 = vadd.f32 %v1397_v47, %v1875_v50  ;;  %v646_v55 = vadd.f32 %v1445_v48, %v1875_v50 }
 0x10b   : > { %v1399_v56 = vpop.f32.mrf.mxu0  ;;  %v1447_v57 = vpop.f32.mrf.mxu1 }
 0x10c   : > { %854 = vst.msk [vmem:[%s1881_s12 + $0x10] sm:$0xf] %vm849_vm0, %v1333_v52  ;;  %870 = vst.msk [vmem:[%s1881_s12 + $0x50] sm:$0xf] %vm849_vm0, %v1349_v53  ;;  %v694_v58 = vmax.f32 %v582_v54, 0.0  ;;  %v710_v59 = vmax.f32 %v646_v55, 0.0  ;;  %v1400_v60 = vadd.f32 %v1399_v56, %v1398_v49  ;;  %v1448_v61 = vadd.f32 %v1447_v57, %v1446_v51 }
 0x10d   : > { %v1401_v62 = vpop.f32.mrf.mxu0  ;;  %v1449_v63 = vpop.f32.mrf.mxu1 }
 0x10e   : > { %v1334_v0 = vpack.c.bf16 %v694_v58, %v694_v58  ;;  %v1350_v1 = vpack.c.bf16 %v710_v59, %v710_v59  ;;  %v587_v2 = vadd.f32 %v1400_v60, %v1875_v50  ;;  %v651_v3 = vadd.f32 %v1448_v61, %v1875_v50 }
 0x10f   : > { %v1402_v4 = vpop.f32.mrf.mxu0  ;;  %v1450_v5 = vpop.f32.mrf.mxu1 }
 0x110   : > { %855 = vst.msk [vmem:[%s1881_s12 + $0x14] sm:$0xf] %vm849_vm0, %v1334_v0  ;;  %871 = vst.msk [vmem:[%s1881_s12 + $0x54] sm:$0xf] %vm849_vm0, %v1350_v1  ;;  %v695_v6 = vmax.f32 %v587_v2, 0.0  ;;  %v711_v7 = vmax.f32 %v651_v3, 0.0  ;;  %v1403_v8 = vadd.f32 %v1402_v4, %v1401_v62  ;;  %v1451_v9 = vadd.f32 %v1450_v5, %v1449_v63 }
 0x111   : > { %v1404_v10 = vpop.f32.mrf.mxu0  ;;  %v1452_v11 = vpop.f32.mrf.mxu1 }
 0x112   : > { %v1335_v12 = vpack.c.bf16 %v695_v6, %v695_v6  ;;  %v1351_v13 = vpack.c.bf16 %v711_v7, %v711_v7  ;;  %v590_v14 = vadd.f32 %v1403_v8, %v1875_v50  ;;  %v654_v15 = vadd.f32 %v1451_v9, %v1875_v50 }
 0x113   : > { %v1405_v16 = vpop.f32.mrf.mxu0  ;;  %v1453_v17 = vpop.f32.mrf.mxu1 }
 0x114   : > { %856 = vst.msk [vmem:[%s1881_s12 + $0x18] sm:$0xf] %vm849_vm0, %v1335_v12  ;;  %872 = vst.msk [vmem:[%s1881_s12 + $0x58] sm:$0xf] %vm849_vm0, %v1351_v13  ;;  %v696_v18 = vmax.f32 %v590_v14, 0.0  ;;  %v712_v19 = vmax.f32 %v654_v15, 0.0  ;;  %v1406_v20 = vadd.f32 %v1405_v16, %v1404_v10  ;;  %v1454_v21 = vadd.f32 %v1453_v17, %v1452_v11 }
 0x115   : > { %v1407_v22 = vpop.f32.mrf.mxu0  ;;  %v1455_v23 = vpop.f32.mrf.mxu1 }
 0x116   : > { %v1336_v24 = vpack.c.bf16 %v696_v18, %v696_v18  ;;  %v1352_v25 = vpack.c.bf16 %v712_v19, %v712_v19  ;;  %v595_v26 = vadd.f32 %v1406_v20, %v1875_v50  ;;  %v659_v27 = vadd.f32 %v1454_v21, %v1875_v50 }
 0x117   : > { %v1408_v28 = vpop.f32.mrf.mxu0  ;;  %v1456_v29 = vpop.f32.mrf.mxu1 }
 0x118   : > { %857 = vst.msk [vmem:[%s1881_s12 + $0x1c] sm:$0xf] %vm849_vm0, %v1336_v24  ;;  %873 = vst.msk [vmem:[%s1881_s12 + $0x5c] sm:$0xf] %vm849_vm0, %v1352_v25  ;;  %v697_v30 = vmax.f32 %v595_v26, 0.0  ;;  %v713_v31 = vmax.f32 %v659_v27, 0.0  ;;  %v1409_v32 = vadd.f32 %v1408_v28, %v1407_v22  ;;  %v1457_v33 = vadd.f32 %v1456_v29, %v1455_v23 }
 0x119   : > { %v1410_v34 = vpop.f32.mrf.mxu0  ;;  %v1458_v35 = vpop.f32.mrf.mxu1 }
 0x11a   : > { %v1337_v36 = vpack.c.bf16 %v697_v30, %v697_v30  ;;  %v1353_v37 = vpack.c.bf16 %v713_v31, %v713_v31  ;;  %v598_v38 = vadd.f32 %v1409_v32, %v1875_v50  ;;  %v662_v39 = vadd.f32 %v1457_v33, %v1875_v50 }
 0x11b   : > { %v1411_v40 = vpop.f32.mrf.mxu0  ;;  %v1459_v41 = vpop.f32.mrf.mxu1 }
 0x11c   : > { %858 = vst.msk [vmem:[%s1881_s12 + $0x20] sm:$0xf] %vm849_vm0, %v1337_v36  ;;  %874 = vst.msk [vmem:[%s1881_s12 + $0x60] sm:$0xf] %vm849_vm0, %v1353_v37  ;;  %v698_v42 = vmax.f32 %v598_v38, 0.0  ;;  %v714_v43 = vmax.f32 %v662_v39, 0.0  ;;  %v1412_v44 = vadd.f32 %v1411_v40, %v1410_v34  ;;  %v1460_v45 = vadd.f32 %v1459_v41, %v1458_v35 }
 0x11d   : > { %v1413_v46 = vpop.f32.mrf.mxu0  ;;  %v1461_v47 = vpop.f32.mrf.mxu1 }
 0x11e   : > { %v1338_v48 = vpack.c.bf16 %v698_v42, %v698_v42  ;;  %v1354_v49 = vpack.c.bf16 %v714_v43, %v714_v43  ;;  %v603_v51 = vadd.f32 %v1412_v44, %v1875_v50  ;;  %v667_v52 = vadd.f32 %v1460_v45, %v1875_v50 }
 0x11f   : > { %v1414_v53 = vpop.f32.mrf.mxu0  ;;  %v1462_v54 = vpop.f32.mrf.mxu1 }
 0x120   : > { %859 = vst.msk [vmem:[%s1881_s12 + $0x24] sm:$0xf] %vm849_vm0, %v1338_v48  ;;  %875 = vst.msk [vmem:[%s1881_s12 + $0x64] sm:$0xf] %vm849_vm0, %v1354_v49  ;;  %v699_v55 = vmax.f32 %v603_v51, 0.0  ;;  %v715_v56 = vmax.f32 %v667_v52, 0.0  ;;  %v1415_v57 = vadd.f32 %v1414_v53, %v1413_v46  ;;  %v1463_v58 = vadd.f32 %v1462_v54, %v1461_v47 }
 0x121   : > { %v1416_v59 = vpop.f32.mrf.mxu0  ;;  %v1464_v60 = vpop.f32.mrf.mxu1 }
 0x122   : > { %v1339_v61 = vpack.c.bf16 %v699_v55, %v699_v55  ;;  %v1355_v62 = vpack.c.bf16 %v715_v56, %v715_v56  ;;  %v606_v63 = vadd.f32 %v1415_v57, %v1875_v50  ;;  %v670_v0 = vadd.f32 %v1463_v58, %v1875_v50 }
 0x123   : > { %v1417_v1 = vpop.f32.mrf.mxu0  ;;  %v1465_v2 = vpop.f32.mrf.mxu1 }
 0x124   : > { %860 = vst.msk [vmem:[%s1881_s12 + $0x28] sm:$0xf] %vm849_vm0, %v1339_v61  ;;  %876 = vst.msk [vmem:[%s1881_s12 + $0x68] sm:$0xf] %vm849_vm0, %v1355_v62  ;;  %v700_v3 = vmax.f32 %v606_v63, 0.0  ;;  %v716_v4 = vmax.f32 %v670_v0, 0.0  ;;  %v1418_v5 = vadd.f32 %v1417_v1, %v1416_v59  ;;  %v1466_v6 = vadd.f32 %v1465_v2, %v1464_v60 }
 0x125   : > { %v1419_v7 = vpop.f32.mrf.mxu0  ;;  %v1467_v8 = vpop.f32.mrf.mxu1 }
 0x126   : > { %v1340_v9 = vpack.c.bf16 %v700_v3, %v700_v3  ;;  %v1356_v10 = vpack.c.bf16 %v716_v4, %v716_v4  ;;  %v611_v11 = vadd.f32 %v1418_v5, %v1875_v50  ;;  %v675_v12 = vadd.f32 %v1466_v6, %v1875_v50 }
 0x127   : > { %v1420_v13 = vpop.f32.mrf.mxu0  ;;  %v1468_v14 = vpop.f32.mrf.mxu1 }
 0x128   : > { %861 = vst.msk [vmem:[%s1881_s12 + $0x2c] sm:$0xf] %vm849_vm0, %v1340_v9  ;;  %877 = vst.msk [vmem:[%s1881_s12 + $0x6c] sm:$0xf] %vm849_vm0, %v1356_v10  ;;  %v701_v15 = vmax.f32 %v611_v11, 0.0  ;;  %v717_v16 = vmax.f32 %v675_v12, 0.0  ;;  %v1421_v17 = vadd.f32 %v1420_v13, %v1419_v7  ;;  %v1469_v18 = vadd.f32 %v1468_v14, %v1467_v8 }
 0x129   : > { %v1422_v19 = vpop.f32.mrf.mxu0  ;;  %v1470_v20 = vpop.f32.mrf.mxu1 }
 0x12a   : > { %v1341_v21 = vpack.c.bf16 %v701_v15, %v701_v15  ;;  %v1357_v22 = vpack.c.bf16 %v717_v16, %v717_v16  ;;  %v614_v23 = vadd.f32 %v1421_v17, %v1875_v50  ;;  %v678_v24 = vadd.f32 %v1469_v18, %v1875_v50 }
 0x12b   : > { %v1423_v25 = vpop.f32.mrf.mxu0  ;;  %v1471_v26 = vpop.f32.mrf.mxu1 }
 0x12c   : > { %862 = vst.msk [vmem:[%s1881_s12 + $0x30] sm:$0xf] %vm849_vm0, %v1341_v21  ;;  %878 = vst.msk [vmem:[%s1881_s12 + $0x70] sm:$0xf] %vm849_vm0, %v1357_v22  ;;  %v702_v27 = vmax.f32 %v614_v23, 0.0  ;;  %v718_v28 = vmax.f32 %v678_v24, 0.0  ;;  %v1424_v29 = vadd.f32 %v1423_v25, %v1422_v19  ;;  %v1472_v30 = vadd.f32 %v1471_v26, %v1470_v20 }
 0x12d   : > { %v1425_v31 = vpop.f32.mrf.mxu0  ;;  %v1473_v32 = vpop.f32.mrf.mxu1 }
 0x12e   : > { %v1342_v33 = vpack.c.bf16 %v702_v27, %v702_v27  ;;  %v1358_v34 = vpack.c.bf16 %v718_v28, %v718_v28  ;;  %v619_v35 = vadd.f32 %v1424_v29, %v1875_v50  ;;  %v683_v36 = vadd.f32 %v1472_v30, %v1875_v50 }
 0x12f   : > { %v1426_v37 = vpop.f32.mrf.mxu0  ;;  %v1474_v38 = vpop.f32.mrf.mxu1 }
 0x130   : > { %863 = vst.msk [vmem:[%s1881_s12 + $0x34] sm:$0xf] %vm849_vm0, %v1342_v33  ;;  %879 = vst.msk [vmem:[%s1881_s12 + $0x74] sm:$0xf] %vm849_vm0, %v1358_v34  ;;  %v703_v39 = vmax.f32 %v619_v35, 0.0  ;;  %v719_v40 = vmax.f32 %v683_v36, 0.0  ;;  %v1427_v41 = vadd.f32 %v1426_v37, %v1425_v31  ;;  %v1475_v42 = vadd.f32 %v1474_v38, %v1473_v32 }
 0x132   : > { %v1343_v43 = vpack.c.bf16 %v703_v39, %v703_v39  ;;  %v1359_v44 = vpack.c.bf16 %v719_v40, %v719_v40  ;;  %v622_v45 = vadd.f32 %v1427_v41, %v1875_v50  ;;  %v686_v46 = vadd.f32 %v1475_v42, %v1875_v50 }
 0x134   : > { %864 = vst.msk [vmem:[%s1881_s12 + $0x38] sm:$0xf] %vm849_vm0, %v1343_v43  ;;  %880 = vst.msk [vmem:[%s1881_s12 + $0x78] sm:$0xf] %vm849_vm0, %v1359_v44  ;;  %v704_v47 = vmax.f32 %v622_v45, 0.0  ;;  %v720_v48 = vmax.f32 %v686_v46, 0.0 }
 0x135   : > { %888 = sbr.rel (!%p1777_p4) target bundleno = 374 (0x176), region = 36 }
 0x136   : > { %v1344_v49 = vpack.c.bf16 %v704_v47, %v704_v47  ;;  %v1360_v51 = vpack.c.bf16 %v720_v48, %v720_v48 }
 0x138   : > { %865 = vst.msk [vmem:[%s1881_s12 + $0x3c] sm:$0xf] %vm849_vm0, %v1344_v49  ;;  %881 = vst.msk [vmem:[%s1881_s12 + $0x7c] sm:$0xf] %vm849_vm0, %v1360_v51 }
 0x13a   : > { %s2122_s22 = smov (!%p891_p8, %s890_s22), 32 }
 0x13b   : > { %s1313_s28 = sshll.u32 %s2122_s22, 6 }
 0x13c   : > { %p1316_p9 = scmp.eq.s32.totalorder %s1313_s28, 0 }
 0x13d   : > { %s1988_s29 = sshrl.u32 (!%p1316_p9), %s2122_s22, 5 }
 0x13e   : > { %899 = sbr.rel (%p1316_p9) target bundleno = 374 (0x176), region = 40  ;;  %p1317_p10 = scmp.le.s32.totalorder (!%p1316_p9), %s1988_s29, 0 }
 0x143   : > { %1178 = sbr.rel (%p1317_p10) target bundleno = 357 (0x165), region = 112  ;;  %s2115_s15 = smov (!%p1317_p10), %s1982_s27 }
 0x144   : > { %s2116_s20 = smov (!%p1317_p10), %s1881_s12  ;;  %s1997_s23 = smov (!%p1317_p10), 0  }
 0x145   : > { %s1999_s30 = smov (!%p1317_p10), 0  }
 0x148 LB: >> { %v916_v50 = vld [vmem:[%s1706_s20] sm:$0xf]  ;;  %v918_v52 = vld [vmem:[%s1706_s20 + $0x4] sm:$0xf]  ;;  %v920_v53 = vld [vmem:[%s1706_s20 + $0x8] sm:$0xf]  ;;  %s1714_s30 = sphi %s1999_s30, %s910_s30   ;;  %s1710_s23 = sphi %s1997_s23, %s2117_s23   ;;  %s1706_s20 = sphi %s2116_s20, %s985_s20   ;;  %s1702_s15 = sphi %s2115_s15, %s986_s15  }
 0x149   : >> { %917 = vst [vmem:[%s1702_s15] sm:$0xf] %v916_v50  ;;  %919 = vst [vmem:[%s1702_s15 + $0x4] sm:$0xf] %v918_v52  ;;  %v922_v54 = vld [vmem:[%s1706_s20 + $0xc] sm:$0xf]  ;;  %s980_s4 = sadd.s32 1, %s1710_s23 }
 0x14a   : >> { %921 = vst [vmem:[%s1702_s15 + $0x8] sm:$0xf] %v920_v53  ;;  %v924_v55 = vld [vmem:[%s1706_s20 + $0x10] sm:$0xf]  ;;  %v926_v56 = vld [vmem:[%s1706_s20 + $0x14] sm:$0xf]  ;;  %p981_p11 = scmp.ge.s32.totalorder %s980_s4, %s1988_s29 }
 0x14b   : >> { %923 = vst [vmem:[%s1702_s15 + $0xc] sm:$0xf] %v922_v54  ;;  %925 = vst [vmem:[%s1702_s15 + $0x10] sm:$0xf] %v924_v55  ;;  %v928_v57 = vld [vmem:[%s1706_s20 + $0x18] sm:$0xf] }
 0x14c   : >> { %927 = vst [vmem:[%s1702_s15 + $0x14] sm:$0xf] %v926_v56  ;;  %v930_v58 = vld [vmem:[%s1706_s20 + $0x1c] sm:$0xf]  ;;  %v932_v59 = vld [vmem:[%s1706_s20 + $0x20] sm:$0xf] }
 0x14d   : >> { %929 = vst [vmem:[%s1702_s15 + $0x18] sm:$0xf] %v928_v57  ;;  %931 = vst [vmem:[%s1702_s15 + $0x1c] sm:$0xf] %v930_v58  ;;  %v934_v60 = vld [vmem:[%s1706_s20 + $0x24] sm:$0xf] }
 0x14e   : >> { %933 = vst [vmem:[%s1702_s15 + $0x20] sm:$0xf] %v932_v59  ;;  %v936_v61 = vld [vmem:[%s1706_s20 + $0x28] sm:$0xf]  ;;  %v938_v62 = vld [vmem:[%s1706_s20 + $0x2c] sm:$0xf] }
 0x14f   : >> { %935 = vst [vmem:[%s1702_s15 + $0x24] sm:$0xf] %v934_v60  ;;  %937 = vst [vmem:[%s1702_s15 + $0x28] sm:$0xf] %v936_v61  ;;  %v940_v63 = vld [vmem:[%s1706_s20 + $0x30] sm:$0xf] }
 0x150   : >> { %939 = vst [vmem:[%s1702_s15 + $0x2c] sm:$0xf] %v938_v62  ;;  %v942_v0 = vld [vmem:[%s1706_s20 + $0x34] sm:$0xf]  ;;  %v944_v1 = vld [vmem:[%s1706_s20 + $0x38] sm:$0xf] }
 0x151   : >> { %941 = vst [vmem:[%s1702_s15 + $0x30] sm:$0xf] %v940_v63  ;;  %943 = vst [vmem:[%s1702_s15 + $0x34] sm:$0xf] %v942_v0  ;;  %v946_v2 = vld [vmem:[%s1706_s20 + $0x3c] sm:$0xf] }
 0x152   : >> { %945 = vst [vmem:[%s1702_s15 + $0x38] sm:$0xf] %v944_v1  ;;  %v948_v3 = vld [vmem:[%s1706_s20 + $0x40] sm:$0xf]  ;;  %v950_v4 = vld [vmem:[%s1706_s20 + $0x44] sm:$0xf] }
 0x153   : >> { %947 = vst [vmem:[%s1702_s15 + $0x3c] sm:$0xf] %v946_v2  ;;  %949 = vst [vmem:[%s1702_s15 + $0x40] sm:$0xf] %v948_v3  ;;  %v952_v5 = vld [vmem:[%s1706_s20 + $0x48] sm:$0xf] }
 0x154   : >> { %951 = vst [vmem:[%s1702_s15 + $0x44] sm:$0xf] %v950_v4  ;;  %v954_v6 = vld [vmem:[%s1706_s20 + $0x4c] sm:$0xf]  ;;  %v956_v7 = vld [vmem:[%s1706_s20 + $0x50] sm:$0xf] }
 0x155   : >> { %953 = vst [vmem:[%s1702_s15 + $0x48] sm:$0xf] %v952_v5  ;;  %955 = vst [vmem:[%s1702_s15 + $0x4c] sm:$0xf] %v954_v6  ;;  %v958_v8 = vld [vmem:[%s1706_s20 + $0x54] sm:$0xf] }
 0x156   : >> { %957 = vst [vmem:[%s1702_s15 + $0x50] sm:$0xf] %v956_v7  ;;  %v960_v9 = vld [vmem:[%s1706_s20 + $0x58] sm:$0xf]  ;;  %v962_v10 = vld [vmem:[%s1706_s20 + $0x5c] sm:$0xf] }
 0x157   : >> { %959 = vst [vmem:[%s1702_s15 + $0x54] sm:$0xf] %v958_v8  ;;  %961 = vst [vmem:[%s1702_s15 + $0x58] sm:$0xf] %v960_v9  ;;  %v964_v11 = vld [vmem:[%s1706_s20 + $0x60] sm:$0xf] }
 0x158   : >> { %963 = vst [vmem:[%s1702_s15 + $0x5c] sm:$0xf] %v962_v10  ;;  %v966_v12 = vld [vmem:[%s1706_s20 + $0x64] sm:$0xf]  ;;  %v968_v13 = vld [vmem:[%s1706_s20 + $0x68] sm:$0xf] }
 0x159   : >> { %965 = vst [vmem:[%s1702_s15 + $0x60] sm:$0xf] %v964_v11  ;;  %967 = vst [vmem:[%s1702_s15 + $0x64] sm:$0xf] %v966_v12  ;;  %v970_v14 = vld [vmem:[%s1706_s20 + $0x6c] sm:$0xf] }
 0x15a   : >> { %969 = vst [vmem:[%s1702_s15 + $0x68] sm:$0xf] %v968_v13  ;;  %v972_v15 = vld [vmem:[%s1706_s20 + $0x70] sm:$0xf]  ;;  %v974_v16 = vld [vmem:[%s1706_s20 + $0x74] sm:$0xf] }
 0x15b   : >> { %971 = vst [vmem:[%s1702_s15 + $0x6c] sm:$0xf] %v970_v14  ;;  %973 = vst [vmem:[%s1702_s15 + $0x70] sm:$0xf] %v972_v15  ;;  %v976_v17 = vld [vmem:[%s1706_s20 + $0x78] sm:$0xf] }
 0x15c   : >> { %975 = vst [vmem:[%s1702_s15 + $0x74] sm:$0xf] %v974_v16  ;;  %v978_v18 = vld [vmem:[%s1706_s20 + $0x7c] sm:$0xf]  ;;  %977 = vst [vmem:[%s1702_s15 + $0x78] sm:$0xf] %v976_v17 }
 0x15d   : >> { %979 = vst [vmem:[%s1702_s15 + $0x7c] sm:$0xf] %v978_v18  ;;  %s2124_s4 = smov (%p981_p11, %s980_s4), 0  ;;  %s910_s30 = sadd.s32 1, %s1714_s30  }
 0x15e   : >> { %s1318_s5 = sshll.u32 %s2124_s4, 7  ;;  %p909_p12 = scmp.ge.s32.totalorder %s910_s30, %s1988_s29 }
 0x15f   : >> { %s985_s20 = scalar_lea.vmem %s1881_s12, %s1318_s5 [#allocation2]   ;;  %s986_s15 = scalar_lea.vmem %s1982_s27, %s1318_s5  }
 0x160   : >> { %s2117_s23 = smov %s2124_s4  ;;  %912 = sbr.rel (!%p909_p12) target bundleno = 328 (0x148), region = 118 }
 0x165 PF: > { %s2092_s6 = sand.u32 31, %s2122_s22   ;;  %s1362_s7 = sshll.u32 %s1988_s29, 7 }
 0x166   : > { %s991_s8 = scalar_lea.vmem %s1881_s12, %s1362_s7 [#allocation2]   ;;  %s993_s9 = scalar_lea.vmem %s1982_s27, %s1362_s7  }
 0x167   : > { %p1323_p13 = scmp.le.s32.totalorder %s2092_s6, 0 }
 0x168   : > { %s1716_s10 = smov (!%p1323_p13), %s993_s9   ;;  %s1720_s11 = smov (!%p1323_p13), %s991_s8  }
 0x169   : > { %1192 = sbr.rel (%p1323_p13) target bundleno = 374 (0x176), region = 123  ;;  %s1724_s14 = smov (!%p1323_p13), 0  }
 0x16a   : > { %s1728_s17 = smov (!%p1323_p13), 0  }
 0x16e LB: >> { %v1003_v19 = vld [vmem:[%s1722_s11] sm:$0xf]  ;;  %s1005_s18 = sadd.s32 1, %s1726_s14  ;;  %s997_s17 = sadd.s32 1, %s1730_s17   ;;  %s1730_s17 = sphi %s1728_s17, %s997_s17   ;;  %s1726_s14 = sphi %s1724_s14, %s1725_s14   ;;  %s1722_s11 = sphi %s1720_s11, %s1010_s11   ;;  %s1718_s10 = sphi %s1716_s10, %s1011_s10  }
 0x16f   : >> { %1004 = vst [vmem:[%s1718_s10] sm:$0xf] %v1003_v19  ;;  %p1006_p0 = scmp.ge.s32.totalorder %s1005_s18, %s2092_s6  ;;  %p996_p1 = scmp.ge.s32.totalorder %s997_s17, %s2092_s6 }
 0x171   : >> { %s2126_s18 = smov (%p1006_p0, %s1005_s18), 0  ;;  %999 = sbr.rel (!%p996_p1) target bundleno = 366 (0x16e), region = 129 }
 0x172   : >> { %s1324_s21 = sshll.u32 %s2126_s18, 2  ;;  %s1725_s14 = smov %s2126_s18  }
 0x173   : >> { %s1010_s11 = scalar_lea.vmem %s991_s8, %s1324_s21 [#allocation2]   ;;  %s1011_s10 = scalar_lea.vmem %s993_s9, %s1324_s21  }
 0x176 PF: > { %p10_p2 = scmp.ge.s32.totalorder %s1767_s16, 6   ;;  %s2118_s12 = smov %s1694_s13 }
 0x177   : > { %s2119_s13 = smov %s1775_s19  ;;  %s2120_s14 = smov %s1767_s16 }
 0x178   :  { %12 = sbr.rel (!%p10_p2) target bundleno = 2 (0x2), region = 140 }

// kernel: dqn_forward.5
= control target key start
LH: loop header
LB: loop body
LE: loop exit
PB: predicated region body
PF: predicated region fallthrough
CT: control target
= control target key end

     0   :  { %vm880_vm0 = vcmask 519168   ;;  %vm901_vm1 = vcmask 516096   ;;  %s1637_s1 = inlined_call_operand.vmem [shape: bf16[512,64], index: 1, kind: input, shape index: {}]   ;;  %s1638_s0 = inlined_call_operand.vmem [shape: bf16[162,512], index: 0, kind: input, shape index: {}]   ;;  %s1639_s2 = inlined_call_operand.vmem [shape: f32[1,64], index: 2, kind: input, shape index: {}]   ;;  %s1640_s3 = inlined_call_operand.vmem [shape: bf16[162,64], index: 3, kind: output, shape index: {}]  }
   0x1   :  { %v1190_v0 = vld [vmem:[%s1637_s1 + $0x78] sm:$0xff]   ;;  %v1194_v4 = vld [vmem:[%s1637_s1 + $0x70] sm:$0xff]   ;;  %v1198_v8 = vld [vmem:[%s1637_s1 + $0x68] sm:$0xff]  }
   0x2   :  { %v1191_v1 = vld [vmem:[%s1637_s1 + $0xf8] sm:$0xff]   ;;  %1026 = vmatprep.subr.bf16.mxu0 %v1190_v0  ;;  %v1195_v5 = vld [vmem:[%s1637_s1 + $0xf0] sm:$0xff]   ;;  %v1199_v9 = vld [vmem:[%s1637_s1 + $0xe8] sm:$0xff]  }
   0x3   :  { %v1192_v2 = vld [vmem:[%s1637_s1 + $0x38] sm:$0xff]   ;;  %1108 = vmatprep.subr.bf16.mxu1 %v1191_v1  ;;  %v1196_v6 = vld [vmem:[%s1637_s1 + $0x30] sm:$0xff]   ;;  %v1200_v10 = vld [vmem:[%s1637_s1 + $0x28] sm:$0xff]  }
   0x4   :  { %v1193_v3 = vld [vmem:[%s1637_s1 + $0xb8] sm:$0xff]   ;;  %1027 = vmatpush3.bf16.msra.mxu0 %v1192_v2  ;;  %v1197_v7 = vld [vmem:[%s1637_s1 + $0xb0] sm:$0xff]   ;;  %v1201_v11 = vld [vmem:[%s1637_s1 + $0xa8] sm:$0xff]  }
   0x5   :  { %1109 = vmatpush3.bf16.msra.mxu1 %v1193_v3  ;;  %1028 = vmatprep.subr.bf16.mxu0 %v1194_v4  ;;  %v1202_v12 = vld [vmem:[%s1637_s1 + $0x60] sm:$0xff]   ;;  %v1206_v16 = vld [vmem:[%s1637_s1 + $0x58] sm:$0xff]   ;;  %v1210_v20 = vld [vmem:[%s1637_s1 + $0x50] sm:$0xff]  }
   0x6   :  { %1110 = vmatprep.subr.bf16.mxu1 %v1195_v5  ;;  %v1203_v13 = vld [vmem:[%s1637_s1 + $0xe0] sm:$0xff]   ;;  %v1207_v17 = vld [vmem:[%s1637_s1 + $0xd8] sm:$0xff]   ;;  %v1211_v21 = vld [vmem:[%s1637_s1 + $0xd0] sm:$0xff]  }
   0x7   :  { %v1204_v14 = vld [vmem:[%s1637_s1 + $0x20] sm:$0xff]   ;;  %v1208_v18 = vld [vmem:[%s1637_s1 + $0x18] sm:$0xff]   ;;  %v1212_v22 = vld [vmem:[%s1637_s1 + $0x10] sm:$0xff]  }
   0x8   :  { %1029 = vmatpush3.bf16.msra.mxu0 %v1196_v6  ;;  %v1205_v15 = vld [vmem:[%s1637_s1 + $0xa0] sm:$0xff]   ;;  %v1209_v19 = vld [vmem:[%s1637_s1 + $0x98] sm:$0xff]   ;;  %v1213_v23 = vld [vmem:[%s1637_s1 + $0x90] sm:$0xff]  }
   0x9   :  { %1111 = vmatpush3.bf16.msra.mxu1 %v1197_v7  ;;  %1030 = vmatprep.subr.bf16.mxu0 %v1198_v8  ;;  %v1214_v24 = vld [vmem:[%s1637_s1 + $0x48] sm:$0xff]   ;;  %v1218_v28 = vld [vmem:[%s1637_s1 + $0x40] sm:$0xff]  }
   0xa   :  { %1112 = vmatprep.subr.bf16.mxu1 %v1199_v9  ;;  %v1215_v25 = vld [vmem:[%s1637_s1 + $0xc8] sm:$0xff]   ;;  %v1219_v29 = vld [vmem:[%s1637_s1 + $0xc0] sm:$0xff]  }
   0xb   :  { %v1216_v26 = vld [vmem:[%s1637_s1 + $0x8] sm:$0xff]   ;;  %v1220_v30 = vld [vmem:[%s1637_s1] sm:$0xff]  }
   0xc   :  { %1031 = vmatpush3.bf16.msra.mxu0 %v1200_v10  ;;  %v1217_v27 = vld [vmem:[%s1637_s1 + $0x88] sm:$0xff]   ;;  %v1221_v31 = vld [vmem:[%s1637_s1 + $0x80] sm:$0xff]  }
   0xd   :  { %1113 = vmatpush3.bf16.msra.mxu1 %v1201_v11  ;;  %1032 = vmatprep.subr.bf16.mxu0 %v1202_v12  ;;  %v1222_v32 = vld [vmem:[%s1638_s0] ss:$16 sps:$4 sm:$0xff]   ;;  %v1224_v33 = vld [vmem:[%s1638_s0 + $0x4] ss:$16 sps:$4 sm:$0xff]   ;;  %v1225_v34 = vld [vmem:[%s1638_s0 + $0x8] ss:$16 sps:$4 sm:$0xff]  }
   0xe   :  { %1114 = vmatprep.subr.bf16.mxu1 %v1203_v13  ;;  %v1227_v35 = vld [vmem:[%s1638_s0 + $0xc] ss:$16 sps:$4 sm:$0xff]   ;;  %566 = vmatprep.mubr.bf16.mxu0 %v1224_v33  ;;  %v1228_v36 = vld [vmem:[%s1638_s0 + $0x24] ss:$16 sps:$4 sm:$0xff]   ;;  %v1232_v38 = vld [vmem:[%s1638_s0 + $0x20] ss:$16 sps:$4 sm:$0xff]  }
   0xf   :  { %686 = vmatprep.mubr.bf16.mxu1 %v1227_v35  ;;  %v1230_v37 = vld [vmem:[%s1638_s0 + $0x2c] ss:$16 sps:$4 sm:$0xff]   ;;  %v1233_v39 = vld [vmem:[%s1638_s0 + $0x28] ss:$16 sps:$4 sm:$0xff]   ;;  %v1234_v40 = vld [vmem:[%s1638_s0 + $0x44] ss:$16 sps:$4 sm:$0xff]  }
  0x10   :  { %1033 = vmatpush3.bf16.msra.mxu0 %v1204_v14  ;;  %v1236_v41 = vld [vmem:[%s1638_s0 + $0x4c] ss:$16 sps:$4 sm:$0xff]   ;;  %v1238_v42 = vld [vmem:[%s1638_s0 + $0x40] ss:$16 sps:$4 sm:$0xff]   ;;  %v1239_v43 = vld [vmem:[%s1638_s0 + $0x48] ss:$16 sps:$4 sm:$0xff]  }
  0x11   :  { %1115 = vmatpush3.bf16.msra.mxu1 %v1205_v15  ;;  %1034 = vmatprep.subr.bf16.mxu0 %v1206_v16  ;;  %v1240_v44 = vld [vmem:[%s1638_s0 + $0x64] ss:$16 sps:$4 sm:$0xff]   ;;  %v1242_v45 = vld [vmem:[%s1638_s0 + $0x6c] ss:$16 sps:$4 sm:$0xff]   ;;  %v1244_v46 = vld [vmem:[%s1638_s0 + $0x60] ss:$16 sps:$4 sm:$0xff]  }
  0x12   :  { %1116 = vmatprep.subr.bf16.mxu1 %v1207_v17  ;;  %v1245_v47 = vld [vmem:[%s1638_s0 + $0x68] ss:$16 sps:$4 sm:$0xff]   ;;  %v1246_v48 = vld [vmem:[%s1638_s0 + $0x84] ss:$16 sps:$4 sm:$0xff]   ;;  %v1248_v49 = vld [vmem:[%s1638_s0 + $0x8c] ss:$16 sps:$4 sm:$0xff]  }
  0x13   :  { %v1250_v50 = vld [vmem:[%s1638_s0 + $0x80] ss:$16 sps:$4 sm:$0xff]   ;;  %v1251_v51 = vld [vmem:[%s1638_s0 + $0x88] ss:$16 sps:$4 sm:$0xff]   ;;  %v1252_v52 = vld [vmem:[%s1638_s0 + $0xa4] ss:$16 sps:$4 sm:$0xff]  }
  0x14   :  { %1035 = vmatpush3.bf16.msra.mxu0 %v1208_v18  ;;  %v1254_v53 = vld [vmem:[%s1638_s0 + $0xac] ss:$16 sps:$4 sm:$0xff]   ;;  %v1256_v54 = vld [vmem:[%s1638_s0 + $0xa0] ss:$16 sps:$4 sm:$0xff]   ;;  %v1257_v55 = vld [vmem:[%s1638_s0 + $0xa8] ss:$16 sps:$4 sm:$0xff]  }
  0x15   :  { %1117 = vmatpush3.bf16.msra.mxu1 %v1209_v19  ;;  %1036 = vmatprep.subr.bf16.mxu0 %v1210_v20  ;;  %v1258_v56 = vld [vmem:[%s1638_s0 + $0xc4] ss:$16 sps:$4 sm:$0xff]   ;;  %v1260_v57 = vld [vmem:[%s1638_s0 + $0xcc] ss:$16 sps:$4 sm:$0xff]   ;;  %v1262_v58 = vld [vmem:[%s1638_s0 + $0xc0] ss:$16 sps:$4 sm:$0xff]  }
  0x16   :  { %1118 = vmatprep.subr.bf16.mxu1 %v1211_v21  ;;  %v1263_v59 = vld [vmem:[%s1638_s0 + $0xc8] ss:$16 sps:$4 sm:$0xff]   ;;  %v1264_v60 = vld [vmem:[%s1638_s0 + $0xe4] ss:$16 sps:$4 sm:$0xff]   ;;  %v1266_v61 = vld [vmem:[%s1638_s0 + $0xec] ss:$16 sps:$4 sm:$0xff]  }
  0x17   :  { %v1268_v62 = vld [vmem:[%s1638_s0 + $0xe0] ss:$16 sps:$4 sm:$0xff]   ;;  %v1269_v63 = vld [vmem:[%s1638_s0 + $0xe8] ss:$16 sps:$4 sm:$0xff]   ;;  %v1270_v0 = vld [vmem:[%s1638_s0 + $0x104] ss:$16 sps:$4 sm:$0xff]  }
  0x18   :  { %1037 = vmatpush3.bf16.msra.mxu0 %v1212_v22  ;;  %v1272_v1 = vld [vmem:[%s1638_s0 + $0x10c] ss:$16 sps:$4 sm:$0xff]   ;;  %v1274_v2 = vld [vmem:[%s1638_s0 + $0x100] ss:$16 sps:$4 sm:$0xff]   ;;  %v1275_v3 = vld [vmem:[%s1638_s0 + $0x108] ss:$16 sps:$4 sm:$0xff]  }
  0x19   :  { %1119 = vmatpush3.bf16.msra.mxu1 %v1213_v23  ;;  %1038 = vmatprep.subr.bf16.mxu0 %v1214_v24  ;;  %v1276_v4 = vld [vmem:[%s1638_s0 + $0x124] ss:$16 sps:$4 sm:$0xff]   ;;  %v1278_v5 = vld [vmem:[%s1638_s0 + $0x12c] ss:$16 sps:$4 sm:$0xff]   ;;  %v1280_v8 = vld [vmem:[%s1638_s0 + $0x120] ss:$16 sps:$4 sm:$0xff]  }
  0x1a   :  { %1120 = vmatprep.subr.bf16.mxu1 %v1215_v25  ;;  %v55_v6 = vld [vmem:[%s1638_s0 + $0x140] sm:$0x11]  ;;  %v56_v7 = vld [vmem:[%s1638_s0 + $0x148] sm:$0x11] }
  0x1b   :  { %v1281_v9 = vld [vmem:[%s1638_s0 + $0x128] ss:$16 sps:$4 sm:$0xff]   ;;  %v949_v10 = vcombine.high %v55_v6, %v55_v6  ;;  %v951_v11 = vcombine.high %v56_v7, %v56_v7  ;;  %v948_v12 = vcombine.low %v55_v6, %v55_v6  ;;  %v950_v13 = vcombine.low %v56_v7, %v56_v7  ;;  %v1531_v16 = vld [vmem:[%s1639_s2] ss:$0 sm:$0xff] }
  0x1c   :  { %1039 = vmatpush3.bf16.msra.mxu0 %v1216_v26 }
  0x1d   :  { %1121 = vmatpush3.bf16.msra.mxu1 %v1217_v27  ;;  %1040 = vmatprep.subr.bf16.mxu0 %v1218_v28 }
  0x1e   :  { %1122 = vmatprep.subr.bf16.mxu1 %v1219_v29 }
  0x20   :  { %1041 = vmatpush3.bf16.msra.mxu0 %v1220_v30 }
  0x21   :  { %1123 = vmatpush3.bf16.msra.mxu1 %v1221_v31 }
  0x23   :  { %567 = vmatmul.mubr.bf16.vlgmr.msra.gmra.mxu0 %v1222_v32 }
  0x24   :  { %687 = vmatmul.mubr.bf16.vlgmr.msra.gmra.mxu1 %v1225_v34  ;;  %574 = vmatprep.mubr.bf16.mxu0 %v1228_v36 }
  0x25   :  { %694 = vmatprep.mubr.bf16.mxu1 %v1230_v37 }
  0x2b   :  { %575 = vmatmul.mubr.bf16.gmra.mxu0 %v1232_v38 }
  0x2c   :  { %695 = vmatmul.mubr.bf16.gmra.mxu1 %v1233_v39  ;;  %582 = vmatprep.mubr.bf16.mxu0 %v1234_v40 }
  0x2d   :  { %702 = vmatprep.mubr.bf16.mxu1 %v1236_v41 }
  0x33   :  { %583 = vmatmul.mubr.bf16.gmra.mxu0 %v1238_v42 }
  0x34   :  { %703 = vmatmul.mubr.bf16.gmra.mxu1 %v1239_v43  ;;  %590 = vmatprep.mubr.bf16.mxu0 %v1240_v44 }
  0x35   :  { %710 = vmatprep.mubr.bf16.mxu1 %v1242_v45 }
  0x3b   :  { %591 = vmatmul.mubr.bf16.gmra.mxu0 %v1244_v46 }
  0x3c   :  { %711 = vmatmul.mubr.bf16.gmra.mxu1 %v1245_v47  ;;  %598 = vmatprep.mubr.bf16.mxu0 %v1246_v48 }
  0x3d   :  { %718 = vmatprep.mubr.bf16.mxu1 %v1248_v49 }
  0x43   :  { %599 = vmatmul.mubr.bf16.gmra.mxu0 %v1250_v50 }
  0x44   :  { %719 = vmatmul.mubr.bf16.gmra.mxu1 %v1251_v51  ;;  %606 = vmatprep.mubr.bf16.mxu0 %v1252_v52 }
  0x45   :  { %726 = vmatprep.mubr.bf16.mxu1 %v1254_v53 }
  0x4b   :  { %607 = vmatmul.mubr.bf16.gmra.mxu0 %v1256_v54 }
  0x4c   :  { %727 = vmatmul.mubr.bf16.gmra.mxu1 %v1257_v55  ;;  %614 = vmatprep.mubr.bf16.mxu0 %v1258_v56 }
  0x4d   :  { %734 = vmatprep.mubr.bf16.mxu1 %v1260_v57 }
  0x53   :  { %615 = vmatmul.mubr.bf16.gmra.mxu0 %v1262_v58 }
  0x54   :  { %735 = vmatmul.mubr.bf16.gmra.mxu1 %v1263_v59  ;;  %622 = vmatprep.mubr.bf16.mxu0 %v1264_v60 }
  0x55   :  { %742 = vmatprep.mubr.bf16.mxu1 %v1266_v61 }
  0x5b   :  { %623 = vmatmul.mubr.bf16.gmra.mxu0 %v1268_v62 }
  0x5c   :  { %743 = vmatmul.mubr.bf16.gmra.mxu1 %v1269_v63  ;;  %630 = vmatprep.mubr.bf16.mxu0 %v1270_v0 }
  0x5d   :  { %750 = vmatprep.mubr.bf16.mxu1 %v1272_v1 }
  0x63   :  { %631 = vmatmul.mubr.bf16.gmra.mxu0 %v1274_v2 }
  0x64   :  { %751 = vmatmul.mubr.bf16.gmra.mxu1 %v1275_v3  ;;  %638 = vmatprep.mubr.bf16.mxu0 %v1276_v4 }
  0x65   :  { %758 = vmatprep.mubr.bf16.mxu1 %v1278_v5 }
  0x6b   :  { %639 = vmatmul.mubr.bf16.gmra.mxu0 %v1280_v8 }
  0x6c   :  { %759 = vmatmul.mubr.bf16.gmra.mxu1 %v1281_v9  ;;  %646 = vmatprep.mubr.bf16.mxu0 %v949_v10 }
  0x6d   :  { %766 = vmatprep.mubr.bf16.mxu1 %v951_v11 }
  0x73   :  { %647 = vmatmul.mubr.bf16.gmra.mxu0 %v948_v12 }
  0x74   :  { %767 = vmatmul.mubr.bf16.gmra.mxu1 %v950_v13 }
  0xe3   :  { %v1042_v14 = vpop.f32.mrf.mxu0 }
  0xe4   :  { %v1124_v15 = vpop.f32.mrf.mxu1 }
  0xe5   :  { %v1043_v17 = vpop.f32.mrf.mxu0 }
  0xe6   :  { %v1044_v18 = vadd.f32 %v1043_v17, %v1042_v14  ;;  %v1125_v19 = vpop.f32.mrf.mxu1 }
  0xe7   :  { %v1045_v20 = vpop.f32.mrf.mxu0  ;;  %v1126_v22 = vadd.f32 %v1125_v19, %v1124_v15 }
  0xe8   :  { %v569_v21 = vadd.f32 %v1044_v18, %v1531_v16  ;;  %v1127_v23 = vpop.f32.mrf.mxu1 }
  0xe9   :  { %v1046_v24 = vpop.f32.mrf.mxu0 }
  0xea   :  { %v689_v25 = vadd.f32 %v1126_v22, %v569_v21  ;;  %v1047_v26 = vadd.f32 %v1046_v24, %v1045_v20  ;;  %v1128_v27 = vpop.f32.mrf.mxu1 }
  0xeb   :  { %v1048_v28 = vpop.f32.mrf.mxu0  ;;  %v1129_v31 = vadd.f32 %v1128_v27, %v1127_v23 }
  0xec   :  { %v774_v29 = vmax.f32 %v689_v25, 0.0  ;;  %v572_v30 = vadd.f32 %v1047_v26, %v1531_v16  ;;  %v1130_v32 = vpop.f32.mrf.mxu1 }
  0xed   :  { %v1049_v33 = vpop.f32.mrf.mxu0 }
  0xee   :  { %v1005_v34 = vpack.c.bf16 %v774_v29, %v774_v29  ;;  %v692_v35 = vadd.f32 %v1129_v31, %v572_v30  ;;  %v1050_v36 = vadd.f32 %v1049_v33, %v1048_v28  ;;  %v1131_v37 = vpop.f32.mrf.mxu1 }
  0xef   :  { %v1051_v38 = vpop.f32.mrf.mxu0  ;;  %v1132_v41 = vadd.f32 %v1131_v37, %v1130_v32 }
  0xf0   :  { %881 = vst.msk [vmem:[%s1640_s3] sm:$0xf] %vm880_vm0, %v1005_v34  ;;  %v775_v39 = vmax.f32 %v692_v35, 0.0  ;;  %v577_v40 = vadd.f32 %v1050_v36, %v1531_v16  ;;  %v1133_v42 = vpop.f32.mrf.mxu1 }
  0xf1   :  { %v1052_v43 = vpop.f32.mrf.mxu0 }
  0xf2   :  { %v1006_v44 = vpack.c.bf16 %v775_v39, %v775_v39  ;;  %v697_v45 = vadd.f32 %v1132_v41, %v577_v40  ;;  %v1053_v46 = vadd.f32 %v1052_v43, %v1051_v38  ;;  %v1134_v47 = vpop.f32.mrf.mxu1 }
  0xf3   :  { %v1054_v48 = vpop.f32.mrf.mxu0  ;;  %v1135_v51 = vadd.f32 %v1134_v47, %v1133_v42 }
  0xf4   :  { %882 = vst.msk [vmem:[%s1640_s3 + $0x4] sm:$0xf] %vm880_vm0, %v1006_v44  ;;  %v776_v49 = vmax.f32 %v697_v45, 0.0  ;;  %v580_v50 = vadd.f32 %v1053_v46, %v1531_v16  ;;  %v1136_v52 = vpop.f32.mrf.mxu1 }
  0xf5   :  { %v1055_v53 = vpop.f32.mrf.mxu0 }
  0xf6   :  { %v1007_v54 = vpack.c.bf16 %v776_v49, %v776_v49  ;;  %v700_v55 = vadd.f32 %v1135_v51, %v580_v50  ;;  %v1056_v56 = vadd.f32 %v1055_v53, %v1054_v48  ;;  %v1137_v57 = vpop.f32.mrf.mxu1 }
  0xf7   :  { %v1057_v58 = vpop.f32.mrf.mxu0  ;;  %v1138_v61 = vadd.f32 %v1137_v57, %v1136_v52 }
  0xf8   :  { %883 = vst.msk [vmem:[%s1640_s3 + $0x8] sm:$0xf] %vm880_vm0, %v1007_v54  ;;  %v777_v59 = vmax.f32 %v700_v55, 0.0  ;;  %v585_v60 = vadd.f32 %v1056_v56, %v1531_v16  ;;  %v1139_v62 = vpop.f32.mrf.mxu1 }
  0xf9   :  { %v1058_v63 = vpop.f32.mrf.mxu0 }
  0xfa   :  { %v1008_v0 = vpack.c.bf16 %v777_v59, %v777_v59  ;;  %v705_v1 = vadd.f32 %v1138_v61, %v585_v60  ;;  %v1059_v2 = vadd.f32 %v1058_v63, %v1057_v58  ;;  %v1140_v3 = vpop.f32.mrf.mxu1 }
  0xfb   :  { %v1060_v4 = vpop.f32.mrf.mxu0  ;;  %v1141_v7 = vadd.f32 %v1140_v3, %v1139_v62 }
  0xfc   :  { %884 = vst.msk [vmem:[%s1640_s3 + $0xc] sm:$0xf] %vm880_vm0, %v1008_v0  ;;  %v778_v5 = vmax.f32 %v705_v1, 0.0  ;;  %v588_v6 = vadd.f32 %v1059_v2, %v1531_v16  ;;  %v1142_v8 = vpop.f32.mrf.mxu1 }
  0xfd   :  { %v1061_v9 = vpop.f32.mrf.mxu0 }
  0xfe   :  { %v1009_v10 = vpack.c.bf16 %v778_v5, %v778_v5  ;;  %v708_v11 = vadd.f32 %v1141_v7, %v588_v6  ;;  %v1062_v12 = vadd.f32 %v1061_v9, %v1060_v4  ;;  %v1143_v13 = vpop.f32.mrf.mxu1 }
  0xff   :  { %v1063_v14 = vpop.f32.mrf.mxu0  ;;  %v1144_v18 = vadd.f32 %v1143_v13, %v1142_v8 }
 0x100   :  { %885 = vst.msk [vmem:[%s1640_s3 + $0x10] sm:$0xf] %vm880_vm0, %v1009_v10  ;;  %v779_v15 = vmax.f32 %v708_v11, 0.0  ;;  %v593_v17 = vadd.f32 %v1062_v12, %v1531_v16  ;;  %v1145_v19 = vpop.f32.mrf.mxu1 }
 0x101   :  { %v1064_v20 = vpop.f32.mrf.mxu0 }
 0x102   :  { %v1010_v21 = vpack.c.bf16 %v779_v15, %v779_v15  ;;  %v713_v22 = vadd.f32 %v1144_v18, %v593_v17  ;;  %v1065_v23 = vadd.f32 %v1064_v20, %v1063_v14  ;;  %v1146_v24 = vpop.f32.mrf.mxu1 }
 0x103   :  { %v1066_v25 = vpop.f32.mrf.mxu0  ;;  %v1147_v28 = vadd.f32 %v1146_v24, %v1145_v19 }
 0x104   :  { %886 = vst.msk [vmem:[%s1640_s3 + $0x14] sm:$0xf] %vm880_vm0, %v1010_v21  ;;  %v780_v26 = vmax.f32 %v713_v22, 0.0  ;;  %v596_v27 = vadd.f32 %v1065_v23, %v1531_v16  ;;  %v1148_v29 = vpop.f32.mrf.mxu1 }
 0x105   :  { %v1067_v30 = vpop.f32.mrf.mxu0 }
 0x106   :  { %v1011_v31 = vpack.c.bf16 %v780_v26, %v780_v26  ;;  %v716_v32 = vadd.f32 %v1147_v28, %v596_v27  ;;  %v1068_v33 = vadd.f32 %v1067_v30, %v1066_v25  ;;  %v1149_v34 = vpop.f32.mrf.mxu1 }
 0x107   :  { %v1069_v35 = vpop.f32.mrf.mxu0  ;;  %v1150_v38 = vadd.f32 %v1149_v34, %v1148_v29 }
 0x108   :  { %887 = vst.msk [vmem:[%s1640_s3 + $0x18] sm:$0xf] %vm880_vm0, %v1011_v31  ;;  %v781_v36 = vmax.f32 %v716_v32, 0.0  ;;  %v601_v37 = vadd.f32 %v1068_v33, %v1531_v16  ;;  %v1151_v39 = vpop.f32.mrf.mxu1 }
 0x109   :  { %v1070_v40 = vpop.f32.mrf.mxu0 }
 0x10a   :  { %v1012_v41 = vpack.c.bf16 %v781_v36, %v781_v36  ;;  %v721_v42 = vadd.f32 %v1150_v38, %v601_v37  ;;  %v1071_v43 = vadd.f32 %v1070_v40, %v1069_v35  ;;  %v1152_v44 = vpop.f32.mrf.mxu1 }
 0x10b   :  { %v1072_v45 = vpop.f32.mrf.mxu0  ;;  %v1153_v48 = vadd.f32 %v1152_v44, %v1151_v39 }
 0x10c   :  { %888 = vst.msk [vmem:[%s1640_s3 + $0x1c] sm:$0xf] %vm880_vm0, %v1012_v41  ;;  %v782_v46 = vmax.f32 %v721_v42, 0.0  ;;  %v604_v47 = vadd.f32 %v1071_v43, %v1531_v16  ;;  %v1154_v49 = vpop.f32.mrf.mxu1 }
 0x10d   :  { %v1073_v50 = vpop.f32.mrf.mxu0 }
 0x10e   :  { %v1013_v51 = vpack.c.bf16 %v782_v46, %v782_v46  ;;  %v724_v52 = vadd.f32 %v1153_v48, %v604_v47  ;;  %v1074_v53 = vadd.f32 %v1073_v50, %v1072_v45  ;;  %v1155_v54 = vpop.f32.mrf.mxu1 }
 0x10f   :  { %v1075_v55 = vpop.f32.mrf.mxu0  ;;  %v1156_v58 = vadd.f32 %v1155_v54, %v1154_v49 }
 0x110   :  { %889 = vst.msk [vmem:[%s1640_s3 + $0x20] sm:$0xf] %vm880_vm0, %v1013_v51  ;;  %v783_v56 = vmax.f32 %v724_v52, 0.0  ;;  %v609_v57 = vadd.f32 %v1074_v53, %v1531_v16  ;;  %v1157_v59 = vpop.f32.mrf.mxu1 }
 0x111   :  { %v1076_v60 = vpop.f32.mrf.mxu0 }
 0x112   :  { %v1014_v61 = vpack.c.bf16 %v783_v56, %v783_v56  ;;  %v729_v62 = vadd.f32 %v1156_v58, %v609_v57  ;;  %v1077_v63 = vadd.f32 %v1076_v60, %v1075_v55  ;;  %v1158_v0 = vpop.f32.mrf.mxu1 }
 0x113   :  { %v1078_v1 = vpop.f32.mrf.mxu0  ;;  %v1159_v4 = vadd.f32 %v1158_v0, %v1157_v59 }
 0x114   :  { %890 = vst.msk [vmem:[%s1640_s3 + $0x24] sm:$0xf] %vm880_vm0, %v1014_v61  ;;  %v784_v2 = vmax.f32 %v729_v62, 0.0  ;;  %v612_v3 = vadd.f32 %v1077_v63, %v1531_v16  ;;  %v1160_v5 = vpop.f32.mrf.mxu1 }
 0x115   :  { %v1079_v6 = vpop.f32.mrf.mxu0 }
 0x116   :  { %v1015_v7 = vpack.c.bf16 %v784_v2, %v784_v2  ;;  %v732_v8 = vadd.f32 %v1159_v4, %v612_v3  ;;  %v1080_v9 = vadd.f32 %v1079_v6, %v1078_v1  ;;  %v1161_v10 = vpop.f32.mrf.mxu1 }
 0x117   :  { %v1081_v11 = vpop.f32.mrf.mxu0  ;;  %v1162_v14 = vadd.f32 %v1161_v10, %v1160_v5 }
 0x118   :  { %891 = vst.msk [vmem:[%s1640_s3 + $0x28] sm:$0xf] %vm880_vm0, %v1015_v7  ;;  %v785_v12 = vmax.f32 %v732_v8, 0.0  ;;  %v617_v13 = vadd.f32 %v1080_v9, %v1531_v16  ;;  %v1163_v15 = vpop.f32.mrf.mxu1 }
 0x119   :  { %v1082_v17 = vpop.f32.mrf.mxu0 }
 0x11a   :  { %v1016_v18 = vpack.c.bf16 %v785_v12, %v785_v12  ;;  %v737_v19 = vadd.f32 %v1162_v14, %v617_v13  ;;  %v1083_v20 = vadd.f32 %v1082_v17, %v1081_v11  ;;  %v1164_v21 = vpop.f32.mrf.mxu1 }
 0x11b   :  { %v1084_v22 = vpop.f32.mrf.mxu0  ;;  %v1165_v25 = vadd.f32 %v1164_v21, %v1163_v15 }
 0x11c   :  { %892 = vst.msk [vmem:[%s1640_s3 + $0x2c] sm:$0xf] %vm880_vm0, %v1016_v18  ;;  %v786_v23 = vmax.f32 %v737_v19, 0.0  ;;  %v620_v24 = vadd.f32 %v1083_v20, %v1531_v16  ;;  %v1166_v26 = vpop.f32.mrf.mxu1 }
 0x11d   :  { %v1085_v27 = vpop.f32.mrf.mxu0 }
 0x11e   :  { %v1017_v28 = vpack.c.bf16 %v786_v23, %v786_v23  ;;  %v740_v29 = vadd.f32 %v1165_v25, %v620_v24  ;;  %v1086_v30 = vadd.f32 %v1085_v27, %v1084_v22  ;;  %v1167_v31 = vpop.f32.mrf.mxu1 }
 0x11f   :  { %v1087_v32 = vpop.f32.mrf.mxu0  ;;  %v1168_v35 = vadd.f32 %v1167_v31, %v1166_v26 }
 0x120   :  { %893 = vst.msk [vmem:[%s1640_s3 + $0x30] sm:$0xf] %vm880_vm0, %v1017_v28  ;;  %v787_v33 = vmax.f32 %v740_v29, 0.0  ;;  %v625_v34 = vadd.f32 %v1086_v30, %v1531_v16  ;;  %v1169_v36 = vpop.f32.mrf.mxu1 }
 0x121   :  { %v1088_v37 = vpop.f32.mrf.mxu0 }
 0x122   :  { %v1018_v38 = vpack.c.bf16 %v787_v33, %v787_v33  ;;  %v745_v39 = vadd.f32 %v1168_v35, %v625_v34  ;;  %v1089_v40 = vadd.f32 %v1088_v37, %v1087_v32  ;;  %v1170_v41 = vpop.f32.mrf.mxu1 }
 0x123   :  { %v1090_v42 = vpop.f32.mrf.mxu0  ;;  %v1171_v45 = vadd.f32 %v1170_v41, %v1169_v36 }
 0x124   :  { %894 = vst.msk [vmem:[%s1640_s3 + $0x34] sm:$0xf] %vm880_vm0, %v1018_v38  ;;  %v788_v43 = vmax.f32 %v745_v39, 0.0  ;;  %v628_v44 = vadd.f32 %v1089_v40, %v1531_v16  ;;  %v1172_v46 = vpop.f32.mrf.mxu1 }
 0x125   :  { %v1091_v47 = vpop.f32.mrf.mxu0 }
 0x126   :  { %v1019_v48 = vpack.c.bf16 %v788_v43, %v788_v43  ;;  %v748_v49 = vadd.f32 %v1171_v45, %v628_v44  ;;  %v1092_v50 = vadd.f32 %v1091_v47, %v1090_v42  ;;  %v1173_v51 = vpop.f32.mrf.mxu1 }
 0x127   :  { %v1093_v52 = vpop.f32.mrf.mxu0  ;;  %v1174_v55 = vadd.f32 %v1173_v51, %v1172_v46 }
 0x128   :  { %895 = vst.msk [vmem:[%s1640_s3 + $0x38] sm:$0xf] %vm880_vm0, %v1019_v48  ;;  %v789_v53 = vmax.f32 %v748_v49, 0.0  ;;  %v633_v54 = vadd.f32 %v1092_v50, %v1531_v16  ;;  %v1175_v56 = vpop.f32.mrf.mxu1 }
 0x129   :  { %v1094_v57 = vpop.f32.mrf.mxu0 }
 0x12a   :  { %v1020_v58 = vpack.c.bf16 %v789_v53, %v789_v53  ;;  %v753_v59 = vadd.f32 %v1174_v55, %v633_v54  ;;  %v1095_v60 = vadd.f32 %v1094_v57, %v1093_v52  ;;  %v1176_v61 = vpop.f32.mrf.mxu1 }
 0x12b   :  { %v1096_v62 = vpop.f32.mrf.mxu0  ;;  %v1177_v1 = vadd.f32 %v1176_v61, %v1175_v56 }
 0x12c   :  { %896 = vst.msk [vmem:[%s1640_s3 + $0x3c] sm:$0xf] %vm880_vm0, %v1020_v58  ;;  %v790_v63 = vmax.f32 %v753_v59, 0.0  ;;  %v636_v0 = vadd.f32 %v1095_v60, %v1531_v16  ;;  %v1178_v2 = vpop.f32.mrf.mxu1 }
 0x12d   :  { %v1097_v3 = vpop.f32.mrf.mxu0 }
 0x12e   :  { %v1021_v4 = vpack.c.bf16 %v790_v63, %v790_v63  ;;  %v756_v5 = vadd.f32 %v1177_v1, %v636_v0  ;;  %v1098_v6 = vadd.f32 %v1097_v3, %v1096_v62  ;;  %v1179_v7 = vpop.f32.mrf.mxu1 }
 0x12f   :  { %v1099_v8 = vpop.f32.mrf.mxu0  ;;  %v1180_v11 = vadd.f32 %v1179_v7, %v1178_v2 }
 0x130   :  { %897 = vst.msk [vmem:[%s1640_s3 + $0x40] sm:$0xf] %vm880_vm0, %v1021_v4  ;;  %v791_v9 = vmax.f32 %v756_v5, 0.0  ;;  %v641_v10 = vadd.f32 %v1098_v6, %v1531_v16  ;;  %v1181_v12 = vpop.f32.mrf.mxu1 }
 0x131   :  { %v1100_v13 = vpop.f32.mrf.mxu0 }
 0x132   :  { %v1022_v14 = vpack.c.bf16 %v791_v9, %v791_v9  ;;  %v761_v15 = vadd.f32 %v1180_v11, %v641_v10  ;;  %v1101_v17 = vadd.f32 %v1100_v13, %v1099_v8  ;;  %v1182_v18 = vpop.f32.mrf.mxu1 }
 0x133   :  { %v1102_v19 = vpop.f32.mrf.mxu0  ;;  %v1183_v22 = vadd.f32 %v1182_v18, %v1181_v12 }
 0x134   :  { %898 = vst.msk [vmem:[%s1640_s3 + $0x44] sm:$0xf] %vm880_vm0, %v1022_v14  ;;  %v792_v20 = vmax.f32 %v761_v15, 0.0  ;;  %v644_v21 = vadd.f32 %v1101_v17, %v1531_v16  ;;  %v1184_v23 = vpop.f32.mrf.mxu1 }
 0x135   :  { %v1103_v24 = vpop.f32.mrf.mxu0 }
 0x136   :  { %v1023_v25 = vpack.c.bf16 %v792_v20, %v792_v20  ;;  %v764_v26 = vadd.f32 %v1183_v22, %v644_v21  ;;  %v1104_v27 = vadd.f32 %v1103_v24, %v1102_v19  ;;  %v1185_v28 = vpop.f32.mrf.mxu1 }
 0x137   :  { %v1105_v29 = vpop.f32.mrf.mxu0  ;;  %v1186_v32 = vadd.f32 %v1185_v28, %v1184_v23 }
 0x138   :  { %899 = vst.msk [vmem:[%s1640_s3 + $0x48] sm:$0xf] %vm880_vm0, %v1023_v25  ;;  %v793_v30 = vmax.f32 %v764_v26, 0.0  ;;  %v649_v31 = vadd.f32 %v1104_v27, %v1531_v16  ;;  %v1187_v33 = vpop.f32.mrf.mxu1 }
 0x139   :  { %v1106_v34 = vpop.f32.mrf.mxu0 }
 0x13a   :  { %v1024_v35 = vpack.c.bf16 %v793_v30, %v793_v30  ;;  %v769_v36 = vadd.f32 %v1186_v32, %v649_v31  ;;  %v1188_v37 = vpop.f32.mrf.mxu1 }
 0x13c   :  { %900 = vst.msk [vmem:[%s1640_s3 + $0x4c] sm:$0xf] %vm880_vm0, %v1024_v35  ;;  %v794_v38 = vmax.f32 %v769_v36, 0.0 }
 0x13e   :  { %v1025_v39 = vpack.c.bf16 %v794_v38, %v794_v38 }
 0x140   :  { %902 = vst.msk [vmem:[%s1640_s3 + $0x50] sm:$0x1] %vm901_vm1, %v1025_v39 }

// kernel: dqn_forward.6
= control target key start
LH: loop header
LB: loop body
LE: loop exit
PB: predicated region body
PF: predicated region fallthrough
CT: control target
= control target key end

     0   :  { %v1248_v34 = vmov 0.0   ;;  %vm1249_vm0 = vmmov 0   ;;  %vm516_vm1 = vcmask 523264   ;;  %vm868_vm2 = vcmask 519168   ;;  %s1647_s1 = inlined_call_operand.vmem [shape: bf16[576,64], index: 1, kind: input, shape index: {}]   ;;  %s1648_s0 = inlined_call_operand.vmem [shape: bf16[98,576], index: 0, kind: input, shape index: {}]   ;;  %s1649_s2 = inlined_call_operand.vmem [shape: f32[1,64], index: 2, kind: input, shape index: {}]   ;;  %s1650_s3 = inlined_call_operand.vmem [shape: bf16[98,64], index: 3, kind: output, shape index: {}]  }
   0x1   :  { %v1165_v0 = vld [vmem:[%s1647_s1 + $0x78] sm:$0xff]   ;;  %v1169_v4 = vld [vmem:[%s1647_s1 + $0x70] sm:$0xff]   ;;  %v1173_v8 = vld [vmem:[%s1647_s1 + $0x68] sm:$0xff]   ;;  %vm881_vm3 = vcmask 516096  }
   0x2   :  { %v1166_v1 = vld [vmem:[%s1647_s1 + $0xf8] sm:$0xff]   ;;  %992 = vmatprep.subr.bf16.mxu0 %v1165_v0  ;;  %v1170_v5 = vld [vmem:[%s1647_s1 + $0xf0] sm:$0xff]   ;;  %v1174_v9 = vld [vmem:[%s1647_s1 + $0xe8] sm:$0xff]  }
   0x3   :  { %v1167_v2 = vld [vmem:[%s1647_s1 + $0x38] sm:$0xff]   ;;  %1050 = vmatprep.subr.bf16.mxu1 %v1166_v1  ;;  %v1171_v6 = vld [vmem:[%s1647_s1 + $0x30] sm:$0xff]   ;;  %v1175_v10 = vld [vmem:[%s1647_s1 + $0x28] sm:$0xff]  }
   0x4   :  { %v1168_v3 = vld [vmem:[%s1647_s1 + $0xb8] sm:$0xff]   ;;  %993 = vmatpush3.bf16.msra.mxu0 %v1167_v2  ;;  %v1172_v7 = vld [vmem:[%s1647_s1 + $0xb0] sm:$0xff]   ;;  %v1176_v11 = vld [vmem:[%s1647_s1 + $0xa8] sm:$0xff]  }
   0x5   :  { %1051 = vmatpush3.bf16.msra.mxu1 %v1168_v3  ;;  %994 = vmatprep.subr.bf16.mxu0 %v1169_v4  ;;  %v1177_v12 = vld [vmem:[%s1647_s1 + $0x60] sm:$0xff]   ;;  %v1181_v16 = vld [vmem:[%s1647_s1 + $0x58] sm:$0xff]   ;;  %v1185_v20 = vld [vmem:[%s1647_s1 + $0x50] sm:$0xff]  }
   0x6   :  { %1052 = vmatprep.subr.bf16.mxu1 %v1170_v5  ;;  %v1178_v13 = vld [vmem:[%s1647_s1 + $0xe0] sm:$0xff]   ;;  %v1182_v17 = vld [vmem:[%s1647_s1 + $0xd8] sm:$0xff]   ;;  %v1186_v21 = vld [vmem:[%s1647_s1 + $0xd0] sm:$0xff]  }
   0x7   :  { %v1179_v14 = vld [vmem:[%s1647_s1 + $0x20] sm:$0xff]   ;;  %v1183_v18 = vld [vmem:[%s1647_s1 + $0x18] sm:$0xff]   ;;  %v1187_v22 = vld [vmem:[%s1647_s1 + $0x10] sm:$0xff]  }
   0x8   :  { %995 = vmatpush3.bf16.msra.mxu0 %v1171_v6  ;;  %v1180_v15 = vld [vmem:[%s1647_s1 + $0xa0] sm:$0xff]   ;;  %v1184_v19 = vld [vmem:[%s1647_s1 + $0x98] sm:$0xff]   ;;  %v1188_v23 = vld [vmem:[%s1647_s1 + $0x90] sm:$0xff]  }
   0x9   :  { %1053 = vmatpush3.bf16.msra.mxu1 %v1172_v7  ;;  %996 = vmatprep.subr.bf16.mxu0 %v1173_v8  ;;  %v1189_v24 = vld [vmem:[%s1647_s1 + $0x48] sm:$0xff]   ;;  %v1193_v28 = vld [vmem:[%s1647_s1 + $0x40] sm:$0xff]   ;;  %v1203_v37 = vld [vmem:[%s1647_s1 + $0x118] sm:$0xff]  }
   0xa   :  { %1054 = vmatprep.subr.bf16.mxu1 %v1174_v9  ;;  %v1190_v25 = vld [vmem:[%s1647_s1 + $0xc8] sm:$0xff]   ;;  %v1194_v29 = vld [vmem:[%s1647_s1 + $0xc0] sm:$0xff]   ;;  %v1214_v43 = vld [vmem:[%s1647_s1 + $0x110] sm:$0xff]  }
   0xb   :  { %v1191_v26 = vld [vmem:[%s1647_s1 + $0x8] sm:$0xff]   ;;  %v1195_v30 = vld [vmem:[%s1647_s1] sm:$0xff]   ;;  %v1212_v44 = vld [vmem:[%s1648_s0 + $0x5c] ss:$20 sps:$4 sm:$0xff]  }
   0xc   :  { %997 = vmatpush3.bf16.msra.mxu0 %v1175_v10  ;;  %v1192_v27 = vld [vmem:[%s1647_s1 + $0x88] sm:$0xff]   ;;  %v1196_v31 = vld [vmem:[%s1647_s1 + $0x80] sm:$0xff]   ;;  %v1217_v48 = vld [vmem:[%s1648_s0 + $0x7c] ss:$20 sps:$4 sm:$0xff]  }
   0xd   :  { %1055 = vmatpush3.bf16.msra.mxu1 %v1176_v11  ;;  %998 = vmatprep.subr.bf16.mxu0 %v1177_v12  ;;  %v1197_v32 = vld [vmem:[%s1648_s0] ss:$20 sps:$4 sm:$0xff]   ;;  %v1199_v33 = vld [vmem:[%s1648_s0 + $0x4] ss:$20 sps:$4 sm:$0xff]   ;;  %v1200_v35 = vld [vmem:[%s1648_s0 + $0x8] ss:$20 sps:$4 sm:$0xff]  }
   0xe   :  { %1056 = vmatprep.subr.bf16.mxu1 %v1178_v13  ;;  %v1202_v36 = vld [vmem:[%s1648_s0 + $0xc] ss:$20 sps:$4 sm:$0xff]   ;;  %570 = vmatprep.mubr.bf16.mxu0 %v1199_v33  ;;  %v1206_v39 = vld [vmem:[%s1648_s0 + $0x34] ss:$20 sps:$4 sm:$0xff]   ;;  %v1209_v41 = vld [vmem:[%s1648_s0 + $0x30] ss:$20 sps:$4 sm:$0xff]  }
   0xf   :  { %658 = vmatprep.mubr.bf16.mxu1 %v1202_v36  ;;  %v1204_v38 = vld [vmem:[%s1648_s0 + $0x2c] ss:$20 sps:$4 sm:$0xff]   ;;  %v1208_v40 = vld [vmem:[%s1648_s0 + $0x28] ss:$20 sps:$4 sm:$0xff]   ;;  %v1215_v46 = vld [vmem:[%s1648_s0 + $0x50] ss:$20 sps:$4 sm:$0xff]  }
  0x10   :  { %999 = vmatpush3.bf16.msra.mxu0 %v1179_v14  ;;  %v1210_v42 = vld [vmem:[%s1648_s0 + $0x54] ss:$20 sps:$4 sm:$0xff]   ;;  %v1216_v47 = vld [vmem:[%s1648_s0 + $0x58] ss:$20 sps:$4 sm:$0xff]   ;;  %v1236_v50 = vld [vmem:[%s1647_s1 + $0x100] sm:$0xff]  }
  0x11   :  { %1057 = vmatpush3.bf16.msra.mxu1 %v1180_v15  ;;  %1000 = vmatprep.subr.bf16.mxu0 %v1181_v16  ;;  %v1223_v45 = vld [vmem:[%s1647_s1 + $0x108] sm:$0xff]   ;;  %v1219_v49 = vld [vmem:[%s1648_s0 + $0x84] ss:$20 sps:$4 sm:$0xff]   ;;  %v1222_v52 = vld [vmem:[%s1648_s0 + $0x80] ss:$20 sps:$4 sm:$0xff]  }
  0x12   :  { %1058 = vmatprep.subr.bf16.mxu1 %v1182_v17  ;;  %v1221_v51 = vld [vmem:[%s1648_s0 + $0x78] ss:$20 sps:$4 sm:$0xff]   ;;  %v1228_v55 = vld [vmem:[%s1648_s0 + $0xa0] ss:$20 sps:$4 sm:$0xff]   ;;  %v1229_v56 = vld [vmem:[%s1648_s0 + $0xa8] ss:$20 sps:$4 sm:$0xff]  }
  0x13   :  { %v1224_v53 = vld [vmem:[%s1648_s0 + $0xa4] ss:$20 sps:$4 sm:$0xff]   ;;  %v1226_v54 = vld [vmem:[%s1648_s0 + $0xac] ss:$20 sps:$4 sm:$0xff]   ;;  %v1232_v58 = vld [vmem:[%s1648_s0 + $0xd4] ss:$20 sps:$4 sm:$0xff]  }
  0x14   :  { %1001 = vmatpush3.bf16.msra.mxu0 %v1183_v18  ;;  %v1230_v57 = vld [vmem:[%s1648_s0 + $0xcc] ss:$20 sps:$4 sm:$0xff]   ;;  %v51_v59 = vld [vmem:[%s1648_s0 + $0xf0] sm:$0x11]  ;;  %v52_v60 = vld [vmem:[%s1648_s0 + $0xf8] sm:$0x11] }
  0x15   :  { %1059 = vmatpush3.bf16.msra.mxu1 %v1184_v19  ;;  %1002 = vmatprep.subr.bf16.mxu0 %v1185_v20  ;;  %v1234_v61 = vld [vmem:[%s1648_s0 + $0xc8] ss:$20 sps:$4 sm:$0xff]   ;;  %v1235_v62 = vld [vmem:[%s1648_s0 + $0xd0] ss:$20 sps:$4 sm:$0xff]   ;;  %v919_v63 = vcombine.high %v51_v59, %v51_v59  ;;  %v921_v0 = vcombine.high %v52_v60, %v52_v60  ;;  %v918_v1 = vcombine.low %v51_v59, %v51_v59  ;;  %v1243_v5 = vld [vmem:[%s1648_s0 + $0x38] ss:$20 sps:$4 sm:$0xff]  }
  0x16   :  { %1060 = vmatprep.subr.bf16.mxu1 %v1186_v21  ;;  %v920_v2 = vcombine.low %v52_v60, %v52_v60  ;;  %v1241_v3 = vld [vmem:[%s1648_s0 + $0x10] ss:$20 sps:$4 sm:$0xff]   ;;  %v1244_v6 = vld [vmem:[%s1648_s0 + $0xd8] ss:$20 sps:$4 sm:$0xff]   ;;  %v1245_v7 = vld [vmem:[%s1648_s0 + $0x60] ss:$20 sps:$4 sm:$0xff]  }
  0x17   :  { %v1242_v4 = vld [vmem:[%s1648_s0 + $0xb0] ss:$20 sps:$4 sm:$0xff]   ;;  %v1246_v8 = vld [vmem:[%s1648_s0 + $0x100] ss:$0 sps:$4 sm:$0x11]  }
  0x18   :  { %1003 = vmatpush3.bf16.msra.mxu0 %v1187_v22  ;;  %v1247_v9 = vld [vmem:[%s1648_s0 + $0x88] ss:$20 sps:$4 sm:$0xff]   ;;  %v1553_v59 = vld [vmem:[%s1649_s2] ss:$0 sm:$0xff] }
  0x19   :  { %1061 = vmatpush3.bf16.msra.mxu1 %v1188_v23  ;;  %1004 = vmatprep.subr.bf16.mxu0 %v1189_v24 }
  0x1a   :  { %1062 = vmatprep.subr.bf16.mxu1 %v1190_v25 }
  0x1c   :  { %1005 = vmatpush3.bf16.msra.mxu0 %v1191_v26 }
  0x1d   :  { %1063 = vmatpush3.bf16.msra.mxu1 %v1192_v27  ;;  %1006 = vmatprep.subr.bf16.mxu0 %v1193_v28 }
  0x1e   :  { %1064 = vmatprep.subr.bf16.mxu1 %v1194_v29 }
  0x20   :  { %1007 = vmatpush3.bf16.msra.mxu0 %v1195_v30 }
  0x21   :  { %1065 = vmatpush3.bf16.msra.mxu1 %v1196_v31  ;;  %1119 = vmatprep.subr.bf16.mxu0 %v1248_v34 }
  0x22   :  { %1155 = vmatprep.subr.bf16.mxu1 %v1248_v34 }
  0x23   :  { %571 = vmatmul.mubr.bf16.vlgmr.msra.gmra.mxu0 %v1197_v32 }
  0x24   :  { %659 = vmatmul.mubr.bf16.vlgmr.msra.gmra.mxu1 %v1200_v35  ;;  %1120 = vmatpush3.bf16.msra.mxu0 %v1203_v37 }
  0x25   :  { %578 = vmatprep.mubr.bf16.mxu0 %v1204_v38  ;;  %1159 = vmatpush3.bf16.msra.mxu1 %v1203_v37 }
  0x26   :  { %666 = vmatprep.mubr.bf16.mxu1 %v1206_v39  ;;  %1121 = vmatprep.subr.bf16.mxu0 %v1248_v34 }
  0x27   :  { %1156 = vmatprep.subr.bf16.mxu1 %v1248_v34 }
  0x28   :  { %1122 = vmatpush3.bf16.msra.mxu0 %v1214_v43 }
  0x29   :  { %1160 = vmatpush3.bf16.msra.mxu1 %v1214_v43  ;;  %1123 = vmatprep.subr.bf16.mxu0 %v1248_v34 }
  0x2a   :  { %1157 = vmatprep.subr.bf16.mxu1 %v1248_v34 }
  0x2b   :  { %579 = vmatmul.mubr.bf16.gmra.mxu0 %v1208_v40 }
  0x2c   :  { %667 = vmatmul.mubr.bf16.gmra.mxu1 %v1209_v41  ;;  %586 = vmatprep.mubr.bf16.mxu0 %v1210_v42 }
  0x2d   :  { %674 = vmatprep.mubr.bf16.mxu1 %v1212_v44  ;;  %1124 = vmatpush3.bf16.msra.mxu0 %v1223_v45 }
  0x2e   :  { %1161 = vmatpush3.bf16.msra.mxu1 %v1223_v45  ;;  %1125 = vmatprep.subr.bf16.mxu0 %v1248_v34 }
  0x2f   :  { %1158 = vmatprep.subr.bf16.mxu1 %v1248_v34 }
  0x31   :  { %1126 = vmatpush3.bf16.msra.mxu0 %v1236_v50 }
  0x32   :  { %1162 = vmatpush3.bf16.msra.mxu1 %v1236_v50 }
  0x33   :  { %587 = vmatmul.mubr.bf16.gmra.mxu0 %v1215_v46 }
  0x34   :  { %675 = vmatmul.mubr.bf16.gmra.mxu1 %v1216_v47  ;;  %594 = vmatprep.mubr.bf16.mxu0 %v1217_v48 }
  0x35   :  { %682 = vmatprep.mubr.bf16.mxu1 %v1219_v49 }
  0x3b   :  { %595 = vmatmul.mubr.bf16.gmra.mxu0 %v1221_v51 }
  0x3c   :  { %683 = vmatmul.mubr.bf16.gmra.mxu1 %v1222_v52  ;;  %602 = vmatprep.mubr.bf16.mxu0 %v1224_v53 }
  0x3d   :  { %690 = vmatprep.mubr.bf16.mxu1 %v1226_v54 }
  0x43   :  { %603 = vmatmul.mubr.bf16.gmra.mxu0 %v1228_v55 }
  0x44   :  { %691 = vmatmul.mubr.bf16.gmra.mxu1 %v1229_v56  ;;  %610 = vmatprep.mubr.bf16.mxu0 %v1230_v57 }
  0x45   :  { %698 = vmatprep.mubr.bf16.mxu1 %v1232_v58 }
  0x4b   :  { %611 = vmatmul.mubr.bf16.gmra.mxu0 %v1234_v61 }
  0x4c   :  { %699 = vmatmul.mubr.bf16.gmra.mxu1 %v1235_v62  ;;  %618 = vmatprep.mubr.bf16.mxu0 %v919_v63 }
  0x4d   :  { %706 = vmatprep.mubr.bf16.mxu1 %v921_v0 }
  0x53   :  { %619 = vmatmul.mubr.bf16.gmra.mxu0 %v918_v1 }
  0x54   :  { %707 = vmatmul.mubr.bf16.gmra.mxu1 %v920_v2  ;;  %1127 = vmatprep.mubr.msk.bf16.mxu0 %vm1249_vm0, %v1248_v34 }
  0x55   :  { %1143 = vmatprep.mubr.msk.bf16.mxu1 %vm1249_vm0, %v1248_v34 }
  0x5b   :  { %1128 = vmatmul.mubr.msk.bf16.vlgmr.msra.gmra.mxu0 %vm516_vm1, %v1241_v3 }
  0x5c   :  { %1144 = vmatmul.mubr.msk.bf16.vlgmr.msra.gmra.mxu1 %vm516_vm1, %v1242_v4  ;;  %1131 = vmatprep.mubr.msk.bf16.mxu0 %vm1249_vm0, %v1248_v34 }
  0x5d   :  { %1147 = vmatprep.mubr.msk.bf16.mxu1 %vm1249_vm0, %v1248_v34 }
  0x63   :  { %1132 = vmatmul.mubr.msk.bf16.gmra.mxu0 %vm516_vm1, %v1243_v5 }
  0x64   :  { %1148 = vmatmul.mubr.msk.bf16.gmra.mxu1 %vm516_vm1, %v1244_v6  ;;  %1135 = vmatprep.mubr.msk.bf16.mxu0 %vm1249_vm0, %v1248_v34 }
  0x65   :  { %1151 = vmatprep.mubr.msk.bf16.mxu1 %vm1249_vm0, %v1248_v34 }
  0x6b   :  { %1136 = vmatmul.mubr.msk.bf16.gmra.mxu0 %vm516_vm1, %v1245_v7 }
  0x6c   :  { %1152 = vmatmul.mubr.msk.bf16.gmra.mxu1 %vm516_vm1, %v1246_v8  ;;  %1139 = vmatprep.mubr.msk.bf16.mxu0 %vm1249_vm0, %v1248_v34 }
  0x73   :  { %1140 = vmatmul.mubr.msk.bf16.gmra.mxu0 %vm516_vm1, %v1247_v9 }
  0xe3   :  { %v1008_v10 = vpop.f32.mrf.mxu0 }
  0xe4   :  { %v1066_v11 = vpop.f32.mrf.mxu1 }
  0xe5   :  { %v1009_v12 = vpop.f32.mrf.mxu0 }
  0xe6   :  { %v1067_v13 = vpop.f32.mrf.mxu1  ;;  %v1010_v57 = vadd.f32 %v1009_v12, %v1008_v10 }
  0xe7   :  { %v1011_v14 = vpop.f32.mrf.mxu0  ;;  %v1068_v2 = vadd.f32 %v1067_v13, %v1066_v11 }
  0xe8   :  { %v1069_v15 = vpop.f32.mrf.mxu1  ;;  %v573_v1 = vadd.f32 %v1010_v57, %v1553_v59 }
  0xe9   :  { %v1012_v16 = vpop.f32.mrf.mxu0 }
  0xea   :  { %v1070_v17 = vpop.f32.mrf.mxu1  ;;  %v1013_v63 = vadd.f32 %v1012_v16, %v1011_v14  ;;  %v661_v14 = vadd.f32 %v1068_v2, %v573_v1 }
  0xeb   :  { %v1014_v18 = vpop.f32.mrf.mxu0  ;;  %v1071_v10 = vadd.f32 %v1070_v17, %v1069_v15 }
  0xec   :  { %v1506_v19 = vpop.f32.mrf.mxu1  ;;  %v576_v9 = vadd.f32 %v1013_v63, %v1553_v59 }
  0xed   :  { %v1015_v20 = vpop.f32.mrf.mxu0 }
  0xee   :  { %v1508_v21 = vpop.f32.mrf.mxu1  ;;  %v1016_v12 = vadd.f32 %v1015_v20, %v1014_v18  ;;  %v664_v15 = vadd.f32 %v1071_v10, %v576_v9 }
  0xef   :  { %v1510_v22 = vpop.f32.mrf.mxu0 }
  0xf0   :  { %v1512_v23 = vpop.f32.mrf.mxu1 }
  0xf1   :  { %v1514_v24 = vpop.f32.mrf.mxu0 }
  0xf2   :  { %v1516_v25 = vpop.f32.mrf.mxu1  ;;  %v1019_v17 = vadd.f32 %v1514_v24, %v1510_v22 }
  0xf3   :  { %v1518_v26 = vpop.f32.mrf.mxu0 }
  0xf4   :  { %v1520_v27 = vpop.f32.mrf.mxu1  ;;  %v584_v24 = vadd.f32 %v1019_v17, %v1553_v59 }
  0xf5   :  { %v1522_v28 = vpop.f32.mrf.mxu0 }
  0xf6   :  { %v1524_v29 = vpop.f32.mrf.mxu1 }
  0xf7   :  { %v1526_v30 = vpop.f32.mrf.mxu0 }
  0xf8   :  { %v1528_v31 = vpop.f32.mrf.mxu1 }
  0xf9   :  { %v1530_v32 = vpop.f32.mrf.mxu0 }
  0xfa   :  { %v1532_v33 = vpop.f32.mrf.mxu1 }
  0xfb   :  { %v1534_v34 = vpop.f32.mrf.mxu0 }
  0xfc   :  { %v1536_v35 = vpop.f32.mrf.mxu1 }
  0xfd   :  { %v1538_v36 = vpop.f32.mrf.mxu0 }
  0xfe   :  { %v1540_v37 = vpop.f32.mrf.mxu1 }
  0xff   :  { %v1542_v38 = vpop.f32.mrf.mxu0 }
 0x100   :  { %v1544_v39 = vpop.f32.mrf.mxu1 }
 0x101   :  { %1651 = vst [vmem:[#allocation2_spill] sm:$0xff] %v1544_v39  ;;  %v1546_v40 = vpop.f32.mrf.mxu0 }
 0x102   :  { %1652 = vst [vmem:[#allocation3_spill] sm:$0xff] %v1546_v40  ;;  %v1548_v41 = vpop.f32.mrf.mxu1 }
 0x103   :  { %1653 = vst [vmem:[#allocation4_spill] sm:$0xff] %v1548_v41  ;;  %v1032_v42 = vpop.f32.mrf.mxu0 }
 0x104   :  { %v1090_v43 = vpop.f32.mrf.mxu1 }
 0x105   :  { %v1033_v44 = vpop.f32.mrf.mxu0 }
 0x106   :  { %v1091_v45 = vpop.f32.mrf.mxu1  ;;  %v1034_v60 = vadd.f32 %v1033_v44, %v1032_v42 }
 0x107   :  { %v1035_v46 = vpop.f32.mrf.mxu0  ;;  %v1092_v5 = vadd.f32 %v1091_v45, %v1090_v43  ;;  %v581_v43 = vadd.f32 %v1016_v12, %v1553_v59  ;;  %v1074_v45 = vadd.f32 %v1508_v21, %v1506_v19  ;;  %v1077_v19 = vadd.f32 %v1516_v25, %v1512_v23 }
 0x108   :  { %v1093_v47 = vpop.f32.mrf.mxu1  ;;  %v605_v4 = vadd.f32 %v1034_v60, %v1553_v59 }
 0x109   :  { %v1036_v48 = vpop.f32.mrf.mxu0  ;;  %v669_v22 = vadd.f32 %v1074_v45, %v581_v43 }
 0x10a   :  { %v1094_v49 = vpop.f32.mrf.mxu1  ;;  %v1037_v6 = vadd.f32 %v1036_v48, %v1035_v46  ;;  %v693_v13 = vadd.f32 %v1092_v5, %v605_v4 }
 0x10b   :  { %v1038_v50 = vpop.f32.mrf.mxu0  ;;  %v1095_v57 = vadd.f32 %v1094_v49, %v1093_v47 }
 0x10c   :  { %v1096_v51 = vpop.f32.mrf.mxu1  ;;  %v608_v16 = vadd.f32 %v1037_v6, %v1553_v59 }
 0x10d   :  { %v1039_v52 = vpop.f32.mrf.mxu0 }
 0x10e   :  { %v1097_v53 = vpop.f32.mrf.mxu1  ;;  %v1040_v44 = vadd.f32 %v1039_v52, %v1038_v50  ;;  %v696_v60 = vadd.f32 %v1095_v57, %v608_v16 }
 0x10f   :  { %v1041_v54 = vpop.f32.mrf.mxu0  ;;  %v1098_v20 = vadd.f32 %v1097_v53, %v1096_v51 }
 0x110   :  { %v1099_v55 = vpop.f32.mrf.mxu1  ;;  %v613_v18 = vadd.f32 %v1040_v44, %v1553_v59 }
 0x111   :  { %v1042_v56 = vpop.f32.mrf.mxu0 }
 0x112   :  { %v1100_v58 = vpop.f32.mrf.mxu1  ;;  %v1043_v49 = vadd.f32 %v1042_v56, %v1041_v54  ;;  %v701_v54 = vadd.f32 %v1098_v20, %v613_v18 }
 0x113   :  { %v1044_v61 = vpop.f32.mrf.mxu0  ;;  %v1101_v23 = vadd.f32 %v1100_v58, %v1099_v55  ;;  %v1080_v55 = vadd.f32 %v1524_v29, %v1520_v27 }
 0x114   :  { %v1555_v62 = vpop.f32.mrf.mxu1  ;;  %v616_v56 = vadd.f32 %v1043_v49, %v1553_v59 }
 0x115   :  { %v1045_v0 = vpop.f32.mrf.mxu0 }
 0x116   :  { %v1558_v3 = vpop.f32.mrf.mxu1  ;;  %v1046_v25 = vadd.f32 %v1045_v0, %v1044_v61  ;;  %v672_v0 = vadd.f32 %v1077_v19, %v584_v24  ;;  %v704_v29 = vadd.f32 %v1101_v23, %v616_v56  ;;  %v1655_v24 = vld [vmem:[#allocation2_spill] sm:$0xff] }
 0x117   :  { %v1047_v7 = vpop.f32.mrf.mxu0 }
 0x118   :  { %v1105_v8 = vpop.f32.mrf.mxu1  ;;  %v621_v44 = vadd.f32 %v1046_v25, %v1553_v59 }
 0x119   :  { %v1048_v42 = vpop.f32.mrf.mxu0  ;;  %v1025_v8 = vadd.f32 %v1530_v32, %v1526_v30  ;;  %v1104_v30 = vadd.f32 %v1558_v3, %v1555_v62  ;;  %v1028_v62 = vadd.f32 %v1538_v36, %v1534_v34 }
 0x11a   :  { %v1106_v41 = vpop.f32.mrf.mxu1 }
 0x11b   :  { %v748_v11 = vpop.f32.mrf.mxu0  ;;  %v709_v17 = vadd.f32 %v1104_v30, %v621_v44 }
 0x11c   :  { %v749_v39 = vadd.f32 %v748_v11, %v661_v14  ;;  %v780_v40 = vpop.f32.mrf.mxu1  ;;  %v592_v11 = vadd.f32 %v1025_v8, %v1553_v59 }
 0x11d   :  { %v781_v46 = vadd.f32 %v780_v40, %v693_v13  ;;  %v1129_v48 = vpop.f32.mrf.mxu0  ;;  %v1083_v13 = vadd.f32 %v1532_v33, %v1528_v31 }
 0x11e   :  { %v802_v41 = vmax.f32 %v749_v39, 0.0  ;;  %v1145_v47 = vpop.f32.mrf.mxu1  ;;  %v1022_v39 = vadd.f32 %v1522_v28, %v1518_v26 }
 0x11f   :  { %v810_v50 = vmax.f32 %v781_v46, 0.0  ;;  %v751_v52 = vpop.f32.mrf.mxu0  ;;  %v680_v49 = vadd.f32 %v1083_v13, %v592_v11 }
 0x120   :  { %v979_v63 = vpack.c.bf16 %v802_v41, %v802_v41  ;;  %v752_v1 = vadd.f32 %v751_v52, %v664_v15  ;;  %v783_v2 = vpop.f32.mrf.mxu1  ;;  %v589_v42 = vadd.f32 %v1022_v39, %v1553_v59  ;;  %v1086_v52 = vadd.f32 %v1540_v37, %v1536_v35  ;;  %v1656_v39 = vld [vmem:[#allocation4_spill] sm:$0xff] }
 0x121   :  { %v987_v21 = vpack.c.bf16 %v810_v50, %v810_v50  ;;  %v784_v40 = vadd.f32 %v783_v2, %v696_v60  ;;  %v1130_v4 = vpop.f32.mrf.mxu0  ;;  %v597_v50 = vadd.f32 %v1028_v62, %v1553_v59  ;;  %v1654_v60 = vld [vmem:[#allocation3_spill] sm:$0xff] }
 0x122   :  { %869 = vst.msk [vmem:[%s1650_s3] sm:$0xf] %vm868_vm2, %v979_v63  ;;  %v803_v51 = vmax.f32 %v752_v1, 0.0  ;;  %v1146_v53 = vpop.f32.mrf.mxu1  ;;  %v677_v15 = vadd.f32 %v1080_v55, %v589_v42  ;;  %v1031_v63 = vadd.f32 %v1654_v60, %v1542_v38 }
 0x123   :  { %877 = vst.msk [vmem:[%s1650_s3 + $0x20] sm:$0xf] %vm868_vm2, %v987_v21  ;;  %v811_v5 = vmax.f32 %v784_v40, 0.0  ;;  %v756_v6 = vpop.f32.mrf.mxu0 }
 0x124   :  { %v980_v26 = vpack.c.bf16 %v803_v51, %v803_v51  ;;  %v757_v28 = vadd.f32 %v756_v6, %v669_v22  ;;  %v788_v7 = vpop.f32.mrf.mxu1  ;;  %v600_v22 = vadd.f32 %v1031_v63, %v1553_v59  ;;  %v1089_v51 = vadd.f32 %v1656_v39, %v1655_v24 }
 0x125   :  { %v988_v9 = vpack.c.bf16 %v811_v5, %v811_v5  ;;  %v789_v10 = vadd.f32 %v788_v7, %v701_v54  ;;  %v1133_v12 = vpop.f32.mrf.mxu0  ;;  %v685_v54 = vadd.f32 %v1086_v52, %v597_v50 }
 0x126   :  { %870 = vst.msk [vmem:[%s1650_s3 + $0x4] sm:$0xf] %vm868_vm2, %v980_v26  ;;  %v804_v58 = vmax.f32 %v757_v28, 0.0  ;;  %v1149_v61 = vpop.f32.mrf.mxu1  ;;  %v688_v26 = vadd.f32 %v1089_v51, %v600_v22 }
 0x127   :  { %878 = vst.msk [vmem:[%s1650_s3 + $0x24] sm:$0xf] %vm868_vm2, %v988_v9  ;;  %v812_v32 = vmax.f32 %v789_v10, 0.0  ;;  %v759_v27 = vpop.f32.mrf.mxu0 }
 0x128   :  { %v981_v14 = vpack.c.bf16 %v804_v58, %v804_v58  ;;  %v760_v16 = vadd.f32 %v759_v27, %v672_v0  ;;  %v791_v57 = vpop.f32.mrf.mxu1 }
 0x129   :  { %v989_v43 = vpack.c.bf16 %v812_v32, %v812_v32  ;;  %v792_v45 = vadd.f32 %v791_v57, %v704_v29  ;;  %v1134_v46 = vpop.f32.mrf.mxu0 }
 0x12a   :  { %871 = vst.msk [vmem:[%s1650_s3 + $0x8] sm:$0xf] %vm868_vm2, %v981_v14  ;;  %v805_v3 = vmax.f32 %v760_v16, 0.0  ;;  %v1150_v48 = vpop.f32.mrf.mxu1 }
 0x12b   :  { %879 = vst.msk [vmem:[%s1650_s3 + $0x28] sm:$0xf] %vm868_vm2, %v989_v43  ;;  %v813_v31 = vmax.f32 %v792_v45, 0.0  ;;  %v764_v33 = vpop.f32.mrf.mxu0 }
 0x12c   :  { %v982_v18 = vpack.c.bf16 %v805_v3, %v805_v3  ;;  %v765_v20 = vadd.f32 %v764_v33, %v677_v15  ;;  %v796_v41 = vpop.f32.mrf.mxu1 }
 0x12d   :  { %v990_v34 = vpack.c.bf16 %v813_v31, %v813_v31  ;;  %v797_v36 = vadd.f32 %v796_v41, %v709_v17  ;;  %v1137_v47 = vpop.f32.mrf.mxu0 }
 0x12e   :  { %872 = vst.msk [vmem:[%s1650_s3 + $0xc] sm:$0xf] %vm868_vm2, %v982_v18  ;;  %v806_v1 = vmax.f32 %v765_v20, 0.0  ;;  %v1153_v2 = vpop.f32.mrf.mxu1 }
 0x12f   :  { %880 = vst.msk [vmem:[%s1650_s3 + $0x2c] sm:$0xf] %vm868_vm2, %v990_v34  ;;  %v814_v19 = vmax.f32 %v797_v36, 0.0  ;;  %v767_v21 = vpop.f32.mrf.mxu0 }
 0x130   :  { %v983_v40 = vpack.c.bf16 %v806_v1, %v806_v1  ;;  %v768_v35 = vadd.f32 %v767_v21, %v680_v49  ;;  %v799_v37 = vpop.f32.mrf.mxu1 }
 0x131   :  { %v991_v4 = vpack.c.bf16 %v814_v19, %v814_v19  ;;  %v1138_v38 = vpop.f32.mrf.mxu0 }
 0x132   :  { %873 = vst.msk [vmem:[%s1650_s3 + $0x10] sm:$0xf] %vm868_vm2, %v983_v40  ;;  %v807_v53 = vmax.f32 %v768_v35, 0.0  ;;  %v1154_v56 = vpop.f32.mrf.mxu1 }
 0x133   :  { %882 = vst.msk [vmem:[%s1650_s3 + $0x30] sm:$0x1] %vm881_vm3, %v991_v4  ;;  %v772_v23 = vpop.f32.mrf.mxu0 }
 0x134   :  { %v984_v25 = vpack.c.bf16 %v807_v53, %v807_v53  ;;  %v773_v5 = vadd.f32 %v772_v23, %v685_v54 }
 0x135   :  { %v1141_v6 = vpop.f32.mrf.mxu0 }
 0x136   :  { %874 = vst.msk [vmem:[%s1650_s3 + $0x14] sm:$0xf] %vm868_vm2, %v984_v25  ;;  %v808_v59 = vmax.f32 %v773_v5, 0.0 }
 0x137   :  { %v775_v28 = vpop.f32.mrf.mxu0 }
 0x138   :  { %v985_v7 = vpack.c.bf16 %v808_v59, %v808_v59  ;;  %v776_v8 = vadd.f32 %v775_v28, %v688_v26 }
 0x139   :  { %v1142_v9 = vpop.f32.mrf.mxu0 }
 0x13a   :  { %875 = vst.msk [vmem:[%s1650_s3 + $0x18] sm:$0xf] %vm868_vm2, %v985_v7  ;;  %v809_v10 = vmax.f32 %v776_v8, 0.0 }
 0x13c   :  { %v986_v12 = vpack.c.bf16 %v809_v10, %v809_v10 }
 0x13e   :  { %876 = vst.msk [vmem:[%s1650_s3 + $0x1c] sm:$0xf] %vm868_vm2, %v986_v12 }

// kernel: dqn_forward.7
= control target key start
LH: loop header
LB: loop body
LE: loop exit
PB: predicated region body
PF: predicated region fallthrough
CT: control target
= control target key end

     0   :  { %10 = vsyncpa [#allocation5], 0  ;;  %s5305_s18 = smov 0   ;;  %s5307_s19 = smov 0   ;;  %s6464_s0 = inlined_call_operand.vmem [shape: bf16[2,3136], index: 0, kind: input, shape index: {}]   ;;  %s6465_s1 = inlined_call_operand.vmem [shape: bf16[3136,512], index: 1, kind: input, shape index: {}]   ;;  %s6466_s2 = inlined_call_operand.vmem [shape: f32[1,512], index: 2, kind: input, shape index: {}]   ;;  %s6467_s3 = inlined_call_operand.vmem [shape: bf16[512,128], index: 3, kind: input, shape index: {}]   ;;  %s6468_s4 = inlined_call_operand.vmem [shape: f32[1,128], index: 4, kind: input, shape index: {}]   ;;  %s6469_s5 = inlined_call_operand.hbm [shape: f32[2,128], index: 5, kind: output, shape index: {}]  }
   0x1   :  { %s5309_s20 = smov 0   ;;  %s5311_s21 = smov 0  }
   0x2   :  { %s5313_s22 = smov 0  }
   0x3 LB: > { %s4410_s23 = sadd.s32 4294967295, %s5268_s22   ;;  %s25_s24 = sadd.s32 1, %s5264_s21  ;;  %s5268_s22 = sphi %s5313_s22, %s16_s22   ;;  %s5264_s21 = sphi %s5311_s21, %s6474_s21   ;;  %s5260_s20 = sphi %s5309_s20, %s6473_s20   ;;  %s5256_s19 = sphi %s5307_s19, %s6472_s19   ;;  %s5252_s18 = sphi %s5305_s18, %s6471_s18  }
   0x4   : > { %p26_p0 = scmp.ge.s32.totalorder %s25_s24, 4  ;;  %p68_p1 = scmp.ne.s32.totalorder %s5256_s19, %s5252_s18 }
   0x5   : > { %p69_p2 = scmp.eq.s32.totalorder %s5268_s22, 0  ;;  %s61_s26 = sadd.s32 1, %s5256_s19 }
   0x6   : > { %s6476_s24 = smov (%p26_p0, %s25_s24), 0  ;;  %p4413_p5 = scmp.ge.s32.totalorder %s5268_s22, 4 }
   0x7   : > { %p70_p3 = por %p69_p2, %p68_p1  ;;  %s58_s25 = ssub.s32 %s5264_s21, %s6476_s24 }
   0x8   : > { %p59_p4 = scmp.eq.s32.totalorder %s58_s25, 0  ;;  %203 = sbr.rel (%p4413_p5) target bundleno = 278 (0x116), region = 24 }
   0xa   : > { %s5341_s27 = scalar_select %p59_p4, %s5256_s19, %s61_s26  }
   0xd   : > { %206 = sbr.rel (!%p70_p3) target bundleno = 278 (0x116), region = 28  ;;  %s208_s28 = sand.u32 (%p70_p3), 1, %s5256_s19  }
   0xe   : > { %s4414_s29 = sshll.u32 (%p70_p3), %s5264_s21, 2  ;;  %s4942_s30 = smul.u32 (%p70_p3), 1568, %s208_s28 }
   0xf   : > { %s5349_s8 = scalar_lea.vmem (%p70_p3), %s6465_s1, %s4414_s29 }
  0x10   : > { %v229_v0 = vld [vmem:[%s5349_s8] sm:$0xf] (%p70_p3)  ;;  %v231_v1 = vld [vmem:[%s5349_s8 + $0x10] sm:$0xf] (%p70_p3)  ;;  %s5356_s9 = scalar_lea.vmem (%p70_p3), [#allocation3], %s4942_s30 }
  0x11   : > { %v233_v2 = vld [vmem:[%s5349_s8 + $0x20] sm:$0xf] (%p70_p3)  ;;  %v235_v3 = vld [vmem:[%s5349_s8 + $0x30] sm:$0xf] (%p70_p3)  ;;  %230 = vst [vmem:[%s5356_s9] sm:$0xf] (%p70_p3), %v229_v0 }
  0x12   : > { %v237_v4 = vld [vmem:[%s5349_s8 + $0x40] sm:$0xf]  ;;  %232 = vst [vmem:[%s5356_s9 + $0x4] sm:$0xf] %v231_v1  ;;  %234 = vst [vmem:[%s5356_s9 + $0x8] sm:$0xf] %v233_v2 }
  0x13   : > { %236 = vst [vmem:[%s5356_s9 + $0xc] sm:$0xf] %v235_v3  ;;  %238 = vst [vmem:[%s5356_s9 + $0x10] sm:$0xf] %v237_v4  ;;  %v239_v5 = vld [vmem:[%s5349_s8 + $0x50] sm:$0xf] }
  0x14   : > { %v241_v6 = vld [vmem:[%s5349_s8 + $0x60] sm:$0xf]  ;;  %v243_v7 = vld [vmem:[%s5349_s8 + $0x70] sm:$0xf]  ;;  %240 = vst [vmem:[%s5356_s9 + $0x14] sm:$0xf] %v239_v5 }
  0x15   : > { %242 = vst [vmem:[%s5356_s9 + $0x18] sm:$0xf] %v241_v6  ;;  %244 = vst [vmem:[%s5356_s9 + $0x1c] sm:$0xf] %v243_v7  ;;  %v245_v8 = vld [vmem:[%s5349_s8 + $0x80] sm:$0xf] }
  0x16   : > { %v247_v9 = vld [vmem:[%s5349_s8 + $0x90] sm:$0xf]  ;;  %v249_v10 = vld [vmem:[%s5349_s8 + $0xa0] sm:$0xf]  ;;  %246 = vst [vmem:[%s5356_s9 + $0x20] sm:$0xf] %v245_v8 }
  0x17   : > { %248 = vst [vmem:[%s5356_s9 + $0x24] sm:$0xf] %v247_v9  ;;  %250 = vst [vmem:[%s5356_s9 + $0x28] sm:$0xf] %v249_v10  ;;  %v251_v11 = vld [vmem:[%s5349_s8 + $0xb0] sm:$0xf] }
  0x18   : > { %v253_v12 = vld [vmem:[%s5349_s8 + $0xc0] sm:$0xf]  ;;  %v255_v13 = vld [vmem:[%s5349_s8 + $0xd0] sm:$0xf]  ;;  %252 = vst [vmem:[%s5356_s9 + $0x2c] sm:$0xf] %v251_v11 }
  0x19   : > { %254 = vst [vmem:[%s5356_s9 + $0x30] sm:$0xf] %v253_v12  ;;  %256 = vst [vmem:[%s5356_s9 + $0x34] sm:$0xf] %v255_v13  ;;  %v257_v14 = vld [vmem:[%s5349_s8 + $0xe0] sm:$0xf] }
  0x1a   : > { %v259_v15 = vld [vmem:[%s5349_s8 + $0xf0] sm:$0xf]  ;;  %v261_v16 = vld [vmem:[%s5349_s8 + $0x100] sm:$0xf]  ;;  %258 = vst [vmem:[%s5356_s9 + $0x38] sm:$0xf] %v257_v14 }
  0x1b   : > { %260 = vst [vmem:[%s5356_s9 + $0x3c] sm:$0xf] %v259_v15  ;;  %262 = vst [vmem:[%s5356_s9 + $0x40] sm:$0xf] %v261_v16  ;;  %v263_v17 = vld [vmem:[%s5349_s8 + $0x110] sm:$0xf] }
  0x1c   : > { %v265_v18 = vld [vmem:[%s5349_s8 + $0x120] sm:$0xf]  ;;  %v267_v19 = vld [vmem:[%s5349_s8 + $0x130] sm:$0xf]  ;;  %264 = vst [vmem:[%s5356_s9 + $0x44] sm:$0xf] %v263_v17 }
  0x1d   : > { %266 = vst [vmem:[%s5356_s9 + $0x48] sm:$0xf] %v265_v18  ;;  %268 = vst [vmem:[%s5356_s9 + $0x4c] sm:$0xf] %v267_v19  ;;  %v269_v20 = vld [vmem:[%s5349_s8 + $0x140] sm:$0xf] }
  0x1e   : > { %v271_v21 = vld [vmem:[%s5349_s8 + $0x150] sm:$0xf]  ;;  %v273_v22 = vld [vmem:[%s5349_s8 + $0x160] sm:$0xf]  ;;  %270 = vst [vmem:[%s5356_s9 + $0x50] sm:$0xf] %v269_v20 }
  0x1f   : > { %272 = vst [vmem:[%s5356_s9 + $0x54] sm:$0xf] %v271_v21  ;;  %274 = vst [vmem:[%s5356_s9 + $0x58] sm:$0xf] %v273_v22  ;;  %v275_v23 = vld [vmem:[%s5349_s8 + $0x170] sm:$0xf] }
  0x20   : > { %v277_v24 = vld [vmem:[%s5349_s8 + $0x180] sm:$0xf]  ;;  %v279_v25 = vld [vmem:[%s5349_s8 + $0x190] sm:$0xf]  ;;  %276 = vst [vmem:[%s5356_s9 + $0x5c] sm:$0xf] %v275_v23 }
  0x21   : > { %278 = vst [vmem:[%s5356_s9 + $0x60] sm:$0xf] %v277_v24  ;;  %280 = vst [vmem:[%s5356_s9 + $0x64] sm:$0xf] %v279_v25  ;;  %v281_v26 = vld [vmem:[%s5349_s8 + $0x1a0] sm:$0xf] }
  0x22   : > { %v283_v27 = vld [vmem:[%s5349_s8 + $0x1b0] sm:$0xf]  ;;  %v285_v28 = vld [vmem:[%s5349_s8 + $0x1c0] sm:$0xf]  ;;  %282 = vst [vmem:[%s5356_s9 + $0x68] sm:$0xf] %v281_v26 }
  0x23   : > { %284 = vst [vmem:[%s5356_s9 + $0x6c] sm:$0xf] %v283_v27  ;;  %286 = vst [vmem:[%s5356_s9 + $0x70] sm:$0xf] %v285_v28  ;;  %v287_v29 = vld [vmem:[%s5349_s8 + $0x1d0] sm:$0xf] }
  0x24   : > { %v289_v30 = vld [vmem:[%s5349_s8 + $0x1e0] sm:$0xf]  ;;  %v291_v31 = vld [vmem:[%s5349_s8 + $0x1f0] sm:$0xf]  ;;  %288 = vst [vmem:[%s5356_s9 + $0x74] sm:$0xf] %v287_v29 }
  0x25   : > { %290 = vst [vmem:[%s5356_s9 + $0x78] sm:$0xf] %v289_v30  ;;  %292 = vst [vmem:[%s5356_s9 + $0x7c] sm:$0xf] %v291_v31  ;;  %v293_v32 = vld [vmem:[%s5349_s8 + $0x200] sm:$0xf] }
  0x26   : > { %v295_v33 = vld [vmem:[%s5349_s8 + $0x210] sm:$0xf]  ;;  %v297_v34 = vld [vmem:[%s5349_s8 + $0x220] sm:$0xf]  ;;  %294 = vst [vmem:[%s5356_s9 + $0x80] sm:$0xf] %v293_v32 }
  0x27   : > { %296 = vst [vmem:[%s5356_s9 + $0x84] sm:$0xf] %v295_v33  ;;  %298 = vst [vmem:[%s5356_s9 + $0x88] sm:$0xf] %v297_v34  ;;  %v299_v35 = vld [vmem:[%s5349_s8 + $0x230] sm:$0xf] }
  0x28   : > { %v301_v36 = vld [vmem:[%s5349_s8 + $0x240] sm:$0xf]  ;;  %v303_v37 = vld [vmem:[%s5349_s8 + $0x250] sm:$0xf]  ;;  %300 = vst [vmem:[%s5356_s9 + $0x8c] sm:$0xf] %v299_v35 }
  0x29   : > { %302 = vst [vmem:[%s5356_s9 + $0x90] sm:$0xf] %v301_v36  ;;  %304 = vst [vmem:[%s5356_s9 + $0x94] sm:$0xf] %v303_v37  ;;  %v305_v38 = vld [vmem:[%s5349_s8 + $0x260] sm:$0xf] }
  0x2a   : > { %v307_v39 = vld [vmem:[%s5349_s8 + $0x270] sm:$0xf]  ;;  %v309_v40 = vld [vmem:[%s5349_s8 + $0x280] sm:$0xf]  ;;  %306 = vst [vmem:[%s5356_s9 + $0x98] sm:$0xf] %v305_v38 }
  0x2b   : > { %308 = vst [vmem:[%s5356_s9 + $0x9c] sm:$0xf] %v307_v39  ;;  %310 = vst [vmem:[%s5356_s9 + $0xa0] sm:$0xf] %v309_v40  ;;  %v311_v41 = vld [vmem:[%s5349_s8 + $0x290] sm:$0xf] }
  0x2c   : > { %v313_v42 = vld [vmem:[%s5349_s8 + $0x2a0] sm:$0xf]  ;;  %v315_v43 = vld [vmem:[%s5349_s8 + $0x2b0] sm:$0xf]  ;;  %312 = vst [vmem:[%s5356_s9 + $0xa4] sm:$0xf] %v311_v41 }
  0x2d   : > { %314 = vst [vmem:[%s5356_s9 + $0xa8] sm:$0xf] %v313_v42  ;;  %316 = vst [vmem:[%s5356_s9 + $0xac] sm:$0xf] %v315_v43  ;;  %v317_v44 = vld [vmem:[%s5349_s8 + $0x2c0] sm:$0xf] }
  0x2e   : > { %v319_v45 = vld [vmem:[%s5349_s8 + $0x2d0] sm:$0xf]  ;;  %v321_v46 = vld [vmem:[%s5349_s8 + $0x2e0] sm:$0xf]  ;;  %318 = vst [vmem:[%s5356_s9 + $0xb0] sm:$0xf] %v317_v44 }
  0x2f   : > { %320 = vst [vmem:[%s5356_s9 + $0xb4] sm:$0xf] %v319_v45  ;;  %322 = vst [vmem:[%s5356_s9 + $0xb8] sm:$0xf] %v321_v46  ;;  %v323_v47 = vld [vmem:[%s5349_s8 + $0x2f0] sm:$0xf] }
  0x30   : > { %v325_v48 = vld [vmem:[%s5349_s8 + $0x300] sm:$0xf]  ;;  %v327_v49 = vld [vmem:[%s5349_s8 + $0x310] sm:$0xf]  ;;  %324 = vst [vmem:[%s5356_s9 + $0xbc] sm:$0xf] %v323_v47 }
  0x31   : > { %326 = vst [vmem:[%s5356_s9 + $0xc0] sm:$0xf] %v325_v48  ;;  %328 = vst [vmem:[%s5356_s9 + $0xc4] sm:$0xf] %v327_v49  ;;  %v329_v50 = vld [vmem:[%s5349_s8 + $0x320] sm:$0xf] }
  0x32   : > { %v331_v51 = vld [vmem:[%s5349_s8 + $0x330] sm:$0xf]  ;;  %v333_v52 = vld [vmem:[%s5349_s8 + $0x340] sm:$0xf]  ;;  %330 = vst [vmem:[%s5356_s9 + $0xc8] sm:$0xf] %v329_v50 }
  0x33   : > { %332 = vst [vmem:[%s5356_s9 + $0xcc] sm:$0xf] %v331_v51  ;;  %334 = vst [vmem:[%s5356_s9 + $0xd0] sm:$0xf] %v333_v52  ;;  %v335_v53 = vld [vmem:[%s5349_s8 + $0x350] sm:$0xf] }
  0x34   : > { %v337_v54 = vld [vmem:[%s5349_s8 + $0x360] sm:$0xf]  ;;  %v339_v55 = vld [vmem:[%s5349_s8 + $0x370] sm:$0xf]  ;;  %336 = vst [vmem:[%s5356_s9 + $0xd4] sm:$0xf] %v335_v53 }
  0x35   : > { %338 = vst [vmem:[%s5356_s9 + $0xd8] sm:$0xf] %v337_v54  ;;  %340 = vst [vmem:[%s5356_s9 + $0xdc] sm:$0xf] %v339_v55  ;;  %v341_v56 = vld [vmem:[%s5349_s8 + $0x380] sm:$0xf] }
  0x36   : > { %v343_v57 = vld [vmem:[%s5349_s8 + $0x390] sm:$0xf]  ;;  %v345_v58 = vld [vmem:[%s5349_s8 + $0x3a0] sm:$0xf]  ;;  %342 = vst [vmem:[%s5356_s9 + $0xe0] sm:$0xf] %v341_v56 }
  0x37   : > { %344 = vst [vmem:[%s5356_s9 + $0xe4] sm:$0xf] %v343_v57  ;;  %346 = vst [vmem:[%s5356_s9 + $0xe8] sm:$0xf] %v345_v58  ;;  %v347_v59 = vld [vmem:[%s5349_s8 + $0x3b0] sm:$0xf] }
  0x38   : > { %v349_v60 = vld [vmem:[%s5349_s8 + $0x3c0] sm:$0xf]  ;;  %v351_v61 = vld [vmem:[%s5349_s8 + $0x3d0] sm:$0xf]  ;;  %348 = vst [vmem:[%s5356_s9 + $0xec] sm:$0xf] %v347_v59 }
  0x39   : > { %350 = vst [vmem:[%s5356_s9 + $0xf0] sm:$0xf] %v349_v60  ;;  %352 = vst [vmem:[%s5356_s9 + $0xf4] sm:$0xf] %v351_v61  ;;  %v353_v62 = vld [vmem:[%s5349_s8 + $0x3e0] sm:$0xf] }
  0x3a   : > { %v355_v63 = vld [vmem:[%s5349_s8 + $0x3f0] sm:$0xf]  ;;  %v357_v0 = vld [vmem:[%s5349_s8 + $0x400] sm:$0xf]  ;;  %354 = vst [vmem:[%s5356_s9 + $0xf8] sm:$0xf] %v353_v62 }
  0x3b   : > { %356 = vst [vmem:[%s5356_s9 + $0xfc] sm:$0xf] %v355_v63  ;;  %358 = vst [vmem:[%s5356_s9 + $0x100] sm:$0xf] %v357_v0  ;;  %v359_v1 = vld [vmem:[%s5349_s8 + $0x410] sm:$0xf] }
  0x3c   : > { %v361_v2 = vld [vmem:[%s5349_s8 + $0x420] sm:$0xf]  ;;  %v363_v3 = vld [vmem:[%s5349_s8 + $0x430] sm:$0xf]  ;;  %360 = vst [vmem:[%s5356_s9 + $0x104] sm:$0xf] %v359_v1 }
  0x3d   : > { %362 = vst [vmem:[%s5356_s9 + $0x108] sm:$0xf] %v361_v2  ;;  %364 = vst [vmem:[%s5356_s9 + $0x10c] sm:$0xf] %v363_v3  ;;  %v365_v4 = vld [vmem:[%s5349_s8 + $0x440] sm:$0xf] }
  0x3e   : > { %v367_v5 = vld [vmem:[%s5349_s8 + $0x450] sm:$0xf]  ;;  %v369_v6 = vld [vmem:[%s5349_s8 + $0x460] sm:$0xf]  ;;  %366 = vst [vmem:[%s5356_s9 + $0x110] sm:$0xf] %v365_v4 }
  0x3f   : > { %368 = vst [vmem:[%s5356_s9 + $0x114] sm:$0xf] %v367_v5  ;;  %370 = vst [vmem:[%s5356_s9 + $0x118] sm:$0xf] %v369_v6  ;;  %v371_v7 = vld [vmem:[%s5349_s8 + $0x470] sm:$0xf] }
  0x40   : > { %v373_v8 = vld [vmem:[%s5349_s8 + $0x480] sm:$0xf]  ;;  %v375_v9 = vld [vmem:[%s5349_s8 + $0x490] sm:$0xf]  ;;  %372 = vst [vmem:[%s5356_s9 + $0x11c] sm:$0xf] %v371_v7 }
  0x41   : > { %374 = vst [vmem:[%s5356_s9 + $0x120] sm:$0xf] %v373_v8  ;;  %376 = vst [vmem:[%s5356_s9 + $0x124] sm:$0xf] %v375_v9  ;;  %v377_v10 = vld [vmem:[%s5349_s8 + $0x4a0] sm:$0xf] }
  0x42   : > { %v379_v11 = vld [vmem:[%s5349_s8 + $0x4b0] sm:$0xf]  ;;  %v381_v12 = vld [vmem:[%s5349_s8 + $0x4c0] sm:$0xf]  ;;  %378 = vst [vmem:[%s5356_s9 + $0x128] sm:$0xf] %v377_v10 }
  0x43   : > { %380 = vst [vmem:[%s5356_s9 + $0x12c] sm:$0xf] %v379_v11  ;;  %382 = vst [vmem:[%s5356_s9 + $0x130] sm:$0xf] %v381_v12  ;;  %v383_v13 = vld [vmem:[%s5349_s8 + $0x4d0] sm:$0xf] }
  0x44   : > { %v385_v14 = vld [vmem:[%s5349_s8 + $0x4e0] sm:$0xf]  ;;  %v387_v15 = vld [vmem:[%s5349_s8 + $0x4f0] sm:$0xf]  ;;  %384 = vst [vmem:[%s5356_s9 + $0x134] sm:$0xf] %v383_v13 }
  0x45   : > { %386 = vst [vmem:[%s5356_s9 + $0x138] sm:$0xf] %v385_v14  ;;  %388 = vst [vmem:[%s5356_s9 + $0x13c] sm:$0xf] %v387_v15  ;;  %v389_v16 = vld [vmem:[%s5349_s8 + $0x500] sm:$0xf] }
  0x46   : > { %v391_v17 = vld [vmem:[%s5349_s8 + $0x510] sm:$0xf]  ;;  %v393_v18 = vld [vmem:[%s5349_s8 + $0x520] sm:$0xf]  ;;  %390 = vst [vmem:[%s5356_s9 + $0x140] sm:$0xf] %v389_v16 }
  0x47   : > { %392 = vst [vmem:[%s5356_s9 + $0x144] sm:$0xf] %v391_v17  ;;  %394 = vst [vmem:[%s5356_s9 + $0x148] sm:$0xf] %v393_v18  ;;  %v395_v19 = vld [vmem:[%s5349_s8 + $0x530] sm:$0xf] }
  0x48   : > { %v397_v20 = vld [vmem:[%s5349_s8 + $0x540] sm:$0xf]  ;;  %v399_v21 = vld [vmem:[%s5349_s8 + $0x550] sm:$0xf]  ;;  %396 = vst [vmem:[%s5356_s9 + $0x14c] sm:$0xf] %v395_v19 }
  0x49   : > { %398 = vst [vmem:[%s5356_s9 + $0x150] sm:$0xf] %v397_v20  ;;  %400 = vst [vmem:[%s5356_s9 + $0x154] sm:$0xf] %v399_v21  ;;  %v401_v22 = vld [vmem:[%s5349_s8 + $0x560] sm:$0xf] }
  0x4a   : > { %v403_v23 = vld [vmem:[%s5349_s8 + $0x570] sm:$0xf]  ;;  %v405_v24 = vld [vmem:[%s5349_s8 + $0x580] sm:$0xf]  ;;  %402 = vst [vmem:[%s5356_s9 + $0x158] sm:$0xf] %v401_v22 }
  0x4b   : > { %404 = vst [vmem:[%s5356_s9 + $0x15c] sm:$0xf] %v403_v23  ;;  %406 = vst [vmem:[%s5356_s9 + $0x160] sm:$0xf] %v405_v24  ;;  %v407_v25 = vld [vmem:[%s5349_s8 + $0x590] sm:$0xf] }
  0x4c   : > { %v409_v26 = vld [vmem:[%s5349_s8 + $0x5a0] sm:$0xf]  ;;  %v411_v27 = vld [vmem:[%s5349_s8 + $0x5b0] sm:$0xf]  ;;  %408 = vst [vmem:[%s5356_s9 + $0x164] sm:$0xf] %v407_v25 }
  0x4d   : > { %410 = vst [vmem:[%s5356_s9 + $0x168] sm:$0xf] %v409_v26  ;;  %412 = vst [vmem:[%s5356_s9 + $0x16c] sm:$0xf] %v411_v27  ;;  %v413_v28 = vld [vmem:[%s5349_s8 + $0x5c0] sm:$0xf] }
  0x4e   : > { %v415_v29 = vld [vmem:[%s5349_s8 + $0x5d0] sm:$0xf]  ;;  %v417_v30 = vld [vmem:[%s5349_s8 + $0x5e0] sm:$0xf]  ;;  %414 = vst [vmem:[%s5356_s9 + $0x170] sm:$0xf] %v413_v28 }
  0x4f   : > { %416 = vst [vmem:[%s5356_s9 + $0x174] sm:$0xf] %v415_v29  ;;  %418 = vst [vmem:[%s5356_s9 + $0x178] sm:$0xf] %v417_v30  ;;  %v419_v31 = vld [vmem:[%s5349_s8 + $0x5f0] sm:$0xf] }
  0x50   : > { %v421_v32 = vld [vmem:[%s5349_s8 + $0x600] sm:$0xf]  ;;  %v423_v33 = vld [vmem:[%s5349_s8 + $0x610] sm:$0xf]  ;;  %420 = vst [vmem:[%s5356_s9 + $0x17c] sm:$0xf] %v419_v31 }
  0x51   : > { %422 = vst [vmem:[%s5356_s9 + $0x180] sm:$0xf] %v421_v32  ;;  %424 = vst [vmem:[%s5356_s9 + $0x184] sm:$0xf] %v423_v33  ;;  %v425_v34 = vld [vmem:[%s5349_s8 + $0x620] sm:$0xf] }
  0x52   : > { %v427_v35 = vld [vmem:[%s5349_s8 + $0x630] sm:$0xf]  ;;  %v429_v36 = vld [vmem:[%s5349_s8 + $0x640] sm:$0xf]  ;;  %426 = vst [vmem:[%s5356_s9 + $0x188] sm:$0xf] %v425_v34 }
  0x53   : > { %428 = vst [vmem:[%s5356_s9 + $0x18c] sm:$0xf] %v427_v35  ;;  %430 = vst [vmem:[%s5356_s9 + $0x190] sm:$0xf] %v429_v36  ;;  %v431_v37 = vld [vmem:[%s5349_s8 + $0x650] sm:$0xf] }
  0x54   : > { %v433_v38 = vld [vmem:[%s5349_s8 + $0x660] sm:$0xf]  ;;  %v435_v39 = vld [vmem:[%s5349_s8 + $0x670] sm:$0xf]  ;;  %432 = vst [vmem:[%s5356_s9 + $0x194] sm:$0xf] %v431_v37 }
  0x55   : > { %434 = vst [vmem:[%s5356_s9 + $0x198] sm:$0xf] %v433_v38  ;;  %436 = vst [vmem:[%s5356_s9 + $0x19c] sm:$0xf] %v435_v39  ;;  %v437_v40 = vld [vmem:[%s5349_s8 + $0x680] sm:$0xf] }
  0x56   : > { %v439_v41 = vld [vmem:[%s5349_s8 + $0x690] sm:$0xf]  ;;  %v441_v42 = vld [vmem:[%s5349_s8 + $0x6a0] sm:$0xf]  ;;  %438 = vst [vmem:[%s5356_s9 + $0x1a0] sm:$0xf] %v437_v40 }
  0x57   : > { %440 = vst [vmem:[%s5356_s9 + $0x1a4] sm:$0xf] %v439_v41  ;;  %442 = vst [vmem:[%s5356_s9 + $0x1a8] sm:$0xf] %v441_v42  ;;  %v443_v43 = vld [vmem:[%s5349_s8 + $0x6b0] sm:$0xf] }
  0x58   : > { %v445_v44 = vld [vmem:[%s5349_s8 + $0x6c0] sm:$0xf]  ;;  %v447_v45 = vld [vmem:[%s5349_s8 + $0x6d0] sm:$0xf]  ;;  %444 = vst [vmem:[%s5356_s9 + $0x1ac] sm:$0xf] %v443_v43 }
  0x59   : > { %446 = vst [vmem:[%s5356_s9 + $0x1b0] sm:$0xf] %v445_v44  ;;  %448 = vst [vmem:[%s5356_s9 + $0x1b4] sm:$0xf] %v447_v45  ;;  %v449_v46 = vld [vmem:[%s5349_s8 + $0x6e0] sm:$0xf] }
  0x5a   : > { %v451_v47 = vld [vmem:[%s5349_s8 + $0x6f0] sm:$0xf]  ;;  %v453_v48 = vld [vmem:[%s5349_s8 + $0x700] sm:$0xf]  ;;  %450 = vst [vmem:[%s5356_s9 + $0x1b8] sm:$0xf] %v449_v46 }
  0x5b   : > { %452 = vst [vmem:[%s5356_s9 + $0x1bc] sm:$0xf] %v451_v47  ;;  %454 = vst [vmem:[%s5356_s9 + $0x1c0] sm:$0xf] %v453_v48  ;;  %v455_v49 = vld [vmem:[%s5349_s8 + $0x710] sm:$0xf] }
  0x5c   : > { %v457_v50 = vld [vmem:[%s5349_s8 + $0x720] sm:$0xf]  ;;  %v459_v51 = vld [vmem:[%s5349_s8 + $0x730] sm:$0xf]  ;;  %456 = vst [vmem:[%s5356_s9 + $0x1c4] sm:$0xf] %v455_v49 }
  0x5d   : > { %458 = vst [vmem:[%s5356_s9 + $0x1c8] sm:$0xf] %v457_v50  ;;  %460 = vst [vmem:[%s5356_s9 + $0x1cc] sm:$0xf] %v459_v51  ;;  %v461_v52 = vld [vmem:[%s5349_s8 + $0x740] sm:$0xf] }
  0x5e   : > { %v463_v53 = vld [vmem:[%s5349_s8 + $0x750] sm:$0xf]  ;;  %v465_v54 = vld [vmem:[%s5349_s8 + $0x760] sm:$0xf]  ;;  %462 = vst [vmem:[%s5356_s9 + $0x1d0] sm:$0xf] %v461_v52 }
  0x5f   : > { %464 = vst [vmem:[%s5356_s9 + $0x1d4] sm:$0xf] %v463_v53  ;;  %466 = vst [vmem:[%s5356_s9 + $0x1d8] sm:$0xf] %v465_v54  ;;  %v467_v55 = vld [vmem:[%s5349_s8 + $0x770] sm:$0xf] }
  0x60   : > { %v469_v56 = vld [vmem:[%s5349_s8 + $0x780] sm:$0xf]  ;;  %v471_v57 = vld [vmem:[%s5349_s8 + $0x790] sm:$0xf]  ;;  %468 = vst [vmem:[%s5356_s9 + $0x1dc] sm:$0xf] %v467_v55 }
  0x61   : > { %470 = vst [vmem:[%s5356_s9 + $0x1e0] sm:$0xf] %v469_v56  ;;  %472 = vst [vmem:[%s5356_s9 + $0x1e4] sm:$0xf] %v471_v57  ;;  %v473_v58 = vld [vmem:[%s5349_s8 + $0x7a0] sm:$0xf] }
  0x62   : > { %v475_v59 = vld [vmem:[%s5349_s8 + $0x7b0] sm:$0xf]  ;;  %v477_v60 = vld [vmem:[%s5349_s8 + $0x7c0] sm:$0xf]  ;;  %474 = vst [vmem:[%s5356_s9 + $0x1e8] sm:$0xf] %v473_v58 }
  0x63   : > { %476 = vst [vmem:[%s5356_s9 + $0x1ec] sm:$0xf] %v475_v59  ;;  %478 = vst [vmem:[%s5356_s9 + $0x1f0] sm:$0xf] %v477_v60  ;;  %v479_v61 = vld [vmem:[%s5349_s8 + $0x7d0] sm:$0xf] }
  0x64   : > { %v481_v62 = vld [vmem:[%s5349_s8 + $0x7e0] sm:$0xf]  ;;  %v483_v63 = vld [vmem:[%s5349_s8 + $0x7f0] sm:$0xf]  ;;  %480 = vst [vmem:[%s5356_s9 + $0x1f4] sm:$0xf] %v479_v61 }
  0x65   : > { %482 = vst [vmem:[%s5356_s9 + $0x1f8] sm:$0xf] %v481_v62  ;;  %484 = vst [vmem:[%s5356_s9 + $0x1fc] sm:$0xf] %v483_v63  ;;  %v485_v0 = vld [vmem:[%s5349_s8 + $0x800] sm:$0xf] }
  0x66   : > { %v487_v1 = vld [vmem:[%s5349_s8 + $0x810] sm:$0xf]  ;;  %v489_v2 = vld [vmem:[%s5349_s8 + $0x820] sm:$0xf]  ;;  %486 = vst [vmem:[%s5356_s9 + $0x200] sm:$0xf] %v485_v0 }
  0x67   : > { %488 = vst [vmem:[%s5356_s9 + $0x204] sm:$0xf] %v487_v1  ;;  %490 = vst [vmem:[%s5356_s9 + $0x208] sm:$0xf] %v489_v2  ;;  %v491_v3 = vld [vmem:[%s5349_s8 + $0x830] sm:$0xf] }
  0x68   : > { %v493_v4 = vld [vmem:[%s5349_s8 + $0x840] sm:$0xf]  ;;  %v495_v5 = vld [vmem:[%s5349_s8 + $0x850] sm:$0xf]  ;;  %492 = vst [vmem:[%s5356_s9 + $0x20c] sm:$0xf] %v491_v3 }
  0x69   : > { %494 = vst [vmem:[%s5356_s9 + $0x210] sm:$0xf] %v493_v4  ;;  %496 = vst [vmem:[%s5356_s9 + $0x214] sm:$0xf] %v495_v5  ;;  %v497_v6 = vld [vmem:[%s5349_s8 + $0x860] sm:$0xf] }
  0x6a   : > { %v499_v7 = vld [vmem:[%s5349_s8 + $0x870] sm:$0xf]  ;;  %v501_v8 = vld [vmem:[%s5349_s8 + $0x880] sm:$0xf]  ;;  %498 = vst [vmem:[%s5356_s9 + $0x218] sm:$0xf] %v497_v6 }
  0x6b   : > { %500 = vst [vmem:[%s5356_s9 + $0x21c] sm:$0xf] %v499_v7  ;;  %502 = vst [vmem:[%s5356_s9 + $0x220] sm:$0xf] %v501_v8  ;;  %v503_v9 = vld [vmem:[%s5349_s8 + $0x890] sm:$0xf] }
  0x6c   : > { %v505_v10 = vld [vmem:[%s5349_s8 + $0x8a0] sm:$0xf]  ;;  %v507_v11 = vld [vmem:[%s5349_s8 + $0x8b0] sm:$0xf]  ;;  %504 = vst [vmem:[%s5356_s9 + $0x224] sm:$0xf] %v503_v9 }
  0x6d   : > { %506 = vst [vmem:[%s5356_s9 + $0x228] sm:$0xf] %v505_v10  ;;  %508 = vst [vmem:[%s5356_s9 + $0x22c] sm:$0xf] %v507_v11  ;;  %v509_v12 = vld [vmem:[%s5349_s8 + $0x8c0] sm:$0xf] }
  0x6e   : > { %v511_v13 = vld [vmem:[%s5349_s8 + $0x8d0] sm:$0xf]  ;;  %v513_v14 = vld [vmem:[%s5349_s8 + $0x8e0] sm:$0xf]  ;;  %510 = vst [vmem:[%s5356_s9 + $0x230] sm:$0xf] %v509_v12 }
  0x6f   : > { %512 = vst [vmem:[%s5356_s9 + $0x234] sm:$0xf] %v511_v13  ;;  %514 = vst [vmem:[%s5356_s9 + $0x238] sm:$0xf] %v513_v14  ;;  %v515_v15 = vld [vmem:[%s5349_s8 + $0x8f0] sm:$0xf] }
  0x70   : > { %v517_v16 = vld [vmem:[%s5349_s8 + $0x900] sm:$0xf]  ;;  %v519_v17 = vld [vmem:[%s5349_s8 + $0x910] sm:$0xf]  ;;  %516 = vst [vmem:[%s5356_s9 + $0x23c] sm:$0xf] %v515_v15 }
  0x71   : > { %518 = vst [vmem:[%s5356_s9 + $0x240] sm:$0xf] %v517_v16  ;;  %520 = vst [vmem:[%s5356_s9 + $0x244] sm:$0xf] %v519_v17  ;;  %v521_v18 = vld [vmem:[%s5349_s8 + $0x920] sm:$0xf] }
  0x72   : > { %v523_v19 = vld [vmem:[%s5349_s8 + $0x930] sm:$0xf]  ;;  %v525_v20 = vld [vmem:[%s5349_s8 + $0x940] sm:$0xf]  ;;  %522 = vst [vmem:[%s5356_s9 + $0x248] sm:$0xf] %v521_v18 }
  0x73   : > { %524 = vst [vmem:[%s5356_s9 + $0x24c] sm:$0xf] %v523_v19  ;;  %526 = vst [vmem:[%s5356_s9 + $0x250] sm:$0xf] %v525_v20  ;;  %v527_v21 = vld [vmem:[%s5349_s8 + $0x950] sm:$0xf] }
  0x74   : > { %v529_v22 = vld [vmem:[%s5349_s8 + $0x960] sm:$0xf]  ;;  %v531_v23 = vld [vmem:[%s5349_s8 + $0x970] sm:$0xf]  ;;  %528 = vst [vmem:[%s5356_s9 + $0x254] sm:$0xf] %v527_v21 }
  0x75   : > { %530 = vst [vmem:[%s5356_s9 + $0x258] sm:$0xf] %v529_v22  ;;  %532 = vst [vmem:[%s5356_s9 + $0x25c] sm:$0xf] %v531_v23  ;;  %v533_v24 = vld [vmem:[%s5349_s8 + $0x980] sm:$0xf] }
  0x76   : > { %v535_v25 = vld [vmem:[%s5349_s8 + $0x990] sm:$0xf]  ;;  %v537_v26 = vld [vmem:[%s5349_s8 + $0x9a0] sm:$0xf]  ;;  %534 = vst [vmem:[%s5356_s9 + $0x260] sm:$0xf] %v533_v24 }
  0x77   : > { %536 = vst [vmem:[%s5356_s9 + $0x264] sm:$0xf] %v535_v25  ;;  %538 = vst [vmem:[%s5356_s9 + $0x268] sm:$0xf] %v537_v26  ;;  %v539_v27 = vld [vmem:[%s5349_s8 + $0x9b0] sm:$0xf] }
  0x78   : > { %v541_v28 = vld [vmem:[%s5349_s8 + $0x9c0] sm:$0xf]  ;;  %v543_v29 = vld [vmem:[%s5349_s8 + $0x9d0] sm:$0xf]  ;;  %540 = vst [vmem:[%s5356_s9 + $0x26c] sm:$0xf] %v539_v27 }
  0x79   : > { %542 = vst [vmem:[%s5356_s9 + $0x270] sm:$0xf] %v541_v28  ;;  %544 = vst [vmem:[%s5356_s9 + $0x274] sm:$0xf] %v543_v29  ;;  %v545_v30 = vld [vmem:[%s5349_s8 + $0x9e0] sm:$0xf] }
  0x7a   : > { %v547_v31 = vld [vmem:[%s5349_s8 + $0x9f0] sm:$0xf]  ;;  %v549_v32 = vld [vmem:[%s5349_s8 + $0xa00] sm:$0xf]  ;;  %546 = vst [vmem:[%s5356_s9 + $0x278] sm:$0xf] %v545_v30 }
  0x7b   : > { %548 = vst [vmem:[%s5356_s9 + $0x27c] sm:$0xf] %v547_v31  ;;  %550 = vst [vmem:[%s5356_s9 + $0x280] sm:$0xf] %v549_v32  ;;  %v551_v33 = vld [vmem:[%s5349_s8 + $0xa10] sm:$0xf] }
  0x7c   : > { %v553_v34 = vld [vmem:[%s5349_s8 + $0xa20] sm:$0xf]  ;;  %v555_v35 = vld [vmem:[%s5349_s8 + $0xa30] sm:$0xf]  ;;  %552 = vst [vmem:[%s5356_s9 + $0x284] sm:$0xf] %v551_v33 }
  0x7d   : > { %554 = vst [vmem:[%s5356_s9 + $0x288] sm:$0xf] %v553_v34  ;;  %556 = vst [vmem:[%s5356_s9 + $0x28c] sm:$0xf] %v555_v35  ;;  %v557_v36 = vld [vmem:[%s5349_s8 + $0xa40] sm:$0xf] }
  0x7e   : > { %v559_v37 = vld [vmem:[%s5349_s8 + $0xa50] sm:$0xf]  ;;  %v561_v38 = vld [vmem:[%s5349_s8 + $0xa60] sm:$0xf]  ;;  %558 = vst [vmem:[%s5356_s9 + $0x290] sm:$0xf] %v557_v36 }
  0x7f   : > { %560 = vst [vmem:[%s5356_s9 + $0x294] sm:$0xf] %v559_v37  ;;  %562 = vst [vmem:[%s5356_s9 + $0x298] sm:$0xf] %v561_v38  ;;  %v563_v39 = vld [vmem:[%s5349_s8 + $0xa70] sm:$0xf] }
  0x80   : > { %v565_v40 = vld [vmem:[%s5349_s8 + $0xa80] sm:$0xf]  ;;  %v567_v41 = vld [vmem:[%s5349_s8 + $0xa90] sm:$0xf]  ;;  %564 = vst [vmem:[%s5356_s9 + $0x29c] sm:$0xf] %v563_v39 }
  0x81   : > { %566 = vst [vmem:[%s5356_s9 + $0x2a0] sm:$0xf] %v565_v40  ;;  %568 = vst [vmem:[%s5356_s9 + $0x2a4] sm:$0xf] %v567_v41  ;;  %v569_v42 = vld [vmem:[%s5349_s8 + $0xaa0] sm:$0xf] }
  0x82   : > { %v571_v43 = vld [vmem:[%s5349_s8 + $0xab0] sm:$0xf]  ;;  %v573_v44 = vld [vmem:[%s5349_s8 + $0xac0] sm:$0xf]  ;;  %570 = vst [vmem:[%s5356_s9 + $0x2a8] sm:$0xf] %v569_v42 }
  0x83   : > { %572 = vst [vmem:[%s5356_s9 + $0x2ac] sm:$0xf] %v571_v43  ;;  %574 = vst [vmem:[%s5356_s9 + $0x2b0] sm:$0xf] %v573_v44  ;;  %v575_v45 = vld [vmem:[%s5349_s8 + $0xad0] sm:$0xf] }
  0x84   : > { %v577_v46 = vld [vmem:[%s5349_s8 + $0xae0] sm:$0xf]  ;;  %v579_v47 = vld [vmem:[%s5349_s8 + $0xaf0] sm:$0xf]  ;;  %576 = vst [vmem:[%s5356_s9 + $0x2b4] sm:$0xf] %v575_v45 }
  0x85   : > { %578 = vst [vmem:[%s5356_s9 + $0x2b8] sm:$0xf] %v577_v46  ;;  %580 = vst [vmem:[%s5356_s9 + $0x2bc] sm:$0xf] %v579_v47  ;;  %v581_v48 = vld [vmem:[%s5349_s8 + $0xb00] sm:$0xf] }
  0x86   : > { %v583_v49 = vld [vmem:[%s5349_s8 + $0xb10] sm:$0xf]  ;;  %v585_v50 = vld [vmem:[%s5349_s8 + $0xb20] sm:$0xf]  ;;  %582 = vst [vmem:[%s5356_s9 + $0x2c0] sm:$0xf] %v581_v48 }
  0x87   : > { %584 = vst [vmem:[%s5356_s9 + $0x2c4] sm:$0xf] %v583_v49  ;;  %586 = vst [vmem:[%s5356_s9 + $0x2c8] sm:$0xf] %v585_v50  ;;  %v587_v51 = vld [vmem:[%s5349_s8 + $0xb30] sm:$0xf] }
  0x88   : > { %v589_v52 = vld [vmem:[%s5349_s8 + $0xb40] sm:$0xf]  ;;  %v591_v53 = vld [vmem:[%s5349_s8 + $0xb50] sm:$0xf]  ;;  %588 = vst [vmem:[%s5356_s9 + $0x2cc] sm:$0xf] %v587_v51 }
  0x89   : > { %590 = vst [vmem:[%s5356_s9 + $0x2d0] sm:$0xf] %v589_v52  ;;  %592 = vst [vmem:[%s5356_s9 + $0x2d4] sm:$0xf] %v591_v53  ;;  %v593_v54 = vld [vmem:[%s5349_s8 + $0xb60] sm:$0xf] }
  0x8a   : > { %v595_v55 = vld [vmem:[%s5349_s8 + $0xb70] sm:$0xf]  ;;  %v597_v56 = vld [vmem:[%s5349_s8 + $0xb80] sm:$0xf]  ;;  %594 = vst [vmem:[%s5356_s9 + $0x2d8] sm:$0xf] %v593_v54 }
  0x8b   : > { %596 = vst [vmem:[%s5356_s9 + $0x2dc] sm:$0xf] %v595_v55  ;;  %598 = vst [vmem:[%s5356_s9 + $0x2e0] sm:$0xf] %v597_v56  ;;  %v599_v57 = vld [vmem:[%s5349_s8 + $0xb90] sm:$0xf] }
  0x8c   : > { %v601_v58 = vld [vmem:[%s5349_s8 + $0xba0] sm:$0xf]  ;;  %v603_v59 = vld [vmem:[%s5349_s8 + $0xbb0] sm:$0xf]  ;;  %600 = vst [vmem:[%s5356_s9 + $0x2e4] sm:$0xf] %v599_v57 }
  0x8d   : > { %602 = vst [vmem:[%s5356_s9 + $0x2e8] sm:$0xf] %v601_v58  ;;  %604 = vst [vmem:[%s5356_s9 + $0x2ec] sm:$0xf] %v603_v59  ;;  %v605_v60 = vld [vmem:[%s5349_s8 + $0xbc0] sm:$0xf] }
  0x8e   : > { %v607_v61 = vld [vmem:[%s5349_s8 + $0xbd0] sm:$0xf]  ;;  %v609_v62 = vld [vmem:[%s5349_s8 + $0xbe0] sm:$0xf]  ;;  %606 = vst [vmem:[%s5356_s9 + $0x2f0] sm:$0xf] %v605_v60 }
  0x8f   : > { %608 = vst [vmem:[%s5356_s9 + $0x2f4] sm:$0xf] %v607_v61  ;;  %610 = vst [vmem:[%s5356_s9 + $0x2f8] sm:$0xf] %v609_v62  ;;  %v611_v63 = vld [vmem:[%s5349_s8 + $0xbf0] sm:$0xf] }
  0x90   : > { %v613_v0 = vld [vmem:[%s5349_s8 + $0xc00] sm:$0xf]  ;;  %v615_v1 = vld [vmem:[%s5349_s8 + $0xc10] sm:$0xf]  ;;  %612 = vst [vmem:[%s5356_s9 + $0x2fc] sm:$0xf] %v611_v63 }
  0x91   : > { %614 = vst [vmem:[%s5356_s9 + $0x300] sm:$0xf] %v613_v0  ;;  %616 = vst [vmem:[%s5356_s9 + $0x304] sm:$0xf] %v615_v1  ;;  %v617_v2 = vld [vmem:[%s5349_s8 + $0xc20] sm:$0xf] }
  0x92   : > { %v619_v3 = vld [vmem:[%s5349_s8 + $0xc30] sm:$0xf]  ;;  %v621_v4 = vld [vmem:[%s5349_s8 + $0xc40] sm:$0xf]  ;;  %618 = vst [vmem:[%s5356_s9 + $0x308] sm:$0xf] %v617_v2 }
  0x93   : > { %620 = vst [vmem:[%s5356_s9 + $0x30c] sm:$0xf] %v619_v3  ;;  %622 = vst [vmem:[%s5356_s9 + $0x310] sm:$0xf] %v621_v4  ;;  %v623_v5 = vld [vmem:[%s5349_s8 + $0xc50] sm:$0xf] }
  0x94   : > { %v625_v6 = vld [vmem:[%s5349_s8 + $0xc60] sm:$0xf]  ;;  %v627_v7 = vld [vmem:[%s5349_s8 + $0xc70] sm:$0xf]  ;;  %624 = vst [vmem:[%s5356_s9 + $0x314] sm:$0xf] %v623_v5 }
  0x95   : > { %626 = vst [vmem:[%s5356_s9 + $0x318] sm:$0xf] %v625_v6  ;;  %628 = vst [vmem:[%s5356_s9 + $0x31c] sm:$0xf] %v627_v7  ;;  %v629_v8 = vld [vmem:[%s5349_s8 + $0xc80] sm:$0xf] }
  0x96   : > { %v631_v9 = vld [vmem:[%s5349_s8 + $0xc90] sm:$0xf]  ;;  %v633_v10 = vld [vmem:[%s5349_s8 + $0xca0] sm:$0xf]  ;;  %630 = vst [vmem:[%s5356_s9 + $0x320] sm:$0xf] %v629_v8 }
  0x97   : > { %632 = vst [vmem:[%s5356_s9 + $0x324] sm:$0xf] %v631_v9  ;;  %634 = vst [vmem:[%s5356_s9 + $0x328] sm:$0xf] %v633_v10  ;;  %v635_v11 = vld [vmem:[%s5349_s8 + $0xcb0] sm:$0xf] }
  0x98   : > { %v637_v12 = vld [vmem:[%s5349_s8 + $0xcc0] sm:$0xf]  ;;  %v639_v13 = vld [vmem:[%s5349_s8 + $0xcd0] sm:$0xf]  ;;  %636 = vst [vmem:[%s5356_s9 + $0x32c] sm:$0xf] %v635_v11 }
  0x99   : > { %638 = vst [vmem:[%s5356_s9 + $0x330] sm:$0xf] %v637_v12  ;;  %640 = vst [vmem:[%s5356_s9 + $0x334] sm:$0xf] %v639_v13  ;;  %v641_v14 = vld [vmem:[%s5349_s8 + $0xce0] sm:$0xf] }
  0x9a   : > { %v643_v15 = vld [vmem:[%s5349_s8 + $0xcf0] sm:$0xf]  ;;  %v645_v16 = vld [vmem:[%s5349_s8 + $0xd00] sm:$0xf]  ;;  %642 = vst [vmem:[%s5356_s9 + $0x338] sm:$0xf] %v641_v14 }
  0x9b   : > { %644 = vst [vmem:[%s5356_s9 + $0x33c] sm:$0xf] %v643_v15  ;;  %646 = vst [vmem:[%s5356_s9 + $0x340] sm:$0xf] %v645_v16  ;;  %v647_v17 = vld [vmem:[%s5349_s8 + $0xd10] sm:$0xf] }
  0x9c   : > { %v649_v18 = vld [vmem:[%s5349_s8 + $0xd20] sm:$0xf]  ;;  %v651_v19 = vld [vmem:[%s5349_s8 + $0xd30] sm:$0xf]  ;;  %648 = vst [vmem:[%s5356_s9 + $0x344] sm:$0xf] %v647_v17 }
  0x9d   : > { %650 = vst [vmem:[%s5356_s9 + $0x348] sm:$0xf] %v649_v18  ;;  %652 = vst [vmem:[%s5356_s9 + $0x34c] sm:$0xf] %v651_v19  ;;  %v653_v20 = vld [vmem:[%s5349_s8 + $0xd40] sm:$0xf] }
  0x9e   : > { %v655_v21 = vld [vmem:[%s5349_s8 + $0xd50] sm:$0xf]  ;;  %v657_v22 = vld [vmem:[%s5349_s8 + $0xd60] sm:$0xf]  ;;  %654 = vst [vmem:[%s5356_s9 + $0x350] sm:$0xf] %v653_v20 }
  0x9f   : > { %656 = vst [vmem:[%s5356_s9 + $0x354] sm:$0xf] %v655_v21  ;;  %658 = vst [vmem:[%s5356_s9 + $0x358] sm:$0xf] %v657_v22  ;;  %v659_v23 = vld [vmem:[%s5349_s8 + $0xd70] sm:$0xf] }
  0xa0   : > { %v661_v24 = vld [vmem:[%s5349_s8 + $0xd80] sm:$0xf]  ;;  %v663_v25 = vld [vmem:[%s5349_s8 + $0xd90] sm:$0xf]  ;;  %660 = vst [vmem:[%s5356_s9 + $0x35c] sm:$0xf] %v659_v23 }
  0xa1   : > { %662 = vst [vmem:[%s5356_s9 + $0x360] sm:$0xf] %v661_v24  ;;  %664 = vst [vmem:[%s5356_s9 + $0x364] sm:$0xf] %v663_v25  ;;  %v665_v26 = vld [vmem:[%s5349_s8 + $0xda0] sm:$0xf] }
  0xa2   : > { %v667_v27 = vld [vmem:[%s5349_s8 + $0xdb0] sm:$0xf]  ;;  %v669_v28 = vld [vmem:[%s5349_s8 + $0xdc0] sm:$0xf]  ;;  %666 = vst [vmem:[%s5356_s9 + $0x368] sm:$0xf] %v665_v26 }
  0xa3   : > { %668 = vst [vmem:[%s5356_s9 + $0x36c] sm:$0xf] %v667_v27  ;;  %670 = vst [vmem:[%s5356_s9 + $0x370] sm:$0xf] %v669_v28  ;;  %v671_v29 = vld [vmem:[%s5349_s8 + $0xdd0] sm:$0xf] }
  0xa4   : > { %v673_v30 = vld [vmem:[%s5349_s8 + $0xde0] sm:$0xf]  ;;  %v675_v31 = vld [vmem:[%s5349_s8 + $0xdf0] sm:$0xf]  ;;  %672 = vst [vmem:[%s5356_s9 + $0x374] sm:$0xf] %v671_v29 }
  0xa5   : > { %674 = vst [vmem:[%s5356_s9 + $0x378] sm:$0xf] %v673_v30  ;;  %676 = vst [vmem:[%s5356_s9 + $0x37c] sm:$0xf] %v675_v31  ;;  %v677_v32 = vld [vmem:[%s5349_s8 + $0xe00] sm:$0xf] }
  0xa6   : > { %v679_v33 = vld [vmem:[%s5349_s8 + $0xe10] sm:$0xf]  ;;  %v681_v34 = vld [vmem:[%s5349_s8 + $0xe20] sm:$0xf]  ;;  %678 = vst [vmem:[%s5356_s9 + $0x380] sm:$0xf] %v677_v32 }
  0xa7   : > { %680 = vst [vmem:[%s5356_s9 + $0x384] sm:$0xf] %v679_v33  ;;  %682 = vst [vmem:[%s5356_s9 + $0x388] sm:$0xf] %v681_v34  ;;  %v683_v35 = vld [vmem:[%s5349_s8 + $0xe30] sm:$0xf] }
  0xa8   : > { %v685_v36 = vld [vmem:[%s5349_s8 + $0xe40] sm:$0xf]  ;;  %v687_v37 = vld [vmem:[%s5349_s8 + $0xe50] sm:$0xf]  ;;  %684 = vst [vmem:[%s5356_s9 + $0x38c] sm:$0xf] %v683_v35 }
  0xa9   : > { %686 = vst [vmem:[%s5356_s9 + $0x390] sm:$0xf] %v685_v36  ;;  %688 = vst [vmem:[%s5356_s9 + $0x394] sm:$0xf] %v687_v37  ;;  %v689_v38 = vld [vmem:[%s5349_s8 + $0xe60] sm:$0xf] }
  0xaa   : > { %v691_v39 = vld [vmem:[%s5349_s8 + $0xe70] sm:$0xf]  ;;  %v693_v40 = vld [vmem:[%s5349_s8 + $0xe80] sm:$0xf]  ;;  %690 = vst [vmem:[%s5356_s9 + $0x398] sm:$0xf] %v689_v38 }
  0xab   : > { %692 = vst [vmem:[%s5356_s9 + $0x39c] sm:$0xf] %v691_v39  ;;  %694 = vst [vmem:[%s5356_s9 + $0x3a0] sm:$0xf] %v693_v40  ;;  %v695_v41 = vld [vmem:[%s5349_s8 + $0xe90] sm:$0xf] }
  0xac   : > { %v697_v42 = vld [vmem:[%s5349_s8 + $0xea0] sm:$0xf]  ;;  %v699_v43 = vld [vmem:[%s5349_s8 + $0xeb0] sm:$0xf]  ;;  %696 = vst [vmem:[%s5356_s9 + $0x3a4] sm:$0xf] %v695_v41 }
  0xad   : > { %698 = vst [vmem:[%s5356_s9 + $0x3a8] sm:$0xf] %v697_v42  ;;  %700 = vst [vmem:[%s5356_s9 + $0x3ac] sm:$0xf] %v699_v43  ;;  %v701_v44 = vld [vmem:[%s5349_s8 + $0xec0] sm:$0xf] }
  0xae   : > { %v703_v45 = vld [vmem:[%s5349_s8 + $0xed0] sm:$0xf]  ;;  %v705_v46 = vld [vmem:[%s5349_s8 + $0xee0] sm:$0xf]  ;;  %702 = vst [vmem:[%s5356_s9 + $0x3b0] sm:$0xf] %v701_v44 }
  0xaf   : > { %704 = vst [vmem:[%s5356_s9 + $0x3b4] sm:$0xf] %v703_v45  ;;  %706 = vst [vmem:[%s5356_s9 + $0x3b8] sm:$0xf] %v705_v46  ;;  %v707_v47 = vld [vmem:[%s5349_s8 + $0xef0] sm:$0xf] }
  0xb0   : > { %v709_v48 = vld [vmem:[%s5349_s8 + $0xf00] sm:$0xf]  ;;  %v711_v49 = vld [vmem:[%s5349_s8 + $0xf10] sm:$0xf]  ;;  %708 = vst [vmem:[%s5356_s9 + $0x3bc] sm:$0xf] %v707_v47 }
  0xb1   : > { %710 = vst [vmem:[%s5356_s9 + $0x3c0] sm:$0xf] %v709_v48  ;;  %712 = vst [vmem:[%s5356_s9 + $0x3c4] sm:$0xf] %v711_v49  ;;  %v713_v50 = vld [vmem:[%s5349_s8 + $0xf20] sm:$0xf] }
  0xb2   : > { %v715_v51 = vld [vmem:[%s5349_s8 + $0xf30] sm:$0xf]  ;;  %v717_v52 = vld [vmem:[%s5349_s8 + $0xf40] sm:$0xf]  ;;  %714 = vst [vmem:[%s5356_s9 + $0x3c8] sm:$0xf] %v713_v50 }
  0xb3   : > { %716 = vst [vmem:[%s5356_s9 + $0x3cc] sm:$0xf] %v715_v51  ;;  %718 = vst [vmem:[%s5356_s9 + $0x3d0] sm:$0xf] %v717_v52  ;;  %v719_v53 = vld [vmem:[%s5349_s8 + $0xf50] sm:$0xf] }
  0xb4   : > { %v721_v54 = vld [vmem:[%s5349_s8 + $0xf60] sm:$0xf]  ;;  %v723_v55 = vld [vmem:[%s5349_s8 + $0xf70] sm:$0xf]  ;;  %720 = vst [vmem:[%s5356_s9 + $0x3d4] sm:$0xf] %v719_v53 }
  0xb5   : > { %722 = vst [vmem:[%s5356_s9 + $0x3d8] sm:$0xf] %v721_v54  ;;  %724 = vst [vmem:[%s5356_s9 + $0x3dc] sm:$0xf] %v723_v55  ;;  %v725_v56 = vld [vmem:[%s5349_s8 + $0xf80] sm:$0xf] }
  0xb6   : > { %v727_v57 = vld [vmem:[%s5349_s8 + $0xf90] sm:$0xf]  ;;  %v729_v58 = vld [vmem:[%s5349_s8 + $0xfa0] sm:$0xf]  ;;  %726 = vst [vmem:[%s5356_s9 + $0x3e0] sm:$0xf] %v725_v56 }
  0xb7   : > { %728 = vst [vmem:[%s5356_s9 + $0x3e4] sm:$0xf] %v727_v57  ;;  %730 = vst [vmem:[%s5356_s9 + $0x3e8] sm:$0xf] %v729_v58  ;;  %v731_v59 = vld [vmem:[%s5349_s8 + $0xfb0] sm:$0xf] }
  0xb8   : > { %v733_v60 = vld [vmem:[%s5349_s8 + $0xfc0] sm:$0xf]  ;;  %v735_v61 = vld [vmem:[%s5349_s8 + $0xfd0] sm:$0xf]  ;;  %732 = vst [vmem:[%s5356_s9 + $0x3ec] sm:$0xf] %v731_v59 }
  0xb9   : > { %734 = vst [vmem:[%s5356_s9 + $0x3f0] sm:$0xf] %v733_v60  ;;  %736 = vst [vmem:[%s5356_s9 + $0x3f4] sm:$0xf] %v735_v61  ;;  %v737_v62 = vld [vmem:[%s5349_s8 + $0xfe0] sm:$0xf] }
  0xba   : > { %v739_v63 = vld [vmem:[%s5349_s8 + $0xff0] sm:$0xf]  ;;  %v741_v0 = vld [vmem:[%s5349_s8 + $0x1000] sm:$0xf]  ;;  %738 = vst [vmem:[%s5356_s9 + $0x3f8] sm:$0xf] %v737_v62 }
  0xbb   : > { %740 = vst [vmem:[%s5356_s9 + $0x3fc] sm:$0xf] %v739_v63  ;;  %742 = vst [vmem:[%s5356_s9 + $0x400] sm:$0xf] %v741_v0  ;;  %v743_v1 = vld [vmem:[%s5349_s8 + $0x1010] sm:$0xf] }
  0xbc   : > { %v745_v2 = vld [vmem:[%s5349_s8 + $0x1020] sm:$0xf]  ;;  %v747_v3 = vld [vmem:[%s5349_s8 + $0x1030] sm:$0xf]  ;;  %744 = vst [vmem:[%s5356_s9 + $0x404] sm:$0xf] %v743_v1 }
  0xbd   : > { %746 = vst [vmem:[%s5356_s9 + $0x408] sm:$0xf] %v745_v2  ;;  %748 = vst [vmem:[%s5356_s9 + $0x40c] sm:$0xf] %v747_v3  ;;  %v749_v4 = vld [vmem:[%s5349_s8 + $0x1040] sm:$0xf] }
  0xbe   : > { %v751_v5 = vld [vmem:[%s5349_s8 + $0x1050] sm:$0xf]  ;;  %v753_v6 = vld [vmem:[%s5349_s8 + $0x1060] sm:$0xf]  ;;  %750 = vst [vmem:[%s5356_s9 + $0x410] sm:$0xf] %v749_v4 }
  0xbf   : > { %752 = vst [vmem:[%s5356_s9 + $0x414] sm:$0xf] %v751_v5  ;;  %754 = vst [vmem:[%s5356_s9 + $0x418] sm:$0xf] %v753_v6  ;;  %v755_v7 = vld [vmem:[%s5349_s8 + $0x1070] sm:$0xf] }
  0xc0   : > { %v757_v8 = vld [vmem:[%s5349_s8 + $0x1080] sm:$0xf]  ;;  %v759_v9 = vld [vmem:[%s5349_s8 + $0x1090] sm:$0xf]  ;;  %756 = vst [vmem:[%s5356_s9 + $0x41c] sm:$0xf] %v755_v7 }
  0xc1   : > { %758 = vst [vmem:[%s5356_s9 + $0x420] sm:$0xf] %v757_v8  ;;  %760 = vst [vmem:[%s5356_s9 + $0x424] sm:$0xf] %v759_v9  ;;  %v761_v10 = vld [vmem:[%s5349_s8 + $0x10a0] sm:$0xf] }
  0xc2   : > { %v763_v11 = vld [vmem:[%s5349_s8 + $0x10b0] sm:$0xf]  ;;  %v765_v12 = vld [vmem:[%s5349_s8 + $0x10c0] sm:$0xf]  ;;  %762 = vst [vmem:[%s5356_s9 + $0x428] sm:$0xf] %v761_v10 }
  0xc3   : > { %764 = vst [vmem:[%s5356_s9 + $0x42c] sm:$0xf] %v763_v11  ;;  %766 = vst [vmem:[%s5356_s9 + $0x430] sm:$0xf] %v765_v12  ;;  %v767_v13 = vld [vmem:[%s5349_s8 + $0x10d0] sm:$0xf] }
  0xc4   : > { %v769_v14 = vld [vmem:[%s5349_s8 + $0x10e0] sm:$0xf]  ;;  %v771_v15 = vld [vmem:[%s5349_s8 + $0x10f0] sm:$0xf]  ;;  %768 = vst [vmem:[%s5356_s9 + $0x434] sm:$0xf] %v767_v13 }
  0xc5   : > { %770 = vst [vmem:[%s5356_s9 + $0x438] sm:$0xf] %v769_v14  ;;  %772 = vst [vmem:[%s5356_s9 + $0x43c] sm:$0xf] %v771_v15  ;;  %v773_v16 = vld [vmem:[%s5349_s8 + $0x1100] sm:$0xf] }
  0xc6   : > { %v775_v17 = vld [vmem:[%s5349_s8 + $0x1110] sm:$0xf]  ;;  %v777_v18 = vld [vmem:[%s5349_s8 + $0x1120] sm:$0xf]  ;;  %774 = vst [vmem:[%s5356_s9 + $0x440] sm:$0xf] %v773_v16 }
  0xc7   : > { %776 = vst [vmem:[%s5356_s9 + $0x444] sm:$0xf] %v775_v17  ;;  %778 = vst [vmem:[%s5356_s9 + $0x448] sm:$0xf] %v777_v18  ;;  %v779_v19 = vld [vmem:[%s5349_s8 + $0x1130] sm:$0xf] }
  0xc8   : > { %v781_v20 = vld [vmem:[%s5349_s8 + $0x1140] sm:$0xf]  ;;  %v783_v21 = vld [vmem:[%s5349_s8 + $0x1150] sm:$0xf]  ;;  %780 = vst [vmem:[%s5356_s9 + $0x44c] sm:$0xf] %v779_v19 }
  0xc9   : > { %782 = vst [vmem:[%s5356_s9 + $0x450] sm:$0xf] %v781_v20  ;;  %784 = vst [vmem:[%s5356_s9 + $0x454] sm:$0xf] %v783_v21  ;;  %v785_v22 = vld [vmem:[%s5349_s8 + $0x1160] sm:$0xf] }
  0xca   : > { %v787_v23 = vld [vmem:[%s5349_s8 + $0x1170] sm:$0xf]  ;;  %v789_v24 = vld [vmem:[%s5349_s8 + $0x1180] sm:$0xf]  ;;  %786 = vst [vmem:[%s5356_s9 + $0x458] sm:$0xf] %v785_v22 }
  0xcb   : > { %788 = vst [vmem:[%s5356_s9 + $0x45c] sm:$0xf] %v787_v23  ;;  %790 = vst [vmem:[%s5356_s9 + $0x460] sm:$0xf] %v789_v24  ;;  %v791_v25 = vld [vmem:[%s5349_s8 + $0x1190] sm:$0xf] }
  0xcc   : > { %v793_v26 = vld [vmem:[%s5349_s8 + $0x11a0] sm:$0xf]  ;;  %v795_v27 = vld [vmem:[%s5349_s8 + $0x11b0] sm:$0xf]  ;;  %792 = vst [vmem:[%s5356_s9 + $0x464] sm:$0xf] %v791_v25 }
  0xcd   : > { %794 = vst [vmem:[%s5356_s9 + $0x468] sm:$0xf] %v793_v26  ;;  %796 = vst [vmem:[%s5356_s9 + $0x46c] sm:$0xf] %v795_v27  ;;  %v797_v28 = vld [vmem:[%s5349_s8 + $0x11c0] sm:$0xf] }
  0xce   : > { %v799_v29 = vld [vmem:[%s5349_s8 + $0x11d0] sm:$0xf]  ;;  %v801_v30 = vld [vmem:[%s5349_s8 + $0x11e0] sm:$0xf]  ;;  %798 = vst [vmem:[%s5356_s9 + $0x470] sm:$0xf] %v797_v28 }
  0xcf   : > { %800 = vst [vmem:[%s5356_s9 + $0x474] sm:$0xf] %v799_v29  ;;  %802 = vst [vmem:[%s5356_s9 + $0x478] sm:$0xf] %v801_v30  ;;  %v803_v31 = vld [vmem:[%s5349_s8 + $0x11f0] sm:$0xf] }
  0xd0   : > { %v805_v32 = vld [vmem:[%s5349_s8 + $0x1200] sm:$0xf]  ;;  %v807_v33 = vld [vmem:[%s5349_s8 + $0x1210] sm:$0xf]  ;;  %804 = vst [vmem:[%s5356_s9 + $0x47c] sm:$0xf] %v803_v31 }
  0xd1   : > { %806 = vst [vmem:[%s5356_s9 + $0x480] sm:$0xf] %v805_v32  ;;  %808 = vst [vmem:[%s5356_s9 + $0x484] sm:$0xf] %v807_v33  ;;  %v809_v34 = vld [vmem:[%s5349_s8 + $0x1220] sm:$0xf] }
  0xd2   : > { %v811_v35 = vld [vmem:[%s5349_s8 + $0x1230] sm:$0xf]  ;;  %v813_v36 = vld [vmem:[%s5349_s8 + $0x1240] sm:$0xf]  ;;  %810 = vst [vmem:[%s5356_s9 + $0x488] sm:$0xf] %v809_v34 }
  0xd3   : > { %812 = vst [vmem:[%s5356_s9 + $0x48c] sm:$0xf] %v811_v35  ;;  %814 = vst [vmem:[%s5356_s9 + $0x490] sm:$0xf] %v813_v36  ;;  %v815_v37 = vld [vmem:[%s5349_s8 + $0x1250] sm:$0xf] }
  0xd4   : > { %v817_v38 = vld [vmem:[%s5349_s8 + $0x1260] sm:$0xf]  ;;  %v819_v39 = vld [vmem:[%s5349_s8 + $0x1270] sm:$0xf]  ;;  %816 = vst [vmem:[%s5356_s9 + $0x494] sm:$0xf] %v815_v37 }
  0xd5   : > { %818 = vst [vmem:[%s5356_s9 + $0x498] sm:$0xf] %v817_v38  ;;  %820 = vst [vmem:[%s5356_s9 + $0x49c] sm:$0xf] %v819_v39  ;;  %v821_v40 = vld [vmem:[%s5349_s8 + $0x1280] sm:$0xf] }
  0xd6   : > { %v823_v41 = vld [vmem:[%s5349_s8 + $0x1290] sm:$0xf]  ;;  %v825_v42 = vld [vmem:[%s5349_s8 + $0x12a0] sm:$0xf]  ;;  %822 = vst [vmem:[%s5356_s9 + $0x4a0] sm:$0xf] %v821_v40 }
  0xd7   : > { %824 = vst [vmem:[%s5356_s9 + $0x4a4] sm:$0xf] %v823_v41  ;;  %826 = vst [vmem:[%s5356_s9 + $0x4a8] sm:$0xf] %v825_v42  ;;  %v827_v43 = vld [vmem:[%s5349_s8 + $0x12b0] sm:$0xf] }
  0xd8   : > { %v829_v44 = vld [vmem:[%s5349_s8 + $0x12c0] sm:$0xf]  ;;  %v831_v45 = vld [vmem:[%s5349_s8 + $0x12d0] sm:$0xf]  ;;  %828 = vst [vmem:[%s5356_s9 + $0x4ac] sm:$0xf] %v827_v43 }
  0xd9   : > { %830 = vst [vmem:[%s5356_s9 + $0x4b0] sm:$0xf] %v829_v44  ;;  %832 = vst [vmem:[%s5356_s9 + $0x4b4] sm:$0xf] %v831_v45  ;;  %v833_v46 = vld [vmem:[%s5349_s8 + $0x12e0] sm:$0xf] }
  0xda   : > { %v835_v47 = vld [vmem:[%s5349_s8 + $0x12f0] sm:$0xf]  ;;  %v837_v48 = vld [vmem:[%s5349_s8 + $0x1300] sm:$0xf]  ;;  %834 = vst [vmem:[%s5356_s9 + $0x4b8] sm:$0xf] %v833_v46 }
  0xdb   : > { %836 = vst [vmem:[%s5356_s9 + $0x4bc] sm:$0xf] %v835_v47  ;;  %838 = vst [vmem:[%s5356_s9 + $0x4c0] sm:$0xf] %v837_v48  ;;  %v839_v49 = vld [vmem:[%s5349_s8 + $0x1310] sm:$0xf] }
  0xdc   : > { %v841_v50 = vld [vmem:[%s5349_s8 + $0x1320] sm:$0xf]  ;;  %v843_v51 = vld [vmem:[%s5349_s8 + $0x1330] sm:$0xf]  ;;  %840 = vst [vmem:[%s5356_s9 + $0x4c4] sm:$0xf] %v839_v49 }
  0xdd   : > { %842 = vst [vmem:[%s5356_s9 + $0x4c8] sm:$0xf] %v841_v50  ;;  %844 = vst [vmem:[%s5356_s9 + $0x4cc] sm:$0xf] %v843_v51  ;;  %v845_v52 = vld [vmem:[%s5349_s8 + $0x1340] sm:$0xf] }
  0xde   : > { %v847_v53 = vld [vmem:[%s5349_s8 + $0x1350] sm:$0xf]  ;;  %v849_v54 = vld [vmem:[%s5349_s8 + $0x1360] sm:$0xf]  ;;  %846 = vst [vmem:[%s5356_s9 + $0x4d0] sm:$0xf] %v845_v52 }
  0xdf   : > { %848 = vst [vmem:[%s5356_s9 + $0x4d4] sm:$0xf] %v847_v53  ;;  %850 = vst [vmem:[%s5356_s9 + $0x4d8] sm:$0xf] %v849_v54  ;;  %v851_v55 = vld [vmem:[%s5349_s8 + $0x1370] sm:$0xf] }
  0xe0   : > { %v853_v56 = vld [vmem:[%s5349_s8 + $0x1380] sm:$0xf]  ;;  %v855_v57 = vld [vmem:[%s5349_s8 + $0x1390] sm:$0xf]  ;;  %852 = vst [vmem:[%s5356_s9 + $0x4dc] sm:$0xf] %v851_v55 }
  0xe1   : > { %854 = vst [vmem:[%s5356_s9 + $0x4e0] sm:$0xf] %v853_v56  ;;  %856 = vst [vmem:[%s5356_s9 + $0x4e4] sm:$0xf] %v855_v57  ;;  %v857_v58 = vld [vmem:[%s5349_s8 + $0x13a0] sm:$0xf] }
  0xe2   : > { %v859_v59 = vld [vmem:[%s5349_s8 + $0x13b0] sm:$0xf]  ;;  %v861_v60 = vld [vmem:[%s5349_s8 + $0x13c0] sm:$0xf]  ;;  %858 = vst [vmem:[%s5356_s9 + $0x4e8] sm:$0xf] %v857_v58 }
  0xe3   : > { %860 = vst [vmem:[%s5356_s9 + $0x4ec] sm:$0xf] %v859_v59  ;;  %862 = vst [vmem:[%s5356_s9 + $0x4f0] sm:$0xf] %v861_v60  ;;  %v863_v61 = vld [vmem:[%s5349_s8 + $0x13d0] sm:$0xf] }
  0xe4   : > { %v865_v62 = vld [vmem:[%s5349_s8 + $0x13e0] sm:$0xf]  ;;  %v867_v63 = vld [vmem:[%s5349_s8 + $0x13f0] sm:$0xf]  ;;  %864 = vst [vmem:[%s5356_s9 + $0x4f4] sm:$0xf] %v863_v61 }
  0xe5   : > { %866 = vst [vmem:[%s5356_s9 + $0x4f8] sm:$0xf] %v865_v62  ;;  %868 = vst [vmem:[%s5356_s9 + $0x4fc] sm:$0xf] %v867_v63  ;;  %v869_v0 = vld [vmem:[%s5349_s8 + $0x1400] sm:$0xf] }
  0xe6   : > { %v871_v1 = vld [vmem:[%s5349_s8 + $0x1410] sm:$0xf]  ;;  %v873_v2 = vld [vmem:[%s5349_s8 + $0x1420] sm:$0xf]  ;;  %870 = vst [vmem:[%s5356_s9 + $0x500] sm:$0xf] %v869_v0 }
  0xe7   : > { %872 = vst [vmem:[%s5356_s9 + $0x504] sm:$0xf] %v871_v1  ;;  %874 = vst [vmem:[%s5356_s9 + $0x508] sm:$0xf] %v873_v2  ;;  %v875_v3 = vld [vmem:[%s5349_s8 + $0x1430] sm:$0xf] }
  0xe8   : > { %v877_v4 = vld [vmem:[%s5349_s8 + $0x1440] sm:$0xf]  ;;  %v879_v5 = vld [vmem:[%s5349_s8 + $0x1450] sm:$0xf]  ;;  %876 = vst [vmem:[%s5356_s9 + $0x50c] sm:$0xf] %v875_v3 }
  0xe9   : > { %878 = vst [vmem:[%s5356_s9 + $0x510] sm:$0xf] %v877_v4  ;;  %880 = vst [vmem:[%s5356_s9 + $0x514] sm:$0xf] %v879_v5  ;;  %v881_v6 = vld [vmem:[%s5349_s8 + $0x1460] sm:$0xf] }
  0xea   : > { %v883_v7 = vld [vmem:[%s5349_s8 + $0x1470] sm:$0xf]  ;;  %v885_v8 = vld [vmem:[%s5349_s8 + $0x1480] sm:$0xf]  ;;  %882 = vst [vmem:[%s5356_s9 + $0x518] sm:$0xf] %v881_v6 }
  0xeb   : > { %884 = vst [vmem:[%s5356_s9 + $0x51c] sm:$0xf] %v883_v7  ;;  %886 = vst [vmem:[%s5356_s9 + $0x520] sm:$0xf] %v885_v8  ;;  %v887_v9 = vld [vmem:[%s5349_s8 + $0x1490] sm:$0xf] }
  0xec   : > { %v889_v10 = vld [vmem:[%s5349_s8 + $0x14a0] sm:$0xf]  ;;  %v891_v11 = vld [vmem:[%s5349_s8 + $0x14b0] sm:$0xf]  ;;  %888 = vst [vmem:[%s5356_s9 + $0x524] sm:$0xf] %v887_v9 }
  0xed   : > { %890 = vst [vmem:[%s5356_s9 + $0x528] sm:$0xf] %v889_v10  ;;  %892 = vst [vmem:[%s5356_s9 + $0x52c] sm:$0xf] %v891_v11  ;;  %v893_v12 = vld [vmem:[%s5349_s8 + $0x14c0] sm:$0xf] }
  0xee   : > { %v895_v13 = vld [vmem:[%s5349_s8 + $0x14d0] sm:$0xf]  ;;  %v897_v14 = vld [vmem:[%s5349_s8 + $0x14e0] sm:$0xf]  ;;  %894 = vst [vmem:[%s5356_s9 + $0x530] sm:$0xf] %v893_v12 }
  0xef   : > { %896 = vst [vmem:[%s5356_s9 + $0x534] sm:$0xf] %v895_v13  ;;  %898 = vst [vmem:[%s5356_s9 + $0x538] sm:$0xf] %v897_v14  ;;  %v899_v15 = vld [vmem:[%s5349_s8 + $0x14f0] sm:$0xf] }
  0xf0   : > { %v901_v16 = vld [vmem:[%s5349_s8 + $0x1500] sm:$0xf]  ;;  %v903_v17 = vld [vmem:[%s5349_s8 + $0x1510] sm:$0xf]  ;;  %900 = vst [vmem:[%s5356_s9 + $0x53c] sm:$0xf] %v899_v15 }
  0xf1   : > { %902 = vst [vmem:[%s5356_s9 + $0x540] sm:$0xf] %v901_v16  ;;  %904 = vst [vmem:[%s5356_s9 + $0x544] sm:$0xf] %v903_v17  ;;  %v905_v18 = vld [vmem:[%s5349_s8 + $0x1520] sm:$0xf] }
  0xf2   : > { %v907_v19 = vld [vmem:[%s5349_s8 + $0x1530] sm:$0xf]  ;;  %v909_v20 = vld [vmem:[%s5349_s8 + $0x1540] sm:$0xf]  ;;  %906 = vst [vmem:[%s5356_s9 + $0x548] sm:$0xf] %v905_v18 }
  0xf3   : > { %908 = vst [vmem:[%s5356_s9 + $0x54c] sm:$0xf] %v907_v19  ;;  %910 = vst [vmem:[%s5356_s9 + $0x550] sm:$0xf] %v909_v20  ;;  %v911_v21 = vld [vmem:[%s5349_s8 + $0x1550] sm:$0xf] }
  0xf4   : > { %v913_v22 = vld [vmem:[%s5349_s8 + $0x1560] sm:$0xf]  ;;  %v915_v23 = vld [vmem:[%s5349_s8 + $0x1570] sm:$0xf]  ;;  %912 = vst [vmem:[%s5356_s9 + $0x554] sm:$0xf] %v911_v21 }
  0xf5   : > { %914 = vst [vmem:[%s5356_s9 + $0x558] sm:$0xf] %v913_v22  ;;  %916 = vst [vmem:[%s5356_s9 + $0x55c] sm:$0xf] %v915_v23  ;;  %v917_v24 = vld [vmem:[%s5349_s8 + $0x1580] sm:$0xf] }
  0xf6   : > { %v919_v25 = vld [vmem:[%s5349_s8 + $0x1590] sm:$0xf]  ;;  %v921_v26 = vld [vmem:[%s5349_s8 + $0x15a0] sm:$0xf]  ;;  %918 = vst [vmem:[%s5356_s9 + $0x560] sm:$0xf] %v917_v24 }
  0xf7   : > { %920 = vst [vmem:[%s5356_s9 + $0x564] sm:$0xf] %v919_v25  ;;  %922 = vst [vmem:[%s5356_s9 + $0x568] sm:$0xf] %v921_v26  ;;  %v923_v27 = vld [vmem:[%s5349_s8 + $0x15b0] sm:$0xf] }
  0xf8   : > { %v925_v28 = vld [vmem:[%s5349_s8 + $0x15c0] sm:$0xf]  ;;  %v927_v29 = vld [vmem:[%s5349_s8 + $0x15d0] sm:$0xf]  ;;  %924 = vst [vmem:[%s5356_s9 + $0x56c] sm:$0xf] %v923_v27 }
  0xf9   : > { %926 = vst [vmem:[%s5356_s9 + $0x570] sm:$0xf] %v925_v28  ;;  %928 = vst [vmem:[%s5356_s9 + $0x574] sm:$0xf] %v927_v29  ;;  %v929_v30 = vld [vmem:[%s5349_s8 + $0x15e0] sm:$0xf] }
  0xfa   : > { %v931_v31 = vld [vmem:[%s5349_s8 + $0x15f0] sm:$0xf]  ;;  %v933_v32 = vld [vmem:[%s5349_s8 + $0x1600] sm:$0xf]  ;;  %930 = vst [vmem:[%s5356_s9 + $0x578] sm:$0xf] %v929_v30 }
  0xfb   : > { %932 = vst [vmem:[%s5356_s9 + $0x57c] sm:$0xf] %v931_v31  ;;  %934 = vst [vmem:[%s5356_s9 + $0x580] sm:$0xf] %v933_v32  ;;  %v935_v33 = vld [vmem:[%s5349_s8 + $0x1610] sm:$0xf] }
  0xfc   : > { %v937_v34 = vld [vmem:[%s5349_s8 + $0x1620] sm:$0xf]  ;;  %v939_v35 = vld [vmem:[%s5349_s8 + $0x1630] sm:$0xf]  ;;  %936 = vst [vmem:[%s5356_s9 + $0x584] sm:$0xf] %v935_v33 }
  0xfd   : > { %938 = vst [vmem:[%s5356_s9 + $0x588] sm:$0xf] %v937_v34  ;;  %940 = vst [vmem:[%s5356_s9 + $0x58c] sm:$0xf] %v939_v35  ;;  %v941_v36 = vld [vmem:[%s5349_s8 + $0x1640] sm:$0xf] }
  0xfe   : > { %v943_v37 = vld [vmem:[%s5349_s8 + $0x1650] sm:$0xf]  ;;  %v945_v38 = vld [vmem:[%s5349_s8 + $0x1660] sm:$0xf]  ;;  %942 = vst [vmem:[%s5356_s9 + $0x590] sm:$0xf] %v941_v36 }
  0xff   : > { %944 = vst [vmem:[%s5356_s9 + $0x594] sm:$0xf] %v943_v37  ;;  %946 = vst [vmem:[%s5356_s9 + $0x598] sm:$0xf] %v945_v38  ;;  %v947_v39 = vld [vmem:[%s5349_s8 + $0x1670] sm:$0xf] }
 0x100   : > { %v949_v40 = vld [vmem:[%s5349_s8 + $0x1680] sm:$0xf]  ;;  %v951_v41 = vld [vmem:[%s5349_s8 + $0x1690] sm:$0xf]  ;;  %948 = vst [vmem:[%s5356_s9 + $0x59c] sm:$0xf] %v947_v39 }
 0x101   : > { %950 = vst [vmem:[%s5356_s9 + $0x5a0] sm:$0xf] %v949_v40  ;;  %952 = vst [vmem:[%s5356_s9 + $0x5a4] sm:$0xf] %v951_v41  ;;  %v953_v42 = vld [vmem:[%s5349_s8 + $0x16a0] sm:$0xf] }
 0x102   : > { %v955_v43 = vld [vmem:[%s5349_s8 + $0x16b0] sm:$0xf]  ;;  %v957_v44 = vld [vmem:[%s5349_s8 + $0x16c0] sm:$0xf]  ;;  %954 = vst [vmem:[%s5356_s9 + $0x5a8] sm:$0xf] %v953_v42 }
 0x103   : > { %956 = vst [vmem:[%s5356_s9 + $0x5ac] sm:$0xf] %v955_v43  ;;  %958 = vst [vmem:[%s5356_s9 + $0x5b0] sm:$0xf] %v957_v44  ;;  %v959_v45 = vld [vmem:[%s5349_s8 + $0x16d0] sm:$0xf] }
 0x104   : > { %v961_v46 = vld [vmem:[%s5349_s8 + $0x16e0] sm:$0xf]  ;;  %v963_v47 = vld [vmem:[%s5349_s8 + $0x16f0] sm:$0xf]  ;;  %960 = vst [vmem:[%s5356_s9 + $0x5b4] sm:$0xf] %v959_v45 }
 0x105   : > { %962 = vst [vmem:[%s5356_s9 + $0x5b8] sm:$0xf] %v961_v46  ;;  %964 = vst [vmem:[%s5356_s9 + $0x5bc] sm:$0xf] %v963_v47  ;;  %v965_v48 = vld [vmem:[%s5349_s8 + $0x1700] sm:$0xf] }
 0x106   : > { %v967_v49 = vld [vmem:[%s5349_s8 + $0x1710] sm:$0xf]  ;;  %v969_v50 = vld [vmem:[%s5349_s8 + $0x1720] sm:$0xf]  ;;  %966 = vst [vmem:[%s5356_s9 + $0x5c0] sm:$0xf] %v965_v48 }
 0x107   : > { %968 = vst [vmem:[%s5356_s9 + $0x5c4] sm:$0xf] %v967_v49  ;;  %970 = vst [vmem:[%s5356_s9 + $0x5c8] sm:$0xf] %v969_v50  ;;  %v971_v51 = vld [vmem:[%s5349_s8 + $0x1730] sm:$0xf] }
 0x108   : > { %v973_v52 = vld [vmem:[%s5349_s8 + $0x1740] sm:$0xf]  ;;  %v975_v53 = vld [vmem:[%s5349_s8 + $0x1750] sm:$0xf]  ;;  %972 = vst [vmem:[%s5356_s9 + $0x5cc] sm:$0xf] %v971_v51 }
 0x109   : > { %974 = vst [vmem:[%s5356_s9 + $0x5d0] sm:$0xf] %v973_v52  ;;  %976 = vst [vmem:[%s5356_s9 + $0x5d4] sm:$0xf] %v975_v53  ;;  %v977_v54 = vld [vmem:[%s5349_s8 + $0x1760] sm:$0xf] }
 0x10a   : > { %v979_v55 = vld [vmem:[%s5349_s8 + $0x1770] sm:$0xf]  ;;  %v981_v56 = vld [vmem:[%s5349_s8 + $0x1780] sm:$0xf]  ;;  %978 = vst [vmem:[%s5356_s9 + $0x5d8] sm:$0xf] %v977_v54 }
 0x10b   : > { %980 = vst [vmem:[%s5356_s9 + $0x5dc] sm:$0xf] %v979_v55  ;;  %982 = vst [vmem:[%s5356_s9 + $0x5e0] sm:$0xf] %v981_v56  ;;  %v983_v57 = vld [vmem:[%s5349_s8 + $0x1790] sm:$0xf] }
 0x10c   : > { %v985_v58 = vld [vmem:[%s5349_s8 + $0x17a0] sm:$0xf]  ;;  %v987_v59 = vld [vmem:[%s5349_s8 + $0x17b0] sm:$0xf]  ;;  %984 = vst [vmem:[%s5356_s9 + $0x5e4] sm:$0xf] %v983_v57 }
 0x10d   : > { %986 = vst [vmem:[%s5356_s9 + $0x5e8] sm:$0xf] %v985_v58  ;;  %988 = vst [vmem:[%s5356_s9 + $0x5ec] sm:$0xf] %v987_v59  ;;  %v989_v60 = vld [vmem:[%s5349_s8 + $0x17c0] sm:$0xf] }
 0x10e   : > { %v991_v61 = vld [vmem:[%s5349_s8 + $0x17d0] sm:$0xf]  ;;  %v993_v62 = vld [vmem:[%s5349_s8 + $0x17e0] sm:$0xf]  ;;  %990 = vst [vmem:[%s5356_s9 + $0x5f0] sm:$0xf] %v989_v60 }
 0x10f   : > { %992 = vst [vmem:[%s5356_s9 + $0x5f4] sm:$0xf] %v991_v61  ;;  %994 = vst [vmem:[%s5356_s9 + $0x5f8] sm:$0xf] %v993_v62  ;;  %v995_v63 = vld [vmem:[%s5349_s8 + $0x17f0] sm:$0xf] }
 0x110   : > { %v997_v0 = vld [vmem:[%s5349_s8 + $0x1800] sm:$0xf]  ;;  %v999_v1 = vld [vmem:[%s5349_s8 + $0x1810] sm:$0xf]  ;;  %996 = vst [vmem:[%s5356_s9 + $0x5fc] sm:$0xf] %v995_v63 }
 0x111   : > { %998 = vst [vmem:[%s5356_s9 + $0x600] sm:$0xf] %v997_v0  ;;  %1000 = vst [vmem:[%s5356_s9 + $0x604] sm:$0xf] %v999_v1  ;;  %v1001_v2 = vld [vmem:[%s5349_s8 + $0x1820] sm:$0xf] }
 0x112   : > { %v1003_v3 = vld [vmem:[%s5349_s8 + $0x1830] sm:$0xf]  ;;  %v1005_v4 = vld [vmem:[%s5349_s8 + $0x1840] sm:$0xf]  ;;  %1002 = vst [vmem:[%s5356_s9 + $0x608] sm:$0xf] %v1001_v2 }
 0x113   : > { %1004 = vst [vmem:[%s5356_s9 + $0x60c] sm:$0xf] %v1003_v3  ;;  %1006 = vst [vmem:[%s5356_s9 + $0x610] sm:$0xf] %v1005_v4  ;;  %v1007_v5 = vld [vmem:[%s5349_s8 + $0x1850] sm:$0xf] }
 0x114   : > { %v1009_v6 = vld [vmem:[%s5349_s8 + $0x1860] sm:$0xf]  ;;  %v1011_v7 = vld [vmem:[%s5349_s8 + $0x1870] sm:$0xf]  ;;  %1008 = vst [vmem:[%s5356_s9 + $0x614] sm:$0xf] %v1007_v5 }
 0x115   : > { %1010 = vst [vmem:[%s5356_s9 + $0x618] sm:$0xf] %v1009_v6  ;;  %1012 = vst [vmem:[%s5356_s9 + $0x61c] sm:$0xf] %v1011_v7 }
 0x116 PF: > { %p4415_p6 = scmp.ge.s32.totalorder %s5268_s22, 1  ;;  %p1834_p7 = scmp.lt.s32.totalorder %s5268_s22, 5 }
 0x118   : > { %p1835_p8 = pnand %p4415_p6, %p1834_p7 }
 0x119   : > { %s1841_s10 = sand.u32 (!%p1835_p8), 1, %s5252_s18   ;;  %p1879_p9 = scmp.lt.s32.totalorder (!%p1835_p8), %s5260_s20, 3 }
 0x11a   : > { %1838 = sbr.rel (%p1835_p8) target bundleno = 924 (0x39c), region = 77  ;;  %s4416_s12 = sshll.u32 (!%p1835_p8), %s5260_s20, 4 }
 0x11b   : > { %s4943_s11 = smul.u32 (!%p1835_p8), 1568, %s1841_s10  ;;  %p1883_p10 = scmp.lt.s32.totalorder (!%p1835_p8), %s4416_s12, 63 }
 0x11c   : > { %p4418_p11 = scmp.ne.s32.totalorder (!%p1835_p8), %s5260_s20, 0 }
 0x11d   : > { %s6154_s29 = scalar_lea.vmem (!%p1835_p8), [#allocation3], %s4943_s11 }
 0x11f   : > { %s6143_s13 = scalar_select %p1879_p9, %s5260_s20, 3 }
 0x120   : > { %s6478_s12 = smov (!%p1883_p10, %s4416_s12), 63  ;;  %1892 = sbr.rel (%p4418_p11) target bundleno = 295 (0x127), region = 85 }
 0x121   : > { %s1881_s16 = scalar_lea.vmem %s6466_s2, %s6143_s13  ;;  %s4417_s17 = sshll.u32 %s6478_s12, 2 }
 0x122   : > { %s6152_s28 = scalar_lea.vmem %s6467_s3, %s4417_s17 }
 0x125   : > { %v5270_v8 = vmov 0.0  }
 0x126   : > { %1893 = vst [vmem:[#allocation2] sm:$0x3] %v5270_v8 }
 0x127 PF: > { %v4995_v9 = vld [vmem:[%s6154_s29 + $0x78] sm:$0xff]   ;;  %v4999_v13 = vld [vmem:[%s6154_s29 + $0x70] sm:$0xff]   ;;  %v5003_v17 = vld [vmem:[%s6154_s29 + $0x68] sm:$0xff]   ;;  %v2305_v36 = vlaneseq  ;;  %v5271_v44 = vmov 1966171168   ;;  %vm5273_vm0 = vmmov 0  }
 0x128   : > { %v4996_v10 = vld [vmem:[%s6154_s29 + $0x38] sm:$0xff]   ;;  %4632 = vmatprep.subr.bf16.mxu0 %v4995_v9  ;;  %v5000_v14 = vld [vmem:[%s6154_s29 + $0x30] sm:$0xff]   ;;  %v5004_v18 = vld [vmem:[%s6154_s29 + $0x28] sm:$0xff]   ;;  %v2303_v45 = vunpack.c.l.s4 %v5271_v44  ;;  %vm3662_vm1 = vcmask 523264   ;;  %p4626_p12 = scmp.ne.s32.totalorder %s5260_s20, 3 }
 0x129   : > { %v4997_v11 = vld [vmem:[%s6154_s29 + $0xf8] sm:$0xff]   ;;  %4633 = vmatpush3.bf16.msra.mxu0 %v4996_v10  ;;  %v5001_v15 = vld [vmem:[%s6154_s29 + $0xf0] sm:$0xff]   ;;  %v5005_v19 = vld [vmem:[%s6154_s29 + $0xe8] sm:$0xff]   ;;  %v2306_v41 = vshrl.u32 %v2305_v36, 7 }
 0x12a   : > { %v4998_v12 = vld [vmem:[%s6154_s29 + $0xb8] sm:$0xff]   ;;  %4654 = vmatprep.subr.bf16.mxu1 %v4997_v11  ;;  %4634 = vmatprep.subr.bf16.mxu0 %v4999_v13  ;;  %v5002_v16 = vld [vmem:[%s6154_s29 + $0xb0] sm:$0xff]   ;;  %v5006_v20 = vld [vmem:[%s6154_s29 + $0xa8] sm:$0xff]   ;;  %v2304_v48 = vunpack.c.0.s8 %v2303_v45 }
 0x12b   : > { %4655 = vmatpush3.bf16.msra.mxu1 %v4998_v12  ;;  %v5007_v21 = vld [vmem:[%s6154_s29 + $0x60] sm:$0xff]   ;;  %v5011_v25 = vld [vmem:[%s6154_s29 + $0x58] sm:$0xff]   ;;  %v5015_v29 = vld [vmem:[%s6154_s29 + $0x50] sm:$0xff]  }
 0x12c   : > { %4656 = vmatprep.subr.bf16.mxu1 %v5001_v15  ;;  %v5008_v22 = vld [vmem:[%s6154_s29 + $0x20] sm:$0xff]   ;;  %v5012_v26 = vld [vmem:[%s6154_s29 + $0x18] sm:$0xff]   ;;  %v5016_v30 = vld [vmem:[%s6154_s29 + $0x10] sm:$0xff]   ;;  %v6194_v50 = vsub.s32 %v2304_v48, %v2306_v41 }
 0x12d   : > { %4635 = vmatpush3.bf16.msra.mxu0 %v5000_v14  ;;  %v5009_v23 = vld [vmem:[%s6154_s29 + $0xe0] sm:$0xff]   ;;  %v5013_v27 = vld [vmem:[%s6154_s29 + $0xd8] sm:$0xff]   ;;  %v5017_v31 = vld [vmem:[%s6154_s29 + $0xd0] sm:$0xff]  }
 0x12e   : > { %4636 = vmatprep.subr.bf16.mxu0 %v5003_v17  ;;  %v5010_v24 = vld [vmem:[%s6154_s29 + $0xa0] sm:$0xff]   ;;  %v5014_v28 = vld [vmem:[%s6154_s29 + $0x98] sm:$0xff]   ;;  %v5018_v32 = vld [vmem:[%s6154_s29 + $0x90] sm:$0xff]  }
 0x12f   : > { %4657 = vmatpush3.bf16.msra.mxu1 %v5002_v16  ;;  %v5019_v33 = vld [vmem:[%s6154_s29 + $0x48] sm:$0xff]   ;;  %v5023_v38 = vld [vmem:[%s6154_s29 + $0x40] sm:$0xff]   ;;  %v5028_v46 = vld [vmem:[%s6154_s29 + $0x178] sm:$0xff]  }
 0x130   : > { %4658 = vmatprep.subr.bf16.mxu1 %v5005_v19  ;;  %v5020_v34 = vld [vmem:[%s6154_s29 + $0x8] sm:$0xff]   ;;  %v5024_v39 = vld [vmem:[%s6154_s29] sm:$0xff]   ;;  %v5030_v49 = vld [vmem:[%s6154_s29 + $0x1f8] sm:$0xff]  }
 0x131   : > { %4637 = vmatpush3.bf16.msra.mxu0 %v5004_v18  ;;  %v5021_v35 = vld [vmem:[%s6154_s29 + $0xc8] sm:$0xff]   ;;  %v5025_v40 = vld [vmem:[%s6154_s29 + $0xc0] sm:$0xff]   ;;  %v5029_v57 = vld [vmem:[%s6154_s29 + $0x138] sm:$0xff]  }
 0x132   : > { %4638 = vmatprep.subr.bf16.mxu0 %v5007_v21  ;;  %v5022_v37 = vld [vmem:[%s6154_s29 + $0x88] sm:$0xff]   ;;  %v1894_v42 = vld [vmem:[%s6464_s0] sm:$0xff]  ;;  %v5032_v60 = vld [vmem:[%s6154_s29 + $0x170] sm:$0xff]  }
 0x133   : > { %4659 = vmatpush3.bf16.msra.mxu1 %v5006_v20  ;;  %v5027_v43 = vld [vmem:[%s6154_s29 + $0x80] sm:$0xff]   ;;  %v2301_v47 = vcombine.high %v1894_v42, %v1894_v42  ;;  %v2308_v51 = vrot.slane %v1894_v42, %v6194_v50  ;;  %v5031_v62 = vld [vmem:[%s6154_s29 + $0x1b8] sm:$0xff]   ;;  %v5034_v63 = vld [vmem:[%s6154_s29 + $0x1f0] sm:$0xff]  }
 0x134   : > { %4660 = vmatprep.subr.bf16.mxu1 %v5009_v23  ;;  %v5033_v1 = vld [vmem:[%s6154_s29 + $0x130] sm:$0xff]   ;;  %v5036_v2 = vld [vmem:[%s6154_s29 + $0x168] sm:$0xff]   ;;  %v5040_v6 = vld [vmem:[%s6154_s29 + $0x160] sm:$0xff]  }
 0x135   : > { %4639 = vmatpush3.bf16.msra.mxu0 %v5008_v22  ;;  %v6198_v52 = vrot.slane %v2301_v47, %v6194_v50  ;;  %v2316_v53 = vcombine.high %v2308_v51, %v2308_v51  ;;  %v2324_v54 = vrot.slane %v2308_v51, %v6194_v50  ;;  %v5035_v3 = vld [vmem:[%s6154_s29 + $0x1b0] sm:$0xff]   ;;  %v5038_v4 = vld [vmem:[%s6154_s29 + $0x1e8] sm:$0xff]   ;;  %v5042_v8 = vld [vmem:[%s6154_s29 + $0x1e0] sm:$0xff]  }
 0x136   : > { %4640 = vmatprep.subr.bf16.mxu0 %v5011_v25  ;;  %v5037_v5 = vld [vmem:[%s6154_s29 + $0x128] sm:$0xff]   ;;  %v5041_v9 = vld [vmem:[%s6154_s29 + $0x120] sm:$0xff]   ;;  %v5044_v10 = vld [vmem:[%s6154_s29 + $0x158] sm:$0xff]  }
 0x137   : > { %4661 = vmatpush3.bf16.msra.mxu1 %v5010_v24  ;;  %v2317_v55 = vcombine.high %v6198_v52, %v6198_v52  ;;  %v2338_v56 = vrot.slane %v2316_v53, %v6194_v50  ;;  %v2346_v59 = vcombine.high %v2324_v54, %v2324_v54  ;;  %v5039_v7 = vld [vmem:[%s6154_s29 + $0x1a8] sm:$0xff]   ;;  %v5043_v11 = vld [vmem:[%s6154_s29 + $0x1a0] sm:$0xff]   ;;  %v5046_v12 = vld [vmem:[%s6154_s29 + $0x1d8] sm:$0xff]  }
 0x138   : > { %4662 = vmatprep.subr.bf16.mxu1 %v5013_v27  ;;  %v5045_v13 = vld [vmem:[%s6154_s29 + $0x118] sm:$0xff]   ;;  %v5048_v14 = vld [vmem:[%s6154_s29 + $0x150] sm:$0xff]   ;;  %v5052_v18 = vld [vmem:[%s6154_s29 + $0x148] sm:$0xff]  }
 0x139   : > { %4641 = vmatpush3.bf16.msra.mxu0 %v5012_v26  ;;  %v2345_v58 = vrot.slane %v2317_v55, %v6194_v50  ;;  %3698 = vmatprep.mubr.bf16.mxu0 %v2338_v56  ;;  %v2348_v61 = vcombine.high %v2338_v56, %v2338_v56  ;;  %v5047_v15 = vld [vmem:[%s6154_s29 + $0x198] sm:$0xff]   ;;  %v5050_v16 = vld [vmem:[%s6154_s29 + $0x1d0] sm:$0xff]   ;;  %v5054_v20 = vld [vmem:[%s6154_s29 + $0x1c8] sm:$0xff]   ;;  %v2331_v26 = vrot.slane %v6198_v52, %v6194_v50 }
 0x13a   : > { %4642 = vmatprep.subr.bf16.mxu0 %v5015_v29  ;;  %v5049_v17 = vld [vmem:[%s6154_s29 + $0x110] sm:$0xff]   ;;  %v5053_v21 = vld [vmem:[%s6154_s29 + $0x108] sm:$0xff]   ;;  %v5056_v22 = vld [vmem:[%s6154_s29 + $0x140] sm:$0xff]  }
 0x13b   : > { %4663 = vmatpush3.bf16.msra.mxu1 %v5014_v28  ;;  %v2349_v0 = vcombine.high %v2345_v58, %v2345_v58  ;;  %3738 = vmatprep.mubr.bf16.mxu1 %v2348_v61  ;;  %v5051_v19 = vld [vmem:[%s6154_s29 + $0x190] sm:$0xff]   ;;  %v5055_v23 = vld [vmem:[%s6154_s29 + $0x188] sm:$0xff]   ;;  %v5058_v24 = vld [vmem:[%s6154_s29 + $0x1c0] sm:$0xff]  }
 0x13c   : > { %4664 = vmatprep.subr.bf16.mxu1 %v5017_v31  ;;  %v5057_v25 = vld [vmem:[%s6154_s29 + $0x100] sm:$0xff]   ;;  %v5060_v27 = vld [vmem:[%s6154_s29 + $0x278] sm:$0xff]   ;;  %v2347_v31 = vcombine.high %v2331_v26, %v2331_v26  ;;  %v5068_v36 = vld [vmem:[%s6154_s29 + $0x268] sm:$0xff]  }
 0x13d   : > { %4643 = vmatpush3.bf16.msra.mxu0 %v5016_v30  ;;  %v5059_v28 = vld [vmem:[%s6154_s29 + $0x180] sm:$0xff]   ;;  %v5062_v29 = vld [vmem:[%s6154_s29 + $0x2f8] sm:$0xff]   ;;  %v5071_v41 = vld [vmem:[%s6154_s29 + $0x2a8] sm:$0xff]  }
 0x13e   : > { %4644 = vmatprep.subr.bf16.mxu0 %v5019_v33  ;;  %v5061_v30 = vld [vmem:[%s6154_s29 + $0x238] sm:$0xff]   ;;  %v5074_v42 = vld [vmem:[%s6154_s29 + $0x2e0] sm:$0xff]   ;;  %v5080_v48 = vld [vmem:[%s6154_s29 + $0x250] sm:$0xff]  }
 0x13f   : > { %4665 = vmatpush3.bf16.msra.mxu1 %v5018_v32  ;;  %v5064_v32 = vld [vmem:[%s6154_s29 + $0x270] sm:$0xff]   ;;  %v5063_v33 = vld [vmem:[%s6154_s29 + $0x2b8] sm:$0xff]   ;;  %v5075_v45 = vld [vmem:[%s6154_s29 + $0x2a0] sm:$0xff]  }
 0x140   : > { %4666 = vmatprep.subr.bf16.mxu1 %v5021_v35  ;;  %v5065_v35 = vld [vmem:[%s6154_s29 + $0x230] sm:$0xff]   ;;  %v5076_v44 = vld [vmem:[%s6154_s29 + $0x258] sm:$0xff]   ;;  %v5084_v53 = vld [vmem:[%s6154_s29 + $0x248] sm:$0xff]  }
 0x141   : > { %4645 = vmatpush3.bf16.msra.mxu0 %v5020_v34  ;;  %v5066_v34 = vld [vmem:[%s6154_s29 + $0x2f0] sm:$0xff]   ;;  %v5077_v47 = vld [vmem:[%s6154_s29 + $0x218] sm:$0xff]  }
 0x142   : > { %4646 = vmatprep.subr.bf16.mxu0 %v5023_v38  ;;  %v5070_v38 = vld [vmem:[%s6154_s29 + $0x2e8] sm:$0xff]   ;;  %v5082_v51 = vld [vmem:[%s6154_s29 + $0x2d0] sm:$0xff]  }
 0x143   : > { %4667 = vmatpush3.bf16.msra.mxu1 %v5022_v37  ;;  %v5067_v37 = vld [vmem:[%s6154_s29 + $0x2b0] sm:$0xff]  }
 0x144   : > { %4668 = vmatprep.subr.bf16.mxu1 %v5025_v40  ;;  %v5072_v40 = vld [vmem:[%s6154_s29 + $0x260] sm:$0xff]   ;;  %v5081_v52 = vld [vmem:[%s6154_s29 + $0x210] sm:$0xff]  }
 0x145   : > { %4647 = vmatpush3.bf16.msra.mxu0 %v5024_v39  ;;  %v5069_v39 = vld [vmem:[%s6154_s29 + $0x228] sm:$0xff]   ;;  %v5083_v55 = vld [vmem:[%s6154_s29 + $0x290] sm:$0xff]  }
 0x146   : > { %4676 = vmatprep.subr.bf16.mxu0 %v5028_v46  ;;  %v5078_v46 = vld [vmem:[%s6154_s29 + $0x2d8] sm:$0xff]  }
 0x147   : > { %4669 = vmatpush3.bf16.msra.mxu1 %v5027_v43  ;;  %v5073_v43 = vld [vmem:[%s6154_s29 + $0x220] sm:$0xff]  }
 0x148   : > { %4698 = vmatprep.subr.bf16.mxu1 %v5030_v49  ;;  %3699 = vmatmul.mubr.bf16.vlgmr.msra.gmra.mxu0 %v2324_v54  ;;  %v5079_v49 = vld [vmem:[%s6154_s29 + $0x298] sm:$0xff]   ;;  %v1895_v54 = vld [vmem:[%s6464_s0 + $0x8] sm:$0xff] }
 0x149   : > { %4677 = vmatpush3.bf16.msra.mxu0 %v5029_v57  ;;  %3778 = vmatprep.mubr.bf16.mxu0 %v2345_v58  ;;  %v2357_v56 = vrot.slane %v1895_v54, %v6194_v50  ;;  %v2350_v57 = vcombine.high %v1895_v54, %v1895_v54  ;;  %v5086_v58 = vld [vmem:[%s6154_s29 + $0x2c8] sm:$0xff]  }
 0x14a   : > { %3739 = vmatmul.mubr.bf16.vlgmr.msra.gmra.mxu1 %v2346_v59  ;;  %4678 = vmatprep.subr.bf16.mxu0 %v5032_v60  ;;  %v5085_v59 = vld [vmem:[%s6154_s29 + $0x208] sm:$0xff]  }
 0x14b   : > { %4699 = vmatpush3.bf16.msra.mxu1 %v5031_v62  ;;  %3818 = vmatprep.mubr.bf16.mxu1 %v2349_v0  ;;  %v2365_v60 = vcombine.high %v2357_v56, %v2357_v56  ;;  %v6269_v61 = vrot.slane %v2350_v57, %v6194_v50  ;;  %v5088_v62 = vld [vmem:[%s6154_s29 + $0x240] sm:$0xff]   ;;  %v5135_v54 = vld [vmem:[%s6154_s29 + $0x4e8] sm:$0xff]  }
 0x14c   : > { %4700 = vmatprep.subr.bf16.mxu1 %v5034_v63  ;;  %v5087_v63 = vld [vmem:[%s6154_s29 + $0x288] sm:$0xff]  }
 0x14d   : > { %4679 = vmatpush3.bf16.msra.mxu0 %v5033_v1  ;;  %v2387_v0 = vrot.slane %v2365_v60, %v6194_v50  ;;  %v2366_v1 = vcombine.high %v6269_v61, %v6269_v61  ;;  %v5136_v57 = vld [vmem:[%s6154_s29 + $0x4a8] sm:$0xff]   ;;  %v5141_v60 = vld [vmem:[%s6154_s29 + $0x458] sm:$0xff]  }
 0x14e   : > { %4680 = vmatprep.subr.bf16.mxu0 %v5036_v2  ;;  %v5090_v2 = vld [vmem:[%s6154_s29 + $0x2c0] sm:$0xff]  }
 0x14f   : > { %4701 = vmatpush3.bf16.msra.mxu1 %v5035_v3  ;;  %v5089_v3 = vld [vmem:[%s6154_s29 + $0x200] sm:$0xff]  }
 0x150   : > { %4702 = vmatprep.subr.bf16.mxu1 %v5038_v4  ;;  %v2397_v4 = vcombine.high %v2387_v0, %v2387_v0 }
 0x151   : > { %4681 = vmatpush3.bf16.msra.mxu0 %v5037_v5  ;;  %v2373_v5 = vrot.slane %v2357_v56, %v6194_v50  ;;  %v5137_v56 = vld [vmem:[%s6154_s29 + $0x460] sm:$0xff]  }
 0x152   : > { %4682 = vmatprep.subr.bf16.mxu0 %v5040_v6  ;;  %v5092_v6 = vld [vmem:[%s6154_s29 + $0x378] sm:$0xff]  }
 0x153   : > { %4703 = vmatpush3.bf16.msra.mxu1 %v5039_v7  ;;  %v5091_v7 = vld [vmem:[%s6154_s29 + $0x280] sm:$0xff]  }
 0x154   : > { %4704 = vmatprep.subr.bf16.mxu1 %v5042_v8  ;;  %v2394_v8 = vrot.slane %v2366_v1, %v6194_v50  ;;  %v5144_v1 = vld [vmem:[%s6154_s29 + $0x498] sm:$0xff]  }
 0x155   : > { %4683 = vmatpush3.bf16.msra.mxu0 %v5041_v9  ;;  %v5094_v9 = vld [vmem:[%s6154_s29 + $0x3f8] sm:$0xff]  }
 0x156   : > { %4684 = vmatprep.subr.bf16.mxu0 %v5044_v10  ;;  %v5093_v10 = vld [vmem:[%s6154_s29 + $0x338] sm:$0xff]  }
 0x157   : > { %4705 = vmatpush3.bf16.msra.mxu1 %v5043_v11  ;;  %v2395_v11 = vcombine.high %v2373_v5, %v2373_v5 }
 0x158   : > { %4706 = vmatprep.subr.bf16.mxu1 %v5046_v12  ;;  %v5096_v12 = vld [vmem:[%s6154_s29 + $0x370] sm:$0xff]  }
 0x159   : > { %4685 = vmatpush3.bf16.msra.mxu0 %v5045_v13  ;;  %v5095_v13 = vld [vmem:[%s6154_s29 + $0x3b8] sm:$0xff]  }
 0x15a   : > { %4686 = vmatprep.subr.bf16.mxu0 %v5048_v14  ;;  %v2398_v14 = vcombine.high %v2394_v8, %v2394_v8 }
 0x15b   : > { %4707 = vmatpush3.bf16.msra.mxu1 %v5047_v15  ;;  %v5098_v15 = vld [vmem:[%s6154_s29 + $0x3f0] sm:$0xff]  }
 0x15c   : > { %4708 = vmatprep.subr.bf16.mxu1 %v5050_v16  ;;  %v5097_v16 = vld [vmem:[%s6154_s29 + $0x330] sm:$0xff]  }
 0x15d   : > { %4687 = vmatpush3.bf16.msra.mxu0 %v5049_v17  ;;  %v5100_v17 = vld [vmem:[%s6154_s29 + $0x368] sm:$0xff]  }
 0x15e   : > { %4688 = vmatprep.subr.bf16.mxu0 %v5052_v18  ;;  %v5099_v18 = vld [vmem:[%s6154_s29 + $0x3b0] sm:$0xff]  }
 0x15f   : > { %4709 = vmatpush3.bf16.msra.mxu1 %v5051_v19  ;;  %v5102_v19 = vld [vmem:[%s6154_s29 + $0x3e8] sm:$0xff]  }
 0x160   : > { %4710 = vmatprep.subr.bf16.mxu1 %v5054_v20  ;;  %v5101_v20 = vld [vmem:[%s6154_s29 + $0x328] sm:$0xff]  }
 0x161   : > { %4689 = vmatpush3.bf16.msra.mxu0 %v5053_v21  ;;  %v5104_v21 = vld [vmem:[%s6154_s29 + $0x360] sm:$0xff]  }
 0x162   : > { %4690 = vmatprep.subr.bf16.mxu0 %v5056_v22  ;;  %v5103_v22 = vld [vmem:[%s6154_s29 + $0x3a8] sm:$0xff]  }
 0x163   : > { %4711 = vmatpush3.bf16.msra.mxu1 %v5055_v23  ;;  %v5106_v23 = vld [vmem:[%s6154_s29 + $0x3e0] sm:$0xff]  }
 0x164   : > { %4712 = vmatprep.subr.bf16.mxu1 %v5058_v24  ;;  %v5105_v24 = vld [vmem:[%s6154_s29 + $0x320] sm:$0xff]  }
 0x165   : > { %4691 = vmatpush3.bf16.msra.mxu0 %v5057_v25  ;;  %v5108_v25 = vld [vmem:[%s6154_s29 + $0x358] sm:$0xff]  }
 0x166   : > { %4720 = vmatprep.subr.bf16.mxu0 %v5060_v27  ;;  %v5110_v27 = vld [vmem:[%s6154_s29 + $0x3d8] sm:$0xff]  }
 0x167   : > { %4713 = vmatpush3.bf16.msra.mxu1 %v5059_v28  ;;  %v5109_v28 = vld [vmem:[%s6154_s29 + $0x318] sm:$0xff]  }
 0x168   : > { %3779 = vmatmul.mubr.bf16.vlgmr.msra.gmra.mxu0 %v2331_v26  ;;  %4742 = vmatprep.subr.bf16.mxu1 %v5062_v29  ;;  %v5107_v26 = vld [vmem:[%s6154_s29 + $0x3a0] sm:$0xff]   ;;  %v5112_v29 = vld [vmem:[%s6154_s29 + $0x350] sm:$0xff]  }
 0x169   : > { %4721 = vmatpush3.bf16.msra.mxu0 %v5061_v30  ;;  %3858 = vmatprep.mubr.bf16.mxu0 %v2387_v0  ;;  %v5111_v30 = vld [vmem:[%s6154_s29 + $0x398] sm:$0xff]   ;;  %v5145_v0 = vld [vmem:[%s6154_s29 + $0x450] sm:$0xff]  }
 0x16a   : > { %3819 = vmatmul.mubr.bf16.vlgmr.msra.gmra.mxu1 %v2347_v31  ;;  %4722 = vmatprep.subr.bf16.mxu0 %v5064_v32  ;;  %v5114_v31 = vld [vmem:[%s6154_s29 + $0x3d0] sm:$0xff]  }
 0x16b   : > { %4743 = vmatpush3.bf16.msra.mxu1 %v5063_v33  ;;  %3898 = vmatprep.mubr.bf16.mxu1 %v2397_v4  ;;  %v5113_v32 = vld [vmem:[%s6154_s29 + $0x310] sm:$0xff]   ;;  %v5116_v33 = vld [vmem:[%s6154_s29 + $0x348] sm:$0xff]  }
 0x16c   : > { %4744 = vmatprep.subr.bf16.mxu1 %v5066_v34  ;;  %v5115_v34 = vld [vmem:[%s6154_s29 + $0x390] sm:$0xff]   ;;  %v5149_v4 = vld [vmem:[%s6154_s29 + $0x448] sm:$0xff]  }
 0x16d   : > { %4723 = vmatpush3.bf16.msra.mxu0 %v5065_v35  ;;  %v5118_v35 = vld [vmem:[%s6154_s29 + $0x3c8] sm:$0xff]  }
 0x16e   : > { %4724 = vmatprep.subr.bf16.mxu0 %v5068_v36  ;;  %v5117_v36 = vld [vmem:[%s6154_s29 + $0x308] sm:$0xff]  }
 0x16f   : > { %4745 = vmatpush3.bf16.msra.mxu1 %v5067_v37  ;;  %v5120_v37 = vld [vmem:[%s6154_s29 + $0x340] sm:$0xff]  }
 0x170   : > { %4746 = vmatprep.subr.bf16.mxu1 %v5070_v38  ;;  %v5119_v38 = vld [vmem:[%s6154_s29 + $0x388] sm:$0xff]  }
 0x171   : > { %4725 = vmatpush3.bf16.msra.mxu0 %v5069_v39  ;;  %v5122_v39 = vld [vmem:[%s6154_s29 + $0x3c0] sm:$0xff]  }
 0x172   : > { %4726 = vmatprep.subr.bf16.mxu0 %v5072_v40  ;;  %v5121_v40 = vld [vmem:[%s6154_s29 + $0x300] sm:$0xff]  }
 0x173   : > { %4747 = vmatpush3.bf16.msra.mxu1 %v5071_v41  ;;  %v2380_v41 = vrot.slane %v6269_v61, %v6194_v50  ;;  %v5140_v61 = vld [vmem:[%s6154_s29 + $0x4a0] sm:$0xff]  }
 0x174   : > { %4748 = vmatprep.subr.bf16.mxu1 %v5074_v42  ;;  %v5125_v42 = vld [vmem:[%s6154_s29 + $0x478] sm:$0xff]  }
 0x175   : > { %4727 = vmatpush3.bf16.msra.mxu0 %v5073_v43  ;;  %v5124_v43 = vld [vmem:[%s6154_s29 + $0x380] sm:$0xff]  }
 0x176   : > { %4728 = vmatprep.subr.bf16.mxu0 %v5076_v44  ;;  %v5127_v44 = vld [vmem:[%s6154_s29 + $0x4f8] sm:$0xff]  }
 0x177   : > { %4749 = vmatpush3.bf16.msra.mxu1 %v5075_v45  ;;  %v5126_v45 = vld [vmem:[%s6154_s29 + $0x438] sm:$0xff]  }
 0x178   : > { %4750 = vmatprep.subr.bf16.mxu1 %v5078_v46  ;;  %v2396_v46 = vcombine.high %v2380_v41, %v2380_v41 }
 0x179   : > { %4729 = vmatpush3.bf16.msra.mxu0 %v5077_v47  ;;  %v5129_v47 = vld [vmem:[%s6154_s29 + $0x470] sm:$0xff]  }
 0x17a   : > { %4730 = vmatprep.subr.bf16.mxu0 %v5080_v48  ;;  %v5128_v48 = vld [vmem:[%s6154_s29 + $0x4b8] sm:$0xff]  }
 0x17b   : > { %4751 = vmatpush3.bf16.msra.mxu1 %v5079_v49  ;;  %v5131_v49 = vld [vmem:[%s6154_s29 + $0x4f0] sm:$0xff]  }
 0x17c   : > { %4752 = vmatprep.subr.bf16.mxu1 %v5082_v51  ;;  %v5130_v51 = vld [vmem:[%s6154_s29 + $0x430] sm:$0xff]  }
 0x17d   : > { %4731 = vmatpush3.bf16.msra.mxu0 %v5081_v52  ;;  %v5133_v52 = vld [vmem:[%s6154_s29 + $0x468] sm:$0xff]  }
 0x17e   : > { %4732 = vmatprep.subr.bf16.mxu0 %v5084_v53  ;;  %v5132_v53 = vld [vmem:[%s6154_s29 + $0x4b0] sm:$0xff]  }
 0x17f   : > { %4753 = vmatpush3.bf16.msra.mxu1 %v5083_v55  ;;  %v5134_v55 = vld [vmem:[%s6154_s29 + $0x428] sm:$0xff]  }
 0x180   : > { %4754 = vmatprep.subr.bf16.mxu1 %v5086_v58  ;;  %v5139_v58 = vld [vmem:[%s6154_s29 + $0x4e0] sm:$0xff]  }
 0x181   : > { %4733 = vmatpush3.bf16.msra.mxu0 %v5085_v59  ;;  %v5138_v59 = vld [vmem:[%s6154_s29 + $0x420] sm:$0xff]  }
 0x182   : > { %4734 = vmatprep.subr.bf16.mxu0 %v5088_v62  ;;  %v5143_v62 = vld [vmem:[%s6154_s29 + $0x4d8] sm:$0xff]  }
 0x183   : > { %4755 = vmatpush3.bf16.msra.mxu1 %v5087_v63  ;;  %v5142_v63 = vld [vmem:[%s6154_s29 + $0x418] sm:$0xff]  }
 0x184   : > { %4756 = vmatprep.subr.bf16.mxu1 %v5090_v2  ;;  %v5147_v2 = vld [vmem:[%s6154_s29 + $0x4d0] sm:$0xff]  }
 0x185   : > { %4735 = vmatpush3.bf16.msra.mxu0 %v5089_v3  ;;  %v5146_v3 = vld [vmem:[%s6154_s29 + $0x410] sm:$0xff]  }
 0x186   : > { %4764 = vmatprep.subr.bf16.mxu0 %v5092_v6  ;;  %v5148_v6 = vld [vmem:[%s6154_s29 + $0x490] sm:$0xff]  }
 0x187   : > { %4757 = vmatpush3.bf16.msra.mxu1 %v5091_v7 }
 0x188   : > { %3859 = vmatmul.mubr.bf16.vlgmr.msra.gmra.mxu0 %v2373_v5  ;;  %4786 = vmatprep.subr.bf16.mxu1 %v5094_v9  ;;  %v1896_v5 = vld [vmem:[%s6464_s0 + $0x10] sm:$0xff] }
 0x189   : > { %4765 = vmatpush3.bf16.msra.mxu0 %v5093_v10  ;;  %3938 = vmatprep.mubr.bf16.mxu0 %v2394_v8  ;;  %v2406_v7 = vrot.slane %v1896_v5, %v6194_v50  ;;  %v2399_v8 = vcombine.high %v1896_v5, %v1896_v5  ;;  %v5151_v9 = vld [vmem:[%s6154_s29 + $0x4c8] sm:$0xff]  }
 0x18a   : > { %3899 = vmatmul.mubr.bf16.vlgmr.msra.gmra.mxu1 %v2395_v11  ;;  %4766 = vmatprep.subr.bf16.mxu0 %v5096_v12  ;;  %v5150_v10 = vld [vmem:[%s6154_s29 + $0x408] sm:$0xff]  }
 0x18b   : > { %4787 = vmatpush3.bf16.msra.mxu1 %v5095_v13  ;;  %3978 = vmatprep.mubr.bf16.mxu1 %v2398_v14  ;;  %v2414_v11 = vcombine.high %v2406_v7, %v2406_v7  ;;  %v6347_v12 = vrot.slane %v2399_v8, %v6194_v50  ;;  %v5153_v13 = vld [vmem:[%s6154_s29 + $0x440] sm:$0xff]   ;;  %v5152_v14 = vld [vmem:[%s6154_s29 + $0x488] sm:$0xff]  }
 0x18c   : > { %4788 = vmatprep.subr.bf16.mxu1 %v5098_v15 }
 0x18d   : > { %4767 = vmatpush3.bf16.msra.mxu0 %v5097_v16  ;;  %v2436_v15 = vrot.slane %v2414_v11, %v6194_v50  ;;  %v2415_v16 = vcombine.high %v6347_v12, %v6347_v12 }
 0x18e   : > { %4768 = vmatprep.subr.bf16.mxu0 %v5100_v17  ;;  %v5155_v17 = vld [vmem:[%s6154_s29 + $0x4c0] sm:$0xff]  }
 0x18f   : > { %4789 = vmatpush3.bf16.msra.mxu1 %v5099_v18  ;;  %v5154_v18 = vld [vmem:[%s6154_s29 + $0x400] sm:$0xff]  }
 0x190   : > { %4790 = vmatprep.subr.bf16.mxu1 %v5102_v19  ;;  %v2446_v19 = vcombine.high %v2436_v15, %v2436_v15 }
 0x191   : > { %4769 = vmatpush3.bf16.msra.mxu0 %v5101_v20  ;;  %v2422_v20 = vrot.slane %v2406_v7, %v6194_v50 }
 0x192   : > { %4770 = vmatprep.subr.bf16.mxu0 %v5104_v21  ;;  %v5157_v21 = vld [vmem:[%s6154_s29 + $0x578] sm:$0xff]  }
 0x193   : > { %4791 = vmatpush3.bf16.msra.mxu1 %v5103_v22  ;;  %v5156_v22 = vld [vmem:[%s6154_s29 + $0x480] sm:$0xff]  }
 0x194   : > { %4792 = vmatprep.subr.bf16.mxu1 %v5106_v23  ;;  %v2443_v23 = vrot.slane %v2415_v16, %v6194_v50  ;;  %v5195_v16 = vld [vmem:[%s6152_s28 + $0x30] sm:$0xff]  }
 0x195   : > { %4771 = vmatpush3.bf16.msra.mxu0 %v5105_v24  ;;  %v5159_v24 = vld [vmem:[%s6154_s29 + $0x5f8] sm:$0xff]  }
 0x196   : > { %4772 = vmatprep.subr.bf16.mxu0 %v5108_v25  ;;  %v5158_v25 = vld [vmem:[%s6154_s29 + $0x538] sm:$0xff]  }
 0x197   : > { %4793 = vmatpush3.bf16.msra.mxu1 %v5107_v26  ;;  %v2444_v26 = vcombine.high %v2422_v20, %v2422_v20 }
 0x198   : > { %4794 = vmatprep.subr.bf16.mxu1 %v5110_v27  ;;  %v5161_v27 = vld [vmem:[%s6154_s29 + $0x570] sm:$0xff]  }
 0x199   : > { %4773 = vmatpush3.bf16.msra.mxu0 %v5109_v28  ;;  %v5160_v28 = vld [vmem:[%s6154_s29 + $0x5b8] sm:$0xff]  }
 0x19a   : > { %4774 = vmatprep.subr.bf16.mxu0 %v5112_v29  ;;  %v2447_v29 = vcombine.high %v2443_v23, %v2443_v23 }
 0x19b   : > { %4795 = vmatpush3.bf16.msra.mxu1 %v5111_v30  ;;  %v5163_v30 = vld [vmem:[%s6154_s29 + $0x5f0] sm:$0xff]  }
 0x19c   : > { %4796 = vmatprep.subr.bf16.mxu1 %v5114_v31  ;;  %v5162_v31 = vld [vmem:[%s6154_s29 + $0x530] sm:$0xff]  }
 0x19d   : > { %4775 = vmatpush3.bf16.msra.mxu0 %v5113_v32  ;;  %v5165_v32 = vld [vmem:[%s6154_s29 + $0x568] sm:$0xff]  }
 0x19e   : > { %4776 = vmatprep.subr.bf16.mxu0 %v5116_v33  ;;  %v5164_v33 = vld [vmem:[%s6154_s29 + $0x5b0] sm:$0xff]  }
 0x19f   : > { %4797 = vmatpush3.bf16.msra.mxu1 %v5115_v34  ;;  %v5167_v34 = vld [vmem:[%s6154_s29 + $0x5e8] sm:$0xff]  }
 0x1a0   : > { %4798 = vmatprep.subr.bf16.mxu1 %v5118_v35  ;;  %v5166_v35 = vld [vmem:[%s6154_s29 + $0x528] sm:$0xff]  }
 0x1a1   : > { %4777 = vmatpush3.bf16.msra.mxu0 %v5117_v36  ;;  %v5169_v36 = vld [vmem:[%s6154_s29 + $0x560] sm:$0xff]  }
 0x1a2   : > { %4778 = vmatprep.subr.bf16.mxu0 %v5120_v37  ;;  %v5168_v37 = vld [vmem:[%s6154_s29 + $0x5a8] sm:$0xff]  }
 0x1a3   : > { %4799 = vmatpush3.bf16.msra.mxu1 %v5119_v38  ;;  %v5171_v38 = vld [vmem:[%s6154_s29 + $0x5e0] sm:$0xff]  }
 0x1a4   : > { %4800 = vmatprep.subr.bf16.mxu1 %v5122_v39  ;;  %v5170_v39 = vld [vmem:[%s6154_s29 + $0x520] sm:$0xff]  }
 0x1a5   : > { %4779 = vmatpush3.bf16.msra.mxu0 %v5121_v40  ;;  %v5173_v40 = vld [vmem:[%s6154_s29 + $0x558] sm:$0xff]  }
 0x1a6   : > { %4808 = vmatprep.subr.bf16.mxu0 %v5125_v42  ;;  %v5175_v42 = vld [vmem:[%s6154_s29 + $0x5d8] sm:$0xff]  }
 0x1a7   : > { %4801 = vmatpush3.bf16.msra.mxu1 %v5124_v43  ;;  %v5174_v43 = vld [vmem:[%s6154_s29 + $0x518] sm:$0xff]  }
 0x1a8   : > { %3939 = vmatmul.mubr.bf16.vlgmr.msra.gmra.mxu0 %v2380_v41  ;;  %4830 = vmatprep.subr.bf16.mxu1 %v5127_v44  ;;  %v5172_v41 = vld [vmem:[%s6154_s29 + $0x5a0] sm:$0xff]   ;;  %v5177_v44 = vld [vmem:[%s6154_s29 + $0x550] sm:$0xff]  }
 0x1a9   : > { %4809 = vmatpush3.bf16.msra.mxu0 %v5126_v45  ;;  %4018 = vmatprep.mubr.bf16.mxu0 %v2436_v15  ;;  %v5176_v45 = vld [vmem:[%s6154_s29 + $0x598] sm:$0xff]  }
 0x1aa   : > { %3979 = vmatmul.mubr.bf16.vlgmr.msra.gmra.mxu1 %v2396_v46  ;;  %4810 = vmatprep.subr.bf16.mxu0 %v5129_v47  ;;  %v5179_v46 = vld [vmem:[%s6154_s29 + $0x5d0] sm:$0xff]  }
 0x1ab   : > { %4831 = vmatpush3.bf16.msra.mxu1 %v5128_v48  ;;  %4058 = vmatprep.mubr.bf16.mxu1 %v2446_v19  ;;  %v5178_v47 = vld [vmem:[%s6154_s29 + $0x510] sm:$0xff]   ;;  %v5181_v48 = vld [vmem:[%s6154_s29 + $0x548] sm:$0xff]  }
 0x1ac   : > { %4832 = vmatprep.subr.bf16.mxu1 %v5131_v49  ;;  %v5180_v49 = vld [vmem:[%s6154_s29 + $0x590] sm:$0xff]  }
 0x1ad   : > { %4811 = vmatpush3.bf16.msra.mxu0 %v5130_v51  ;;  %v5183_v51 = vld [vmem:[%s6154_s29 + $0x5c8] sm:$0xff]   ;;  %v5194_v15 = vld [vmem:[%s6152_s28 + $0x38] sm:$0xff]  }
 0x1ae   : > { %4812 = vmatprep.subr.bf16.mxu0 %v5133_v52  ;;  %v5182_v52 = vld [vmem:[%s6154_s29 + $0x508] sm:$0xff]  }
 0x1af   : > { %4833 = vmatpush3.bf16.msra.mxu1 %v5132_v53  ;;  %v5185_v53 = vld [vmem:[%s6154_s29 + $0x540] sm:$0xff]  }
 0x1b0   : > { %4834 = vmatprep.subr.bf16.mxu1 %v5135_v54  ;;  %v5184_v54 = vld [vmem:[%s6154_s29 + $0x588] sm:$0xff]  }
 0x1b1   : > { %4813 = vmatpush3.bf16.msra.mxu0 %v5134_v55  ;;  %v5186_v55 = vld [vmem:[%s6154_s29 + $0x500] sm:$0xff]  }
 0x1b2   : > { %4814 = vmatprep.subr.bf16.mxu0 %v5137_v56  ;;  %v5187_v56 = vld [vmem:[%s6154_s29 + $0x5c0] sm:$0xff]  }
 0x1b3   : > { %4835 = vmatpush3.bf16.msra.mxu1 %v5136_v57  ;;  %v5189_v57 = vld [vmem:[%s6154_s29 + $0x580] sm:$0xff]  }
 0x1b4   : > { %4836 = vmatprep.subr.bf16.mxu1 %v5139_v58  ;;  %v2429_v58 = vrot.slane %v6347_v12, %v6194_v50 }
 0x1b5   : > { %4815 = vmatpush3.bf16.msra.mxu0 %v5138_v59  ;;  %v5190_v59 = vld [vmem:[%s6154_s29 + $0x618] sm:$0xff]  }
 0x1b6   : > { %4816 = vmatprep.subr.bf16.mxu0 %v5141_v60  ;;  %v5272_v60 = vmov 0.0  }
 0x1b7   : > { %4837 = vmatpush3.bf16.msra.mxu1 %v5140_v61  ;;  %v2445_v61 = vcombine.high %v2429_v58, %v2429_v58 }
 0x1b8   : > { %4838 = vmatprep.subr.bf16.mxu1 %v5143_v62  ;;  %v5191_v62 = vld [vmem:[%s6154_s29 + $0x610] sm:$0xff]  }
 0x1b9   : > { %4817 = vmatpush3.bf16.msra.mxu0 %v5142_v63  ;;  %v5192_v63 = vld [vmem:[%s6154_s29 + $0x608] sm:$0xff]  }
 0x1ba   : > { %4818 = vmatprep.subr.bf16.mxu0 %v5145_v0  ;;  %v5193_v0 = vld [vmem:[%s6154_s29 + $0x600] sm:$0xff]  }
 0x1bb   : > { %4839 = vmatpush3.bf16.msra.mxu1 %v5144_v1  ;;  %v4420_v1 = vld.sshfl [vmem:[%s6464_s0 + $0x18] sm:$0x1 pattern:$0x75316420] }
 0x1bc   : > { %4840 = vmatprep.subr.bf16.mxu1 %v5147_v2  ;;  %v2461_v2 = vrot.slane %v4420_v1, %v6194_v50 }
 0x1bd   : > { %4819 = vmatpush3.bf16.msra.mxu0 %v5146_v3 }
 0x1be   : > { %4820 = vmatprep.subr.bf16.mxu0 %v5149_v4  ;;  %v4419_v4 = vld [vmem:[%s1881_s16] ss:$0 sm:$0xff] }
 0x1bf   : > { %4841 = vmatpush3.bf16.msra.mxu1 %v5148_v6 }
 0x1c0   : > { %4842 = vmatprep.subr.bf16.mxu1 %v5151_v9 }
 0x1c1   : > { %4821 = vmatpush3.bf16.msra.mxu0 %v5150_v10 }
 0x1c2   : > { %4822 = vmatprep.subr.bf16.mxu0 %v5153_v13 }
 0x1c3   : > { %4843 = vmatpush3.bf16.msra.mxu1 %v5152_v14 }
 0x1c4   : > { %4844 = vmatprep.subr.bf16.mxu1 %v5155_v17  ;;  %v5196_v17 = vld [vmem:[%s6152_s28 + $0x28] sm:$0xff]  }
 0x1c5   : > { %4823 = vmatpush3.bf16.msra.mxu0 %v5154_v18 }
 0x1c6   : > { %4852 = vmatprep.subr.bf16.mxu0 %v5157_v21  ;;  %v5197_v21 = vld [vmem:[%s6152_s28 + $0x20] sm:$0xff]  }
 0x1c7   : > { %4845 = vmatpush3.bf16.msra.mxu1 %v5156_v22 }
 0x1c8   : > { %4019 = vmatmul.mubr.bf16.vlgmr.msra.gmra.mxu0 %v2422_v20  ;;  %4874 = vmatprep.subr.bf16.mxu1 %v5159_v24 }
 0x1c9   : > { %4853 = vmatpush3.bf16.msra.mxu0 %v5158_v25  ;;  %4098 = vmatprep.mubr.bf16.mxu0 %v2443_v23 }
 0x1ca   : > { %4059 = vmatmul.mubr.bf16.vlgmr.msra.gmra.mxu1 %v2444_v26  ;;  %4854 = vmatprep.subr.bf16.mxu0 %v5161_v27 }
 0x1cb   : > { %4875 = vmatpush3.bf16.msra.mxu1 %v5160_v28  ;;  %4138 = vmatprep.mubr.bf16.mxu1 %v2447_v29  ;;  %v5198_v29 = vld [vmem:[%s6152_s28 + $0x18] sm:$0xff]  }
 0x1cc   : > { %4876 = vmatprep.subr.bf16.mxu1 %v5163_v30 }
 0x1cd   : > { %4855 = vmatpush3.bf16.msra.mxu0 %v5162_v31 }
 0x1ce   : > { %4856 = vmatprep.subr.bf16.mxu0 %v5165_v32  ;;  %v5199_v32 = vld [vmem:[%s6152_s28 + $0x10] sm:$0xff]  }
 0x1cf   : > { %4877 = vmatpush3.bf16.msra.mxu1 %v5164_v33  ;;  %v5200_v33 = vld [vmem:[%s6152_s28 + $0x8] sm:$0xff]  }
 0x1d0   : > { %4878 = vmatprep.subr.bf16.mxu1 %v5167_v34  ;;  %v5201_v34 = vld [vmem:[%s6152_s28] sm:$0xff]  }
 0x1d1   : > { %4857 = vmatpush3.bf16.msra.mxu0 %v5166_v35 }
 0x1d2   : > { %4858 = vmatprep.subr.bf16.mxu0 %v5169_v36 }
 0x1d3   : > { %4879 = vmatpush3.bf16.msra.mxu1 %v5168_v37 }
 0x1d4   : > { %4880 = vmatprep.subr.bf16.mxu1 %v5171_v38 }
 0x1d5   : > { %4859 = vmatpush3.bf16.msra.mxu0 %v5170_v39 }
 0x1d6   : > { %4860 = vmatprep.subr.bf16.mxu0 %v5173_v40 }
 0x1d7   : > { %4881 = vmatpush3.bf16.msra.mxu1 %v5172_v41 }
 0x1d8   : > { %4882 = vmatprep.subr.bf16.mxu1 %v5175_v42 }
 0x1d9   : > { %4861 = vmatpush3.bf16.msra.mxu0 %v5174_v43 }
 0x1da   : > { %4862 = vmatprep.subr.bf16.mxu0 %v5177_v44 }
 0x1db   : > { %4883 = vmatpush3.bf16.msra.mxu1 %v5176_v45 }
 0x1dc   : > { %4884 = vmatprep.subr.bf16.mxu1 %v5179_v46 }
 0x1dd   : > { %4863 = vmatpush3.bf16.msra.mxu0 %v5178_v47 }
 0x1de   : > { %4864 = vmatprep.subr.bf16.mxu0 %v5181_v48 }
 0x1df   : > { %4885 = vmatpush3.bf16.msra.mxu1 %v5180_v49 }
 0x1e0   : > { %4886 = vmatprep.subr.bf16.mxu1 %v5183_v51 }
 0x1e1   : > { %4865 = vmatpush3.bf16.msra.mxu0 %v5182_v52 }
 0x1e2   : > { %4866 = vmatprep.subr.bf16.mxu0 %v5185_v53 }
 0x1e3   : > { %4887 = vmatpush3.bf16.msra.mxu1 %v5184_v54 }
 0x1e4   : > { %4888 = vmatprep.subr.bf16.mxu1 %v5187_v56 }
 0x1e5   : > { %4867 = vmatpush3.bf16.msra.mxu0 %v5186_v55 }
 0x1e6   : > { %4910 = vmatprep.subr.bf16.mxu0 %v5272_v60 }
 0x1e7   : > { %4889 = vmatpush3.bf16.msra.mxu1 %v5189_v57 }
 0x1e8   : > { %4099 = vmatmul.mubr.bf16.vlgmr.msra.gmra.mxu0 %v2429_v58  ;;  %4922 = vmatprep.subr.bf16.mxu1 %v5272_v60 }
 0x1e9   : > { %4911 = vmatpush3.bf16.msra.mxu0 %v5190_v59  ;;  %4918 = vmatprep.mubr.msk.bf16.mxu0 %vm5273_vm0, %v5272_v60 }
 0x1ea   : > { %4139 = vmatmul.mubr.bf16.vlgmr.msra.gmra.mxu1 %v2445_v61  ;;  %4912 = vmatprep.subr.bf16.mxu0 %v5272_v60 }
 0x1eb   : > { %4938 = vmatprep.mubr.msk.bf16.mxu1 %vm5273_vm0, %v5272_v60  ;;  %4923 = vmatpush3.bf16.msra.mxu1 %v5194_v15 }
 0x1ec   : > { %4924 = vmatprep.subr.bf16.mxu1 %v5272_v60 }
 0x1ed   : > { %4913 = vmatpush3.bf16.msra.mxu0 %v5191_v62 }
 0x1ee   : > { %4914 = vmatprep.subr.bf16.mxu0 %v5272_v60 }
 0x1ef   : > { %4925 = vmatpush3.bf16.msra.mxu1 %v5195_v16 }
 0x1f0   : > { %4926 = vmatprep.subr.bf16.mxu1 %v5272_v60 }
 0x1f1   : > { %4915 = vmatpush3.bf16.msra.mxu0 %v5192_v63 }
 0x1f2   : > { %4916 = vmatprep.subr.bf16.mxu0 %v5272_v60 }
 0x1f3   : > { %4927 = vmatpush3.bf16.msra.mxu1 %v5196_v17 }
 0x1f4   : > { %4928 = vmatprep.subr.bf16.mxu1 %v5272_v60 }
 0x1f5   : > { %4917 = vmatpush3.bf16.msra.mxu0 %v5193_v0 }
 0x1f7   : > { %4929 = vmatpush3.bf16.msra.mxu1 %v5197_v21 }
 0x1f8   : > { %4919 = vmatmul.mubr.msk.bf16.vlgmr.msra.gmra.mxu0 %vm3662_vm1, %v2461_v2  ;;  %4930 = vmatprep.subr.bf16.mxu1 %v5272_v60 }
 0x1fb   : > { %4931 = vmatpush3.bf16.msra.mxu1 %v5198_v29 }
 0x1fc   : > { %4932 = vmatprep.subr.bf16.mxu1 %v5272_v60 }
 0x1ff   : > { %4933 = vmatpush3.bf16.msra.mxu1 %v5199_v32 }
 0x200   : > { %4934 = vmatprep.subr.bf16.mxu1 %v5272_v60 }
 0x203   : > { %4935 = vmatpush3.bf16.msra.mxu1 %v5200_v33 }
 0x204   : > { %4936 = vmatprep.subr.bf16.mxu1 %v5272_v60 }
 0x207   : > { %4937 = vmatpush3.bf16.msra.mxu1 %v5201_v34 }
 0x208   : > { %v4648_v3 = vpop.f32.mrf.mxu0 }
 0x20a   : > { %v4649_v5 = vpop.f32.mrf.mxu0  ;;  %v4670_v6 = vpop.f32.mrf.mxu1 }
 0x20b   : > { %v4650_v7 = vadd.f32 %v4649_v5, %v4648_v3 }
 0x20c   : > { %v4651_v8 = vpop.f32.mrf.mxu0  ;;  %v4671_v9 = vpop.f32.mrf.mxu1 }
 0x20d   : > { %v3701_v10 = vadd.f32 %v4650_v7, %v4419_v4  ;;  %v4672_v11 = vadd.f32 %v4671_v9, %v4670_v6 }
 0x20e   : > { %v4652_v50 = vpop.f32.mrf.mxu0  ;;  %v4673_v12 = vpop.f32.mrf.mxu1 }
 0x20f   : > { %v3741_v13 = vadd.f32 %v4672_v11, %v3701_v10 }
 0x210   : > { %v4674_v14 = vpop.f32.mrf.mxu1 }
 0x228   : > { %v4692_v18 = vpop.f32.mrf.mxu0 }
 0x22a   : > { %v4693_v19 = vpop.f32.mrf.mxu0  ;;  %v4714_v20 = vpop.f32.mrf.mxu1 }
 0x22b   : > { %v4694_v22 = vadd.f32 %v4693_v19, %v4692_v18 }
 0x22c   : > { %v4695_v23 = vpop.f32.mrf.mxu0  ;;  %v4715_v24 = vpop.f32.mrf.mxu1 }
 0x22d   : > { %v3781_v25 = vadd.f32 %v4694_v22, %v3741_v13  ;;  %v4716_v26 = vadd.f32 %v4715_v24, %v4714_v20 }
 0x22e   : > { %v4696_v27 = vpop.f32.mrf.mxu0  ;;  %v4717_v28 = vpop.f32.mrf.mxu1 }
 0x22f   : > { %v3821_v30 = vadd.f32 %v4716_v26, %v3781_v25  ;;  %v4187_v26 = vld [vmem:[#allocation2] sm:$0x3] }
 0x230   : > { %v4718_v31 = vpop.f32.mrf.mxu1 }
 0x248   : > { %v4736_v35 = vpop.f32.mrf.mxu0 }
 0x24a   : > { %v4737_v36 = vpop.f32.mrf.mxu0  ;;  %v4758_v37 = vpop.f32.mrf.mxu1 }
 0x24b   : > { %v4738_v38 = vadd.f32 %v4737_v36, %v4736_v35 }
 0x24c   : > { %v4739_v39 = vpop.f32.mrf.mxu0  ;;  %v4759_v40 = vpop.f32.mrf.mxu1 }
 0x24d   : > { %v3861_v41 = vadd.f32 %v4738_v38, %v3821_v30  ;;  %v4760_v42 = vadd.f32 %v4759_v40, %v4758_v37 }
 0x24e   : > { %v4740_v43 = vpop.f32.mrf.mxu0  ;;  %v4761_v44 = vpop.f32.mrf.mxu1 }
 0x24f   : > { %v3901_v45 = vadd.f32 %v4760_v42, %v3861_v41 }
 0x250   : > { %v4762_v46 = vpop.f32.mrf.mxu1 }
 0x268   : > { %v4780_v47 = vpop.f32.mrf.mxu0 }
 0x26a   : > { %v4781_v48 = vpop.f32.mrf.mxu0  ;;  %v4802_v49 = vpop.f32.mrf.mxu1 }
 0x26b   : > { %v4782_v51 = vadd.f32 %v4781_v48, %v4780_v47 }
 0x26c   : > { %v4783_v52 = vpop.f32.mrf.mxu0  ;;  %v4803_v53 = vpop.f32.mrf.mxu1 }
 0x26d   : > { %v3941_v54 = vadd.f32 %v4782_v51, %v3901_v45  ;;  %v4804_v55 = vadd.f32 %v4803_v53, %v4802_v49 }
 0x26e   : > { %v4784_v56 = vpop.f32.mrf.mxu0  ;;  %v4805_v57 = vpop.f32.mrf.mxu1 }
 0x26f   : > { %v3981_v58 = vadd.f32 %v4804_v55, %v3941_v54 }
 0x270   : > { %v4806_v59 = vpop.f32.mrf.mxu1 }
 0x288   : > { %v4824_v60 = vpop.f32.mrf.mxu0 }
 0x28a   : > { %v4825_v61 = vpop.f32.mrf.mxu0  ;;  %v4846_v62 = vpop.f32.mrf.mxu1 }
 0x28b   : > { %v4826_v5 = vadd.f32 %v4825_v61, %v4824_v60 }
 0x28c   : > { %v4827_v63 = vpop.f32.mrf.mxu0  ;;  %v4847_v0 = vpop.f32.mrf.mxu1 }
 0x28d   : > { %v4021_v10 = vadd.f32 %v4826_v5, %v3981_v58  ;;  %v4848_v11 = vadd.f32 %v4847_v0, %v4846_v62 }
 0x28e   : > { %v4828_v1 = vpop.f32.mrf.mxu0  ;;  %v4849_v2 = vpop.f32.mrf.mxu1 }
 0x28f   : > { %v4061_v15 = vadd.f32 %v4848_v11, %v4021_v10 }
 0x290   : > { %v4850_v3 = vpop.f32.mrf.mxu1 }
 0x2a8   : > { %v4868_v4 = vpop.f32.mrf.mxu0 }
 0x2aa   : > { %v4869_v6 = vpop.f32.mrf.mxu0  ;;  %v4890_v7 = vpop.f32.mrf.mxu1 }
 0x2ab   : > { %v4870_v13 = vadd.f32 %v4869_v6, %v4868_v4 }
 0x2ac   : > { %v4871_v8 = vpop.f32.mrf.mxu0  ;;  %v4891_v9 = vpop.f32.mrf.mxu1 }
 0x2ad   : > { %v4101_v16 = vadd.f32 %v4870_v13, %v4061_v15  ;;  %v4892_v17 = vadd.f32 %v4891_v9, %v4890_v7 }
 0x2ae   : > { %v4872_v50 = vpop.f32.mrf.mxu0  ;;  %v4893_v12 = vpop.f32.mrf.mxu1 }
 0x2af   : > { %v4141_v18 = vadd.f32 %v4892_v17, %v4101_v16 }
 0x2b0   : > { %v4894_v14 = vpop.f32.mrf.mxu1 }
 0x2b8   : > { %v4180_v19 = vpop.f32.mrf.mxu0 }
 0x2b9   : > { %v4181_v20 = vadd.f32 %v4180_v19, %v4141_v18 }
 0x2ba   : > { %v4920_v21 = vpop.f32.mrf.mxu0 }
 0x2bb   : > { %v4186_v22 = vmax.f32 %v4181_v20, 0.0 }
 0x2bc   : > { %v4183_v23 = vpop.f32.mrf.mxu0 }
 0x2bd   : > { %v4188_v24 = vpack.c.bf16 %v4186_v22, %v4186_v22 }
 0x2be   : > { %v4921_v25 = vpop.f32.mrf.mxu0 }
 0x2bf   : > { %4939 = vmatmul.mubr.bf16.vlgmr.msra.gmra.mxu1 %v4188_v24 }
 0x37f   : > { %v4287_v27 = vpop.f32.mrf.mxu1 }
 0x380   : > { %v4293_v28 = vadd.f32 %v4287_v27, %v4187_v26 }
 0x381   : > { %v4940_v29 = vpop.f32.mrf.mxu1  ;;  %4298 = sbr.rel (%p4626_p12) target bundleno = 909 (0x38d), region = 89 }
 0x382   : > { %4294 = vst [vmem:[#allocation2] sm:$0x3] %v4293_v28 }
 0x383   : > { %v4290_v30 = vpop.f32.mrf.mxu1 }
 0x385   : > { %v4941_v31 = vpop.f32.mrf.mxu1 }
 0x386   : > { %v4627_v33 = vld [vmem:[%s6468_s4] ss:$0 sm:$0xff] }
 0x389   : > { %v4299_v32 = vld [vmem:[#allocation2] sm:$0x3] }
 0x38a   : > { %v4307_v34 = vadd.f32 %v4627_v33, %v4299_v32 }
 0x38c   : > { %4308 = vst [vmem:[#allocation4] sm:$0x3] %v4307_v34 }
 0x38d PF: > { %p6434_p13 = scmp.eq.s32.totalorder %s4410_s23, 3  ;;  %s5274_s17 = smov [#allocation4]  }
 0x38e   : > { %s4318_s25 = sshll.u32 %s5274_s17, 4  ;;  %s4319_s25 = int_to_ptr.vmem [resolvable:$true] %s4318_s25 }
 0x38f   : > { %s5202_s20 = scalar_lea.vmem %s4319_s25, 32  ;;  %p5209_p3 = scmp.lt.s32.totalorder %s4319_s25, %s4319_s25 }
 0x390   : > { %p5203_p0 = scmp.ne.s32.totalorder %s4319_s25, %s5202_s20  ;;  %p5210_p4 = scmp.lt.s32.totalorder %s5202_s20, %s5202_s20 }
 0x392   : > { %p5204_p1 = pnand %p5203_p0, %p6434_p13  ;;  %p5211_p5 = por %p5210_p4, %p5209_p3 }
 0x394   : > { %p5205_p2 = pneg %p5204_p1 }
 0x396   : > { %p5212_p6 = pnand %p5211_p5, %p5205_p2 }
 0x398   : > { %5215 = shalt.err (!%p5212_p6)
}
 0x399   : > { %4945 = dma.vmem_to_hbm [thread:$0]  (%p6434_p13), %s4319_s25, 32, %s6469_s5, [#allocation5]  }
 0x39a   : > { %5247 = dma.done.wait (%p6434_p13), [#allocation5], 32  }
 0x39b   : > { %5249 = vsyncadd (%p6434_p13), [#allocation5], 4294967264 }
 0x39c PF: > { %s16_s22 = sadd.s32 1, %s5268_s22   ;;  %s6471_s18 = smov %s5256_s19 }
 0x39d   : > { %p13_p7 = scmp.ge.s32.totalorder %s16_s22, 6   ;;  %s6472_s19 = smov %s5341_s27 }
 0x39e   : > { %s6473_s20 = smov %s5264_s21  ;;  %s6474_s21 = smov %s6476_s24 }
 0x39f   :  { %15 = sbr.rel (!%p13_p7) target bundleno = 3 (0x3), region = 131 }
 0x3a4   :  { %4331 = vsyncpa [#allocation5], 1 }
 0x3a5   :  { %4333 = vsyncpa [#allocation5 + $0x1], 1 }

</bundles_post_ra>
